<compile_context>
chip_gen: v7x
topology: tpu7x:2x2x1
jax: 0.10.0
libtpu: 0.0.40
codegen_flags: <defaults>
</compile_context>

<pallas_src>
import functools

import jax
import jax.numpy as jnp
from jax.experimental import pallas as pl
from jax.experimental.pallas import tpu as pltpu


# ---------------------------------------------------------------------------
# helpers
# ---------------------------------------------------------------------------
def _pick_row_tile(h, target, need_mult8=False):
    """Largest divisor of `h` that is <= target (multiple of 8 when the tile
    sits on the sublane axis), falling back to the full extent."""
    target = int(max(1, target))
    if h <= target:
        return h
    for d in range(min(target, h), 0, -1):
        if h % d == 0 and (not need_mult8 or d % 8 == 0):
            return d
    return h


# ---------------------------------------------------------------------------
# kernels
# ---------------------------------------------------------------------------
def _deconv_phases_kernel(x_ref, w_ref, shift_ref, *out_refs,
                          phase_taps, th, w_out, ci, co, dh_span,
                          fuse_shift, fuse_relu):
    """All s*s output phases of the transposed conv for one (image, row-tile).

    x_ref:     (1, Hpad, Wpad, Ci)   padded input (resident across row tiles)
    w_ref:     (T_total, Ci, Co)     per-tap weight matrices (all phases)
    shift_ref: (1, 1, Co)            conv bias (only read when fuse_shift)
    out_refs:  P x (1, th, W_ph, Co) phase-output row tiles
               + (1, 1, Co) sum(y)   per-image BN partial (over all phases)
               + (1, 1, Co) sum(y*y)
    """
    n_phase = len(phase_taps)
    y_refs = out_refs[:n_phase]
    ssum_ref, ssq_ref = out_refs[n_phase], out_refs[n_phase + 1]

    r = pl.program_id(1)
    # One dynamic-offset load shared by every phase / tap of this row tile;
    # per-tap windows are cheap static slices of it.
    base = x_ref[0, pl.ds(r * th, th + dh_span), :, :]

    tot_s = jnp.zeros((1, co), jnp.float32)
    tot_q = jnp.zeros((1, co), jnp.float32)
    for p_idx, taps in enumerate(phase_taps):
        acc = None
        for (t, dh, dw) in taps:
            patch = base[dh:dh + th, dw:dw + w_out, :].reshape(th * w_out, ci)
            part = jnp.dot(patch, w_ref[t], preferred_element_type=jnp.float32)
            acc = part if acc is None else acc + part
        if acc is None:                             # phase with no taps (K < s)
            acc = jnp.zeros((th * w_out, co), jnp.float32)

        # BatchNorm batch-statistics partials (VPU/XLU work hidden under MXU
        # slack) so the BN stage never re-reads the conv output from HBM.
        tot_s = tot_s + jnp.sum(acc, axis=0, keepdims=True)
        tot_q = tot_q + jnp.sum(acc * acc, axis=0, keepdims=True)

        out = acc.reshape(th, w_out, co)
        if fuse_shift:
            out = out + shift_ref[...]
        if fuse_relu:
            out = jnp.maximum(out, 0.0)
        y_refs[p_idx][0] = out

    @pl.when(r == 0)
    def _init():
        ssum_ref[0] = tot_s
        ssq_ref[0] = tot_q

    @pl.when(r != 0)
    def _accumulate():
        ssum_ref[0] += tot_s
        ssq_ref[0] += tot_q


def _affine_relu_kernel(scale_ref, shift_ref, *refs, n_phase, relu):
    """Per-channel affine (BN apply) + optional ReLU for all phases at once.

    Blocks are (1, th2, W*Co): lane-dense loads/stores (last dim multiple of
    Co*W >= 128 or the full extent).  scale/shift are pre-tiled to W*Co.
    """
    y_refs = refs[:n_phase]
    o_refs = refs[n_phase:]
    sc = scale_ref[...]
    sh = shift_ref[...]
    for y_ref, o_ref in zip(y_refs, o_refs):
        v = y_ref[0] * sc + sh
        if relu:
            v = jnp.maximum(v, 0.0)
        o_ref[0] = v


# ---------------------------------------------------------------------------
# pallas_call builders
# ---------------------------------------------------------------------------
def _deconv_phases(x_pad, w_all, shift, phase_taps, th, h_ph, w_ph, *,
                   fuse_shift, fuse_relu, vmem_limit_bytes=None):
    n, hpad, wpad, ci = x_pad.shape
    t_tot, _, co = w_all.shape
    n_phase = len(phase_taps)
    dh_span = max([dh for taps in phase_taps for (_, dh, _) in taps] + [0])

    kernel = functools.partial(
        _deconv_phases_kernel, phase_taps=phase_taps, th=th, w_out=w_ph,
        ci=ci, co=co, dh_span=dh_span, fuse_shift=fuse_shift,
        fuse_relu=fuse_relu)

    out_shape = tuple(jax.ShapeDtypeStruct((n, h_ph, w_ph, co), jnp.float32)
                      for _ in range(n_phase)) + (
        jax.ShapeDtypeStruct((n, 1, co), jnp.float32),   # sum(y)   per channel
        jax.ShapeDtypeStruct((n, 1, co), jnp.float32),   # sum(y^2) per channel
    )
    out_specs = tuple(pl.BlockSpec((1, th, w_ph, co),
                                   lambda i, r: (i, r, 0, 0))
                      for _ in range(n_phase)) + (
        pl.BlockSpec((1, 1, co), lambda i, r: (i, 0, 0)),
        pl.BlockSpec((1, 1, co), lambda i, r: (i, 0, 0)),
    )
    return pl.pallas_call(
        kernel,
        out_shape=out_shape,
        grid=(n, h_ph // th),
        in_specs=[
            # whole padded image stays resident across the row-tile axis
            pl.BlockSpec((1, hpad, wpad, ci), lambda i, r: (i, 0, 0, 0)),
            pl.BlockSpec((t_tot, ci, co), lambda i, r: (0, 0, 0)),
            pl.BlockSpec((1, 1, co), lambda i, r: (0, 0, 0)),
        ],
        out_specs=out_specs,
        compiler_params=pltpu.CompilerParams(
            dimension_semantics=("parallel", "arbitrary"),
            vmem_limit_bytes=vmem_limit_bytes),
    )(x_pad, w_all, shift)


def _affine_relu(phase_flat, scale_flat, shift_flat, th2, *, relu,
                 vmem_limit_bytes=None):
    n, h_ph, wc = phase_flat[0].shape
    n_phase = len(phase_flat)
    kernel = functools.partial(_affine_relu_kernel, n_phase=n_phase, relu=relu)
    return pl.pallas_call(
        kernel,
        out_shape=tuple(jax.ShapeDtypeStruct((n, h_ph, wc), jnp.float32)
                        for _ in range(n_phase)),
        grid=(n, h_ph // th2),
        in_specs=[pl.BlockSpec((1, wc), lambda i, r: (0, 0)),
                  pl.BlockSpec((1, wc), lambda i, r: (0, 0))] +
                 [pl.BlockSpec((1, th2, wc), lambda i, r: (i, r, 0))
                  for _ in range(n_phase)],
        out_specs=tuple(pl.BlockSpec((1, th2, wc), lambda i, r: (i, r, 0))
                        for _ in range(n_phase)),
        compiler_params=pltpu.CompilerParams(
            dimension_semantics=("parallel", "parallel"),
            vmem_limit_bytes=vmem_limit_bytes),
    )(scale_flat, shift_flat, *phase_flat)


# ---------------------------------------------------------------------------
# public wrapper (matches Deconv2d.forward, training-mode BN, gamma=1/beta=0)
# ---------------------------------------------------------------------------
def deconv2d_forward(x_nchw, w, bias=None, *, stride, padding=0,
                     output_padding=0, relu=True, bn=True, eps=1e-5,
                     mxu_dtype=jnp.float32, vmem_limit_bytes=None):
    """ConvTranspose2d (+ stride-2 crop) -> BatchNorm2d(batch stats) or bias -> ReLU.

    Note: the upstream PyTorch module with bn=None would actually return
    relu(input) due to an x/y mix-up in its forward; here bn=False means the
    intended conv(+bias) -> relu path.  Set mxu_dtype=jnp.bfloat16 on
    v6e/v7x for more MXU/HBM headroom (accumulation stays f32).
    """
    N, Ci, H, W = x_nchw.shape
    Ci_w, Co, K, K2 = w.shape
    assert Ci == Ci_w and K == K2 and stride in (1, 2)
    s, p, op = stride, padding, output_padding

    x = jnp.transpose(x_nchw, (0, 2, 3, 1)).astype(jnp.float32)        # NHWC

    # full ConvTranspose2d extent, with the module's stride-2 crop folded in
    Ho_full = (H - 1) * s - 2 * p + K + op
    Wo_full = (W - 1) * s - 2 * p + K + op
    Ho = min(Ho_full, 2 * H) if s == 2 else Ho_full
    Wo = min(Wo_full, 2 * W) if s == 2 else Wo_full
    assert Ho > 0 and Wo > 0
    # TODO(synk): non-uniform phase extents (odd cropped sizes) unsupported.
    assert Ho % s == 0 and Wo % s == 0, "phase outputs must be uniform"
    H_ph, W_ph = Ho // s, Wo // s

    # ---- phase (sub-pixel) decomposition: output (s*ty+ph) is fed only by
    # taps ky with ky ≡ (ph+p) mod s, reading input row ty + (ph+p-ky)//s ----
    def _taps_1d(phase):
        out = []
        for k in range(K):
            if (phase + p - k) % s == 0:
                out.append((k, (phase + p - k) // s))
        return out                       # list of (kernel index, input offset)

    taps_h = [_taps_1d(ph) for ph in range(s)]
    taps_w = [_taps_1d(pw) for pw in range(s)]
    all_dy = [d for tl in taps_h for (_, d) in tl]
    all_dx = [d for tl in taps_w for (_, d) in tl]
    padT = max(0, -min(all_dy))
    padB = max(0, H_ph - 1 + max(all_dy) - (H - 1))
    padL = max(0, -min(all_dx))
    padR = max(0, W_ph - 1 + max(all_dx) - (W - 1))
    x_pad = jnp.pad(x, ((0, 0), (padT, padB), (padL, padR), (0, 0)))
    x_pad = x_pad.astype(mxu_dtype)
    Wpad = W + padL + padR

    # Pack every (phase, tap) weight matrix into one (T_total, Ci, Co) array
    # and record, per phase, its row index + spatial offsets (static).
    phase_taps = []
    w_mats = []
    for ph in range(s):
        for pw in range(s):
            taps = []
            for (ky, dy) in taps_h[ph]:
                for (kx, dx) in taps_w[pw]:
                    taps.append((len(w_mats), dy + padT, dx + padL))
                    w_mats.append(w[:, :, ky, kx])
            phase_taps.append(tuple(taps))
    phase_taps = tuple(phase_taps)
    w_all = jnp.stack(w_mats, axis=0).astype(mxu_dtype)

    # bn=False path: ConvTranspose2d bias + ReLU fused into the conv kernel.
    if (not bn) and bias is not None:
        shift0 = bias.astype(jnp.float32).reshape(1, 1, Co)
    else:
        shift0 = jnp.zeros((1, 1, Co), jnp.float32)
    fuse_shift = not bn
    fuse_relu = (not bn) and relu

    # row tiles from a small VMEM budget (defaults fit scoped VMEM limits)
    t_max = max((len(t) for t in phase_taps), default=1)
    per_row = 4 * (Wpad * max(Ci, 8) * (t_max + 2)
                   + W_ph * Co * len(phase_taps) * 2)
    th = _pick_row_tile(H_ph, max(8, (6 << 20) // max(per_row, 1)))

    outs = _deconv_phases(x_pad, w_all, shift0, phase_taps, th, H_ph, W_ph,
                          fuse_shift=fuse_shift, fuse_relu=fuse_relu,
                          vmem_limit_bytes=vmem_limit_bytes)
    phase_y = list(outs[:len(phase_taps)])
    ssum, ssq = outs[-2], outs[-1]

    if bn:
        # BN scale/shift from the fused partial sums (tiny glue in XLA).
        cnt = float(N * Ho * Wo)
        tot1 = ssum.sum(axis=(0, 1))                            # (Co,)
        tot2 = ssq.sum(axis=(0, 1))                             # (Co,)
        mean = tot1 / cnt
        var = tot2 / cnt - mean * mean                          # biased, as BN
        scale = jax.lax.rsqrt(var + eps)                        # gamma = 1
        shift = -mean * scale                                   # beta  = 0
        scale_flat = jnp.tile(scale, (W_ph,)).reshape(1, W_ph * Co)
        shift_flat = jnp.tile(shift, (W_ph,)).reshape(1, W_ph * Co)

        th2 = _pick_row_tile(H_ph, max(8, (4 << 20) //
                                       max(16 * W_ph * Co, 1)),
                             need_mult8=True)
        flat_in = [y.reshape(N, H_ph, W_ph * Co) for y in phase_y]
        flat_out = _affine_relu(flat_in, scale_flat, shift_flat, th2,
                                relu=relu, vmem_limit_bytes=vmem_limit_bytes)
        phase_y = [o.reshape(N, H_ph, W_ph, Co) for o in flat_out]
    # (bn=False: bias + ReLU already applied inside the conv kernel)

    # ---- phase interleave + NCHW transpose: one XLA copy fusion under jit ----
    if s == 1:
        y = phase_y[0]
    else:
        rows = []
        for ph in range(s):
            blk = jnp.stack(phase_y[ph * s:(ph + 1) * s], axis=3)
            rows.append(blk.reshape(N, H_ph, Wo, Co))           # W interleave
        y = jnp.stack(rows, axis=2).reshape(N, Ho, Wo, Co)      # H interleave
    return jnp.transpose(y, (0, 3, 1, 2))                       # NCHW out


# ---------------------------------------------------------------------------
# pure-JAX reference (ConvTranspose2d via lhs-dilated conv)
# ---------------------------------------------------------------------------
def _reference(x_nchw, w, *, stride, padding, output_padding, relu, bn,
               bias=None, eps=1e-5):
    Ci, Co, K, _ = w.shape
    w_oihw = jnp.transpose(w[:, :, ::-1, ::-1], (1, 0, 2, 3))
    lo, hi = K - 1 - padding, K - 1 - padding + output_padding
    y = jax.lax.conv_general_dilated(
        x_nchw, w_oihw, window_strides=(1, 1),
        padding=((lo, hi), (lo, hi)),
        lhs_dilation=(stride, stride),
        dimension_numbers=("NCHW", "OIHW", "NCHW"))
    if not bn and bias is not None:
        y = y + bias[None, :, None, None]
    if stride == 2:
        h, wd = x_nchw.shape[2:]
        y = y[:, :, :2 * h, :2 * wd]
    if bn:
        mean = jnp.mean(y, axis=(0, 2, 3), keepdims=True)
        var = jnp.mean((y - mean) ** 2, axis=(0, 2, 3), keepdims=True)
        y = (y - mean) * jax.lax.rsqrt(var + eps)
    if relu:
        y = jnp.maximum(y, 0.0)
    return y


if __name__ == "__main__":
    key = jax.random.PRNGKey(0)
    k1, k2, k3, k4 = jax.random.split(key, 4)

    # Deconv2d(4, 8, 3, stride=2, padding=1, output_padding=1) -- canonical
    # CasMVSNet upsampling usage -- at small shapes.
    N, Ci, H, W = 2, 4, 16, 16
    Co, K, stride, padding, output_padding = 8, 3, 2, 1, 1

    x = jax.random.normal(k1, (N, Ci, H, W), dtype=jnp.float32)
    fan_in, fan_out = Co * K * K, Ci * K * K                    # xavier_uniform_
    bound = (6.0 / (fan_in + fan_out)) ** 0.5
    w = jax.random.uniform(k2, (Ci, Co, K, K), minval=-bound, maxval=bound,
                           dtype=jnp.float32)

    # --- config 1: stride-2, BN + ReLU ---
    fwd = jax.jit(functools.partial(deconv2d_forward, stride=stride,
                                    padding=padding,
                                    output_padding=output_padding,
                                    relu=True, bn=True))
    out = jax.block_until_ready(fwd(x, w))
    ref = _reference(x, w, stride=stride, padding=padding,
                     output_padding=output_padding, relu=True, bn=True)
    assert out.shape == (N, Co, 2 * H, 2 * W), out.shape
    assert jnp.allclose(out, ref, rtol=1e-4, atol=1e-4), float(
        jnp.max(jnp.abs(out - ref)))

    # --- config 2: stride-1, BN + ReLU ---
    x2 = jax.random.normal(k3, (N, Ci, H, W), dtype=jnp.float32)
    fwd_s1 = jax.jit(functools.partial(deconv2d_forward, stride=1, padding=1,
                                       output_padding=0, relu=True, bn=True))
    out2 = jax.block_until_ready(fwd_s1(x2, w))
    ref2 = _reference(x2, w, stride=1, padding=1, output_padding=0,
                      relu=True, bn=True)
    assert out2.shape == (N, Co, H, W), out2.shape
    assert jnp.allclose(out2, ref2, rtol=1e-4, atol=1e-4), float(
        jnp.max(jnp.abs(out2 - ref2)))

    # --- config 3: bn=False path (ConvTranspose2d bias + ReLU, fused) ---
    b = jax.random.normal(k4, (Co,), dtype=jnp.float32) * 0.1
    fwd_b = jax.jit(functools.partial(deconv2d_forward, stride=stride,
                                      padding=padding,
                                      output_padding=output_padding,
                                      relu=True, bn=False))
    out3 = jax.block_until_ready(fwd_b(x, w, b))
    ref3 = _reference(x, w, stride=stride, padding=padding,
                      output_padding=output_padding, relu=True, bn=False,
                      bias=b)
    assert jnp.allclose(out3, ref3, rtol=1e-4, atol=1e-4), float(
        jnp.max(jnp.abs(out3 - ref3)))

    print("KERNEL_OK")
</pallas_src>

<mosaic_0001>
module attributes {stable_mosaic.version = 11 : i64} {
  func.func @_deconv_phases_kernel(%arg0: i32, %arg1: i32, %arg2: memref<1x17x17x4xf32, #tpu.memory_space<vmem>>, %arg3: memref<9x4x8xf32, #tpu.memory_space<vmem>>, %arg4: memref<1x1x8xf32, #tpu.memory_space<vmem>>, %arg5: memref<1x16x16x8xf32, #tpu.memory_space<vmem>>, %arg6: memref<1x16x16x8xf32, #tpu.memory_space<vmem>>, %arg7: memref<1x16x16x8xf32, #tpu.memory_space<vmem>>, %arg8: memref<1x16x16x8xf32, #tpu.memory_space<vmem>>, %arg9: memref<1x1x8xf32, #tpu.memory_space<vmem>>, %arg10: memref<1x1x8xf32, #tpu.memory_space<vmem>>) attributes {dimension_semantics = [#tpu.dimension_semantics<parallel>, #tpu.dimension_semantics<arbitrary>], iteration_bounds = array<i64: 2, 1>, scalar_prefetch = 0 : i64, scratch_operands = 0 : i64, tpu.core_type = #tpu.core_type<tc>, window_params = [{transform_indices = @transform_0, window_bounds = array<i64: 1, 17, 17, 4>}, {pipeline_mode = #tpu.pipeline_mode<synchronous>, transform_indices = @transform_1, window_bounds = array<i64: 9, 4, 8>}, {pipeline_mode = #tpu.pipeline_mode<synchronous>, transform_indices = @transform_2, window_bounds = array<i64: 1, 1, 8>}, {transform_indices = @transform_3, window_bounds = array<i64: 1, 16, 16, 8>}, {transform_indices = @transform_4, window_bounds = array<i64: 1, 16, 16, 8>}, {transform_indices = @transform_5, window_bounds = array<i64: 1, 16, 16, 8>}, {transform_indices = @transform_6, window_bounds = array<i64: 1, 16, 16, 8>}, {transform_indices = @transform_7, window_bounds = array<i64: 1, 1, 8>}, {transform_indices = @transform_8, window_bounds = array<i64: 1, 1, 8>}]} {
    %c16_i32 = arith.constant 16 : i32
    %0 = arith.muli %arg1, %c16_i32 : i32
    %c0 = arith.constant 0 : index
    %1 = arith.index_cast %0 : i32 to index
    %c0_0 = arith.constant 0 : index
    %c0_1 = arith.constant 0 : index
    %2 = vector.load %arg2[%c0, %1, %c0_0, %c0_1] : memref<1x17x17x4xf32, #tpu.memory_space<vmem>>, vector<1x17x17x4xf32>
    %3 = vector.shape_cast %2 : vector<1x17x17x4xf32> to vector<17x17x4xf32>
    %cst = arith.constant 0.000000e+00 : f32
    %4 = vector.broadcast %cst : f32 to vector<1x8xf32>
    %cst_2 = arith.constant 0.000000e+00 : f32
    %5 = vector.broadcast %cst_2 : f32 to vector<1x8xf32>
    %6 = vector.extract_strided_slice %3 {offsets = [0, 0, 0], sizes = [16, 16, 4], strides = [1, 1, 1]} : vector<17x17x4xf32> to vector<16x16x4xf32>
    %7 = vector.shape_cast %6 : vector<16x16x4xf32> to vector<256x4xf32>
    %c0_3 = arith.constant 0 : index
    %c0_4 = arith.constant 0 : index
    %c0_5 = arith.constant 0 : index
    %8 = vector.load %arg3[%c0_3, %c0_4, %c0_5] : memref<9x4x8xf32, #tpu.memory_space<vmem>>, vector<1x4x8xf32>
    %9 = vector.shape_cast %8 : vector<1x4x8xf32> to vector<4x8xf32>
    %cst_6 = arith.constant dense<0.000000e+00> : vector<256x8xf32>
    %10 = tpu.matmul %7, %9, %cst_6 {dimension_numbers = #tpu.dot_dimension_numbers<[1], [0], [0], [1], [0, 0, 1, 1], [], []>} : vector<256x4xf32>, vector<4x8xf32>, vector<256x8xf32> -> vector<256x8xf32>
    %cst_7 = arith.constant dense<0.000000e+00> : vector<8xf32>
    %11 = vector.multi_reduction <add>, %10, %cst_7 [0] : vector<256x8xf32> to vector<8xf32>
    %12 = vector.shape_cast %11 : vector<8xf32> to vector<1x8xf32>
    %13 = arith.addf %4, %12 : vector<1x8xf32>
    %14 = arith.mulf %10, %10 : vector<256x8xf32>
    %cst_8 = arith.constant dense<0.000000e+00> : vector<8xf32>
    %15 = vector.multi_reduction <add>, %14, %cst_8 [0] : vector<256x8xf32> to vector<8xf32>
    %16 = vector.shape_cast %15 : vector<8xf32> to vector<1x8xf32>
    %17 = arith.addf %5, %16 : vector<1x8xf32>
    %18 = vector.shape_cast %10 : vector<256x8xf32> to vector<16x16x8xf32>
    %c0_9 = arith.constant 0 : index
    %c0_10 = arith.constant 0 : index
    %c0_11 = arith.constant 0 : index
    %c0_12 = arith.constant 0 : index
    %19 = vector.load %arg5[%c0_9, %c0_10, %c0_11, %c0_12] : memref<1x16x16x8xf32, #tpu.memory_space<vmem>>, vector<1x16x16x8xf32>
    %20 = vector.shape_cast %19 : vector<1x16x16x8xf32> to vector<16x16x8xf32>
    %21 = vector.shape_cast %18 : vector<16x16x8xf32> to vector<1x16x16x8xf32>
    tpu.vector_store %arg5[%c0_9, %c0_10, %c0_11, %c0_12], %21 {strides = array<i32>} : memref<1x16x16x8xf32, #tpu.memory_space<vmem>>, vector<1x16x16x8xf32>,
    %22 = vector.extract_strided_slice %3 {offsets = [0, 1, 0], sizes = [16, 16, 4], strides = [1, 1, 1]} : vector<17x17x4xf32> to vector<16x16x4xf32>
    %23 = vector.shape_cast %22 : vector<16x16x4xf32> to vector<256x4xf32>
    %c1 = arith.constant 1 : index
    %c0_13 = arith.constant 0 : index
    %c0_14 = arith.constant 0 : index
    %24 = vector.load %arg3[%c1, %c0_13, %c0_14] : memref<9x4x8xf32, #tpu.memory_space<vmem>>, vector<1x4x8xf32>
    %25 = vector.shape_cast %24 : vector<1x4x8xf32> to vector<4x8xf32>
    %cst_15 = arith.constant dense<0.000000e+00> : vector<256x8xf32>
    %26 = tpu.matmul %23, %25, %cst_15 {dimension_numbers = #tpu.dot_dimension_numbers<[1], [0], [0], [1], [0, 0, 1, 1], [], []>} : vector<256x4xf32>, vector<4x8xf32>, vector<256x8xf32> -> vector<256x8xf32>
    %27 = vector.extract_strided_slice %3 {offsets = [0, 0, 0], sizes = [16, 16, 4], strides = [1, 1, 1]} : vector<17x17x4xf32> to vector<16x16x4xf32>
    %28 = vector.shape_cast %27 : vector<16x16x4xf32> to vector<256x4xf32>
    %c2 = arith.constant 2 : index
    %c0_16 = arith.constant 0 : index
    %c0_17 = arith.constant 0 : index
    %29 = vector.load %arg3[%c2, %c0_16, %c0_17] : memref<9x4x8xf32, #tpu.memory_space<vmem>>, vector<1x4x8xf32>
    %30 = vector.shape_cast %29 : vector<1x4x8xf32> to vector<4x8xf32>
    %cst_18 = arith.constant dense<0.000000e+00> : vector<256x8xf32>
    %31 = tpu.matmul %28, %30, %cst_18 {dimension_numbers = #tpu.dot_dimension_numbers<[1], [0], [0], [1], [0, 0, 1, 1], [], []>} : vector<256x4xf32>, vector<4x8xf32>, vector<256x8xf32> -> vector<256x8xf32>
    %32 = arith.addf %26, %31 : vector<256x8xf32>
    %cst_19 = arith.constant dense<0.000000e+00> : vector<8xf32>
    %33 = vector.multi_reduction <add>, %32, %cst_19 [0] : vector<256x8xf32> to vector<8xf32>
    %34 = vector.shape_cast %33 : vector<8xf32> to vector<1x8xf32>
    %35 = arith.addf %13, %34 : vector<1x8xf32>
    %36 = arith.mulf %32, %32 : vector<256x8xf32>
    %cst_20 = arith.constant dense<0.000000e+00> : vector<8xf32>
    %37 = vector.multi_reduction <add>, %36, %cst_20 [0] : vector<256x8xf32> to vector<8xf32>
    %38 = vector.shape_cast %37 : vector<8xf32> to vector<1x8xf32>
    %39 = arith.addf %17, %38 : vector<1x8xf32>
    %40 = vector.shape_cast %32 : vector<256x8xf32> to vector<16x16x8xf32>
    %c0_21 = arith.constant 0 : index
    %c0_22 = arith.constant 0 : index
    %c0_23 = arith.constant 0 : index
    %c0_24 = arith.constant 0 : index
    %41 = vector.load %arg6[%c0_21, %c0_22, %c0_23, %c0_24] : memref<1x16x16x8xf32, #tpu.memory_space<vmem>>, vector<1x16x16x8xf32>
    %42 = vector.shape_cast %41 : vector<1x16x16x8xf32> to vector<16x16x8xf32>
    %43 = vector.shape_cast %40 : vector<16x16x8xf32> to vector<1x16x16x8xf32>
    tpu.vector_store %arg6[%c0_21, %c0_22, %c0_23, %c0_24], %43 {strides = array<i32>} : memref<1x16x16x8xf32, #tpu.memory_space<vmem>>, vector<1x16x16x8xf32>,
    %44 = vector.extract_strided_slice %3 {offsets = [1, 0, 0], sizes = [16, 16, 4], strides = [1, 1, 1]} : vector<17x17x4xf32> to vector<16x16x4xf32>
    %45 = vector.shape_cast %44 : vector<16x16x4xf32> to vector<256x4xf32>
    %c3 = arith.constant 3 : index
    %c0_25 = arith.constant 0 : index
    %c0_26 = arith.constant 0 : index
    %46 = vector.load %arg3[%c3, %c0_25, %c0_26] : memref<9x4x8xf32, #tpu.memory_space<vmem>>, vector<1x4x8xf32>
    %47 = vector.shape_cast %46 : vector<1x4x8xf32> to vector<4x8xf32>
    %cst_27 = arith.constant dense<0.000000e+00> : vector<256x8xf32>
    %48 = tpu.matmul %45, %47, %cst_27 {dimension_numbers = #tpu.dot_dimension_numbers<[1], [0], [0], [1], [0, 0, 1, 1], [], []>} : vector<256x4xf32>, vector<4x8xf32>, vector<256x8xf32> -> vector<256x8xf32>
    %49 = vector.extract_strided_slice %3 {offsets = [0, 0, 0], sizes = [16, 16, 4], strides = [1, 1, 1]} : vector<17x17x4xf32> to vector<16x16x4xf32>
    %50 = vector.shape_cast %49 : vector<16x16x4xf32> to vector<256x4xf32>
    %c4 = arith.constant 4 : index
    %c0_28 = arith.constant 0 : index
    %c0_29 = arith.constant 0 : index
    %51 = vector.load %arg3[%c4, %c0_28, %c0_29] : memref<9x4x8xf32, #tpu.memory_space<vmem>>, vector<1x4x8xf32>
    %52 = vector.shape_cast %51 : vector<1x4x8xf32> to vector<4x8xf32>
    %cst_30 = arith.constant dense<0.000000e+00> : vector<256x8xf32>
    %53 = tpu.matmul %50, %52, %cst_30 {dimension_numbers = #tpu.dot_dimension_numbers<[1], [0], [0], [1], [0, 0, 1, 1], [], []>} : vector<256x4xf32>, vector<4x8xf32>, vector<256x8xf32> -> vector<256x8xf32>
    %54 = arith.addf %48, %53 : vector<256x8xf32>
    %cst_31 = arith.constant dense<0.000000e+00> : vector<8xf32>
    %55 = vector.multi_reduction <add>, %54, %cst_31 [0] : vector<256x8xf32> to vector<8xf32>
    %56 = vector.shape_cast %55 : vector<8xf32> to vector<1x8xf32>
    %57 = arith.addf %35, %56 : vector<1x8xf32>
    %58 = arith.mulf %54, %54 : vector<256x8xf32>
    %cst_32 = arith.constant dense<0.000000e+00> : vector<8xf32>
    %59 = vector.multi_reduction <add>, %58, %cst_32 [0] : vector<256x8xf32> to vector<8xf32>
    %60 = vector.shape_cast %59 : vector<8xf32> to vector<1x8xf32>
    %61 = arith.addf %39, %60 : vector<1x8xf32>
    %62 = vector.shape_cast %54 : vector<256x8xf32> to vector<16x16x8xf32>
    %c0_33 = arith.constant 0 : index
    %c0_34 = arith.constant 0 : index
    %c0_35 = arith.constant 0 : index
    %c0_36 = arith.constant 0 : index
    %63 = vector.load %arg7[%c0_33, %c0_34, %c0_35, %c0_36] : memref<1x16x16x8xf32, #tpu.memory_space<vmem>>, vector<1x16x16x8xf32>
    %64 = vector.shape_cast %63 : vector<1x16x16x8xf32> to vector<16x16x8xf32>
    %65 = vector.shape_cast %62 : vector<16x16x8xf32> to vector<1x16x16x8xf32>
    tpu.vector_store %arg7[%c0_33, %c0_34, %c0_35, %c0_36], %65 {strides = array<i32>} : memref<1x16x16x8xf32, #tpu.memory_space<vmem>>, vector<1x16x16x8xf32>,
    %66 = vector.extract_strided_slice %3 {offsets = [1, 1, 0], sizes = [16, 16, 4], strides = [1, 1, 1]} : vector<17x17x4xf32> to vector<16x16x4xf32>
    %67 = vector.shape_cast %66 : vector<16x16x4xf32> to vector<256x4xf32>
    %c5 = arith.constant 5 : index
    %c0_37 = arith.constant 0 : index
    %c0_38 = arith.constant 0 : index
    %68 = vector.load %arg3[%c5, %c0_37, %c0_38] : memref<9x4x8xf32, #tpu.memory_space<vmem>>, vector<1x4x8xf32>
    %69 = vector.shape_cast %68 : vector<1x4x8xf32> to vector<4x8xf32>
    %cst_39 = arith.constant dense<0.000000e+00> : vector<256x8xf32>
    %70 = tpu.matmul %67, %69, %cst_39 {dimension_numbers = #tpu.dot_dimension_numbers<[1], [0], [0], [1], [0, 0, 1, 1], [], []>} : vector<256x4xf32>, vector<4x8xf32>, vector<256x8xf32> -> vector<256x8xf32>
    %71 = vector.extract_strided_slice %3 {offsets = [1, 0, 0], sizes = [16, 16, 4], strides = [1, 1, 1]} : vector<17x17x4xf32> to vector<16x16x4xf32>
    %72 = vector.shape_cast %71 : vector<16x16x4xf32> to vector<256x4xf32>
    %c6 = arith.constant 6 : index
    %c0_40 = arith.constant 0 : index
    %c0_41 = arith.constant 0 : index
    %73 = vector.load %arg3[%c6, %c0_40, %c0_41] : memref<9x4x8xf32, #tpu.memory_space<vmem>>, vector<1x4x8xf32>
    %74 = vector.shape_cast %73 : vector<1x4x8xf32> to vector<4x8xf32>
    %cst_42 = arith.constant dense<0.000000e+00> : vector<256x8xf32>
    %75 = tpu.matmul %72, %74, %cst_42 {dimension_numbers = #tpu.dot_dimension_numbers<[1], [0], [0], [1], [0, 0, 1, 1], [], []>} : vector<256x4xf32>, vector<4x8xf32>, vector<256x8xf32> -> vector<256x8xf32>
    %76 = arith.addf %70, %75 : vector<256x8xf32>
    %77 = vector.extract_strided_slice %3 {offsets = [0, 1, 0], sizes = [16, 16, 4], strides = [1, 1, 1]} : vector<17x17x4xf32> to vector<16x16x4xf32>
    %78 = vector.shape_cast %77 : vector<16x16x4xf32> to vector<256x4xf32>
    %c7 = arith.constant 7 : index
    %c0_43 = arith.constant 0 : index
    %c0_44 = arith.constant 0 : index
    %79 = vector.load %arg3[%c7, %c0_43, %c0_44] : memref<9x4x8xf32, #tpu.memory_space<vmem>>, vector<1x4x8xf32>
    %80 = vector.shape_cast %79 : vector<1x4x8xf32> to vector<4x8xf32>
    %cst_45 = arith.constant dense<0.000000e+00> : vector<256x8xf32>
    %81 = tpu.matmul %78, %80, %cst_45 {dimension_numbers = #tpu.dot_dimension_numbers<[1], [0], [0], [1], [0, 0, 1, 1], [], []>} : vector<256x4xf32>, vector<4x8xf32>, vector<256x8xf32> -> vector<256x8xf32>
    %82 = arith.addf %76, %81 : vector<256x8xf32>
    %83 = vector.extract_strided_slice %3 {offsets = [0, 0, 0], sizes = [16, 16, 4], strides = [1, 1, 1]} : vector<17x17x4xf32> to vector<16x16x4xf32>
    %84 = vector.shape_cast %83 : vector<16x16x4xf32> to vector<256x4xf32>
    %c8 = arith.constant 8 : index
    %c0_46 = arith.constant 0 : index
    %c0_47 = arith.constant 0 : index
    %85 = vector.load %arg3[%c8, %c0_46, %c0_47] : memref<9x4x8xf32, #tpu.memory_space<vmem>>, vector<1x4x8xf32>
    %86 = vector.shape_cast %85 : vector<1x4x8xf32> to vector<4x8xf32>
    %cst_48 = arith.constant dense<0.000000e+00> : vector<256x8xf32>
    %87 = tpu.matmul %84, %86, %cst_48 {dimension_numbers = #tpu.dot_dimension_numbers<[1], [0], [0], [1], [0, 0, 1, 1], [], []>} : vector<256x4xf32>, vector<4x8xf32>, vector<256x8xf32> -> vector<256x8xf32>
    %88 = arith.addf %82, %87 : vector<256x8xf32>
    %cst_49 = arith.constant dense<0.000000e+00> : vector<8xf32>
    %89 = vector.multi_reduction <add>, %88, %cst_49 [0] : vector<256x8xf32> to vector<8xf32>
    %90 = vector.shape_cast %89 : vector<8xf32> to vector<1x8xf32>
    %91 = arith.addf %57, %90 : vector<1x8xf32>
    %92 = arith.mulf %88, %88 : vector<256x8xf32>
    %cst_50 = arith.constant dense<0.000000e+00> : vector<8xf32>
    %93 = vector.multi_reduction <add>, %92, %cst_50 [0] : vector<256x8xf32> to vector<8xf32>
    %94 = vector.shape_cast %93 : vector<8xf32> to vector<1x8xf32>
    %95 = arith.addf %61, %94 : vector<1x8xf32>
    %96 = vector.shape_cast %88 : vector<256x8xf32> to vector<16x16x8xf32>
    %c0_51 = arith.constant 0 : index
    %c0_52 = arith.constant 0 : index
    %c0_53 = arith.constant 0 : index
    %c0_54 = arith.constant 0 : index
    %97 = vector.load %arg8[%c0_51, %c0_52, %c0_53, %c0_54] : memref<1x16x16x8xf32, #tpu.memory_space<vmem>>, vector<1x16x16x8xf32>
    %98 = vector.shape_cast %97 : vector<1x16x16x8xf32> to vector<16x16x8xf32>
    %99 = vector.shape_cast %96 : vector<16x16x8xf32> to vector<1x16x16x8xf32>
    tpu.vector_store %arg8[%c0_51, %c0_52, %c0_53, %c0_54], %99 {strides = array<i32>} : memref<1x16x16x8xf32, #tpu.memory_space<vmem>>, vector<1x16x16x8xf32>,
    %c0_i32 = arith.constant 0 : i32
    %100 = arith.cmpi eq, %arg1, %c0_i32 : i32
    %101 = arith.extui %100 : i1 to i32
    %c0_i32_55 = arith.constant 0 : i32
    %102 = arith.cmpi ne, %101, %c0_i32_55 : i32
    scf.if %102 {
      %c0_58 = arith.constant 0 : index
      %c0_59 = arith.constant 0 : index
      %c0_60 = arith.constant 0 : index
      %106 = vector.load %arg9[%c0_58, %c0_59, %c0_60] : memref<1x1x8xf32, #tpu.memory_space<vmem>>, vector<1x1x8xf32>
      %107 = vector.shape_cast %106 : vector<1x1x8xf32> to vector<1x8xf32>
      %108 = vector.shape_cast %91 : vector<1x8xf32> to vector<1x1x8xf32>
      tpu.vector_store %arg9[%c0_58, %c0_59, %c0_60], %108 {strides = array<i32>} : memref<1x1x8xf32, #tpu.memory_space<vmem>>, vector<1x1x8xf32>,
      %c0_61 = arith.constant 0 : index
      %c0_62 = arith.constant 0 : index
      %c0_63 = arith.constant 0 : index
      %109 = vector.load %arg10[%c0_61, %c0_62, %c0_63] : memref<1x1x8xf32, #tpu.memory_space<vmem>>, vector<1x1x8xf32>
      %110 = vector.shape_cast %109 : vector<1x1x8xf32> to vector<1x8xf32>
      %111 = vector.shape_cast %95 : vector<1x8xf32> to vector<1x1x8xf32>
      tpu.vector_store %arg10[%c0_61, %c0_62, %c0_63], %111 {strides = array<i32>} : memref<1x1x8xf32, #tpu.memory_space<vmem>>, vector<1x1x8xf32>,
    } else {
    }
    %c0_i32_56 = arith.constant 0 : i32
    %103 = arith.cmpi ne, %arg1, %c0_i32_56 : i32
    %104 = arith.extui %103 : i1 to i32
    %c0_i32_57 = arith.constant 0 : i32
    %105 = arith.cmpi ne, %104, %c0_i32_57 : i32
    scf.if %105 {
      %c0_58 = arith.constant 0 : index
      %c0_59 = arith.constant 0 : index
      %c0_60 = arith.constant 0 : index
      %106 = vector.load %arg9[%c0_58, %c0_59, %c0_60] : memref<1x1x8xf32, #tpu.memory_space<vmem>>, vector<1x1x8xf32>
      %107 = vector.shape_cast %106 : vector<1x1x8xf32> to vector<1x8xf32>
      %108 = arith.addf %107, %91 : vector<1x8xf32>
      %c0_61 = arith.constant 0 : index
      %c0_62 = arith.constant 0 : index
      %c0_63 = arith.constant 0 : index
      %109 = vector.load %arg9[%c0_61, %c0_62, %c0_63] : memref<1x1x8xf32, #tpu.memory_space<vmem>>, vector<1x1x8xf32>
      %110 = vector.shape_cast %109 : vector<1x1x8xf32> to vector<1x8xf32>
      %111 = vector.shape_cast %108 : vector<1x8xf32> to vector<1x1x8xf32>
      tpu.vector_store %arg9[%c0_61, %c0_62, %c0_63], %111 {strides = array<i32>} : memref<1x1x8xf32, #tpu.memory_space<vmem>>, vector<1x1x8xf32>,
      %c0_64 = arith.constant 0 : index
      %c0_65 = arith.constant 0 : index
      %c0_66 = arith.constant 0 : index
      %112 = vector.load %arg10[%c0_64, %c0_65, %c0_66] : memref<1x1x8xf32, #tpu.memory_space<vmem>>, vector<1x1x8xf32>
      %113 = vector.shape_cast %112 : vector<1x1x8xf32> to vector<1x8xf32>
      %114 = arith.addf %113, %95 : vector<1x8xf32>
      %c0_67 = arith.constant 0 : index
      %c0_68 = arith.constant 0 : index
      %c0_69 = arith.constant 0 : index
      %115 = vector.load %arg10[%c0_67, %c0_68, %c0_69] : memref<1x1x8xf32, #tpu.memory_space<vmem>>, vector<1x1x8xf32>
      %116 = vector.shape_cast %115 : vector<1x1x8xf32> to vector<1x8xf32>
      %117 = vector.shape_cast %114 : vector<1x8xf32> to vector<1x1x8xf32>
      tpu.vector_store %arg10[%c0_67, %c0_68, %c0_69], %117 {strides = array<i32>} : memref<1x1x8xf32, #tpu.memory_space<vmem>>, vector<1x1x8xf32>,
    } else {
    }
    return
  }
  func.func @transform_0(%arg0: i32, %arg1: i32) -> (i32, i32, i32, i32) {
    %c0_i32 = arith.constant 0 : i32
    %c0_i32_0 = arith.constant 0 : i32
    %c0_i32_1 = arith.constant 0 : i32
    %c0_i32_2 = arith.constant 0 : i32
    return %arg0, %c0_i32, %c0_i32_0, %c0_i32_1 : i32, i32, i32, i32
  }
  func.func @transform_1(%arg0: i32, %arg1: i32) -> (i32, i32, i32) {
    %c0_i32 = arith.constant 0 : i32
    %c0_i32_0 = arith.constant 0 : i32
    %c0_i32_1 = arith.constant 0 : i32
    %c0_i32_2 = arith.constant 0 : i32
    return %c0_i32, %c0_i32_0, %c0_i32_1 : i32, i32, i32
  }
  func.func @transform_2(%arg0: i32, %arg1: i32) -> (i32, i32, i32) {
    %c0_i32 = arith.constant 0 : i32
    %c0_i32_0 = arith.constant 0 : i32
    %c0_i32_1 = arith.constant 0 : i32
    %c0_i32_2 = arith.constant 0 : i32
    return %c0_i32, %c0_i32_0, %c0_i32_1 : i32, i32, i32
  }
  func.func @transform_3(%arg0: i32, %arg1: i32) -> (i32, i32, i32, i32) {
    %c0_i32 = arith.constant 0 : i32
    %c0_i32_0 = arith.constant 0 : i32
    %c0_i32_1 = arith.constant 0 : i32
    return %arg0, %arg1, %c0_i32, %c0_i32_0 : i32, i32, i32, i32
  }
  func.func @transform_4(%arg0: i32, %arg1: i32) -> (i32, i32, i32, i32) {
    %c0_i32 = arith.constant 0 : i32
    %c0_i32_0 = arith.constant 0 : i32
    %c0_i32_1 = arith.constant 0 : i32
    return %arg0, %arg1, %c0_i32, %c0_i32_0 : i32, i32, i32, i32
  }
  func.func @transform_5(%arg0: i32, %arg1: i32) -> (i32, i32, i32, i32) {
    %c0_i32 = arith.constant 0 : i32
    %c0_i32_0 = arith.constant 0 : i32
    %c0_i32_1 = arith.constant 0 : i32
    return %arg0, %arg1, %c0_i32, %c0_i32_0 : i32, i32, i32, i32
  }
  func.func @transform_6(%arg0: i32, %arg1: i32) -> (i32, i32, i32, i32) {
    %c0_i32 = arith.constant 0 : i32
    %c0_i32_0 = arith.constant 0 : i32
    %c0_i32_1 = arith.constant 0 : i32
    return %arg0, %arg1, %c0_i32, %c0_i32_0 : i32, i32, i32, i32
  }
  func.func @transform_7(%arg0: i32, %arg1: i32) -> (i32, i32, i32) {
    %c0_i32 = arith.constant 0 : i32
    %c0_i32_0 = arith.constant 0 : i32
    %c0_i32_1 = arith.constant 0 : i32
    return %arg0, %c0_i32, %c0_i32_0 : i32, i32, i32
  }
  func.func @transform_8(%arg0: i32, %arg1: i32) -> (i32, i32, i32) {
    %c0_i32 = arith.constant 0 : i32
    %c0_i32_0 = arith.constant 0 : i32
    %c0_i32_1 = arith.constant 0 : i32
    return %arg0, %c0_i32, %c0_i32_0 : i32, i32, i32
  }
}

module attributes {stable_mosaic.version = 11 : i64} {
  func.func @_affine_relu_kernel(%arg0: i32, %arg1: i32, %arg2: memref<1x128xf32, #tpu.memory_space<vmem>>, %arg3: memref<1x128xf32, #tpu.memory_space<vmem>>, %arg4: memref<1x16x128xf32, #tpu.memory_space<vmem>>, %arg5: memref<1x16x128xf32, #tpu.memory_space<vmem>>, %arg6: memref<1x16x128xf32, #tpu.memory_space<vmem>>, %arg7: memref<1x16x128xf32, #tpu.memory_space<vmem>>, %arg8: memref<1x16x128xf32, #tpu.memory_space<vmem>>, %arg9: memref<1x16x128xf32, #tpu.memory_space<vmem>>, %arg10: memref<1x16x128xf32, #tpu.memory_space<vmem>>, %arg11: memref<1x16x128xf32, #tpu.memory_space<vmem>>) attributes {dimension_semantics = [#tpu.dimension_semantics<parallel>, #tpu.dimension_semantics<parallel>], iteration_bounds = array<i64: 2, 1>, scalar_prefetch = 0 : i64, scratch_operands = 0 : i64, tpu.core_type = #tpu.core_type<tc>, window_params = [{pipeline_mode = #tpu.pipeline_mode<synchronous>, transform_indices = @transform_0, window_bounds = array<i64: 1, 128>}, {pipeline_mode = #tpu.pipeline_mode<synchronous>, transform_indices = @transform_1, window_bounds = array<i64: 1, 128>}, {transform_indices = @transform_2, window_bounds = array<i64: 1, 16, 128>}, {transform_indices = @transform_3, window_bounds = array<i64: 1, 16, 128>}, {transform_indices = @transform_4, window_bounds = array<i64: 1, 16, 128>}, {transform_indices = @transform_5, window_bounds = array<i64: 1, 16, 128>}, {transform_indices = @transform_6, window_bounds = array<i64: 1, 16, 128>}, {transform_indices = @transform_7, window_bounds = array<i64: 1, 16, 128>}, {transform_indices = @transform_8, window_bounds = array<i64: 1, 16, 128>}, {transform_indices = @transform_9, window_bounds = array<i64: 1, 16, 128>}]} {
    %c0 = arith.constant 0 : index
    %c0_0 = arith.constant 0 : index
    %0 = vector.load %arg2[%c0, %c0_0] : memref<1x128xf32, #tpu.memory_space<vmem>>, vector<1x128xf32>
    %c0_1 = arith.constant 0 : index
    %c0_2 = arith.constant 0 : index
    %1 = vector.load %arg3[%c0_1, %c0_2] : memref<1x128xf32, #tpu.memory_space<vmem>>, vector<1x128xf32>
    %c0_3 = arith.constant 0 : index
    %c0_4 = arith.constant 0 : index
    %c0_5 = arith.constant 0 : index
    %2 = vector.load %arg4[%c0_3, %c0_4, %c0_5] : memref<1x16x128xf32, #tpu.memory_space<vmem>>, vector<1x16x128xf32>
    %3 = vector.shape_cast %2 : vector<1x16x128xf32> to vector<16x128xf32>
    %4 = vector.broadcast %0 : vector<1x128xf32> to vector<16x128xf32>
    %5 = arith.mulf %3, %4 : vector<16x128xf32>
    %6 = vector.broadcast %1 : vector<1x128xf32> to vector<16x128xf32>
    %7 = arith.addf %5, %6 : vector<16x128xf32>
    %cst = arith.constant 0.000000e+00 : f32
    %8 = vector.broadcast %cst : f32 to vector<16x128xf32>
    %9 = arith.maximumf %7, %8 : vector<16x128xf32>
    %c0_6 = arith.constant 0 : index
    %c0_7 = arith.constant 0 : index
    %c0_8 = arith.constant 0 : index
    %10 = vector.load %arg8[%c0_6, %c0_7, %c0_8] : memref<1x16x128xf32, #tpu.memory_space<vmem>>, vector<1x16x128xf32>
    %11 = vector.shape_cast %10 : vector<1x16x128xf32> to vector<16x128xf32>
    %12 = vector.shape_cast %9 : vector<16x128xf32> to vector<1x16x128xf32>
    tpu.vector_store %arg8[%c0_6, %c0_7, %c0_8], %12 {strides = array<i32>} : memref<1x16x128xf32, #tpu.memory_space<vmem>>, vector<1x16x128xf32>,
    %c0_9 = arith.constant 0 : index
    %c0_10 = arith.constant 0 : index
    %c0_11 = arith.constant 0 : index
    %13 = vector.load %arg5[%c0_9, %c0_10, %c0_11] : memref<1x16x128xf32, #tpu.memory_space<vmem>>, vector<1x16x128xf32>
    %14 = vector.shape_cast %13 : vector<1x16x128xf32> to vector<16x128xf32>
    %15 = vector.broadcast %0 : vector<1x128xf32> to vector<16x128xf32>
    %16 = arith.mulf %14, %15 : vector<16x128xf32>
    %17 = vector.broadcast %1 : vector<1x128xf32> to vector<16x128xf32>
    %18 = arith.addf %16, %17 : vector<16x128xf32>
    %cst_12 = arith.constant 0.000000e+00 : f32
    %19 = vector.broadcast %cst_12 : f32 to vector<16x128xf32>
    %20 = arith.maximumf %18, %19 : vector<16x128xf32>
    %c0_13 = arith.constant 0 : index
    %c0_14 = arith.constant 0 : index
    %c0_15 = arith.constant 0 : index
    %21 = vector.load %arg9[%c0_13, %c0_14, %c0_15] : memref<1x16x128xf32, #tpu.memory_space<vmem>>, vector<1x16x128xf32>
    %22 = vector.shape_cast %21 : vector<1x16x128xf32> to vector<16x128xf32>
    %23 = vector.shape_cast %20 : vector<16x128xf32> to vector<1x16x128xf32>
    tpu.vector_store %arg9[%c0_13, %c0_14, %c0_15], %23 {strides = array<i32>} : memref<1x16x128xf32, #tpu.memory_space<vmem>>, vector<1x16x128xf32>,
    %c0_16 = arith.constant 0 : index
    %c0_17 = arith.constant 0 : index
    %c0_18 = arith.constant 0 : index
    %24 = vector.load %arg6[%c0_16, %c0_17, %c0_18] : memref<1x16x128xf32, #tpu.memory_space<vmem>>, vector<1x16x128xf32>
    %25 = vector.shape_cast %24 : vector<1x16x128xf32> to vector<16x128xf32>
    %26 = vector.broadcast %0 : vector<1x128xf32> to vector<16x128xf32>
    %27 = arith.mulf %25, %26 : vector<16x128xf32>
    %28 = vector.broadcast %1 : vector<1x128xf32> to vector<16x128xf32>
    %29 = arith.addf %27, %28 : vector<16x128xf32>
    %cst_19 = arith.constant 0.000000e+00 : f32
    %30 = vector.broadcast %cst_19 : f32 to vector<16x128xf32>
    %31 = arith.maximumf %29, %30 : vector<16x128xf32>
    %c0_20 = arith.constant 0 : index
    %c0_21 = arith.constant 0 : index
    %c0_22 = arith.constant 0 : index
    %32 = vector.load %arg10[%c0_20, %c0_21, %c0_22] : memref<1x16x128xf32, #tpu.memory_space<vmem>>, vector<1x16x128xf32>
    %33 = vector.shape_cast %32 : vector<1x16x128xf32> to vector<16x128xf32>
    %34 = vector.shape_cast %31 : vector<16x128xf32> to vector<1x16x128xf32>
    tpu.vector_store %arg10[%c0_20, %c0_21, %c0_22], %34 {strides = array<i32>} : memref<1x16x128xf32, #tpu.memory_space<vmem>>, vector<1x16x128xf32>,
    %c0_23 = arith.constant 0 : index
    %c0_24 = arith.constant 0 : index
    %c0_25 = arith.constant 0 : index
    %35 = vector.load %arg7[%c0_23, %c0_24, %c0_25] : memref<1x16x128xf32, #tpu.memory_space<vmem>>, vector<1x16x128xf32>
    %36 = vector.shape_cast %35 : vector<1x16x128xf32> to vector<16x128xf32>
    %37 = vector.broadcast %0 : vector<1x128xf32> to vector<16x128xf32>
    %38 = arith.mulf %36, %37 : vector<16x128xf32>
    %39 = vector.broadcast %1 : vector<1x128xf32> to vector<16x128xf32>
    %40 = arith.addf %38, %39 : vector<16x128xf32>
    %cst_26 = arith.constant 0.000000e+00 : f32
    %41 = vector.broadcast %cst_26 : f32 to vector<16x128xf32>
    %42 = arith.maximumf %40, %41 : vector<16x128xf32>
    %c0_27 = arith.constant 0 : index
    %c0_28 = arith.constant 0 : index
    %c0_29 = arith.constant 0 : index
    %43 = vector.load %arg11[%c0_27, %c0_28, %c0_29] : memref<1x16x128xf32, #tpu.memory_space<vmem>>, vector<1x16x128xf32>
    %44 = vector.shape_cast %43 : vector<1x16x128xf32> to vector<16x128xf32>
    %45 = vector.shape_cast %42 : vector<16x128xf32> to vector<1x16x128xf32>
    tpu.vector_store %arg11[%c0_27, %c0_28, %c0_29], %45 {strides = array<i32>} : memref<1x16x128xf32, #tpu.memory_space<vmem>>, vector<1x16x128xf32>,
    return
  }
  func.func @transform_0(%arg0: i32, %arg1: i32) -> (i32, i32) {
    %c0_i32 = arith.constant 0 : i32
    %c0_i32_0 = arith.constant 0 : i32
    %c0_i32_1 = arith.constant 0 : i32
    return %c0_i32, %c0_i32_0 : i32, i32
  }
  func.func @transform_1(%arg0: i32, %arg1: i32) -> (i32, i32) {
    %c0_i32 = arith.constant 0 : i32
    %c0_i32_0 = arith.constant 0 : i32
    %c0_i32_1 = arith.constant 0 : i32
    return %c0_i32, %c0_i32_0 : i32, i32
  }
  func.func @transform_2(%arg0: i32, %arg1: i32) -> (i32, i32, i32) {
    %c0_i32 = arith.constant 0 : i32
    %c0_i32_0 = arith.constant 0 : i32
    return %arg0, %arg1, %c0_i32 : i32, i32, i32
  }
  func.func @transform_3(%arg0: i32, %arg1: i32) -> (i32, i32, i32) {
    %c0_i32 = arith.constant 0 : i32
    %c0_i32_0 = arith.constant 0 : i32
    return %arg0, %arg1, %c0_i32 : i32, i32, i32
  }
  func.func @transform_4(%arg0: i32, %arg1: i32) -> (i32, i32, i32) {
    %c0_i32 = arith.constant 0 : i32
    %c0_i32_0 = arith.constant 0 : i32
    return %arg0, %arg1, %c0_i32 : i32, i32, i32
  }
  func.func @transform_5(%arg0: i32, %arg1: i32) -> (i32, i32, i32) {
    %c0_i32 = arith.constant 0 : i32
    %c0_i32_0 = arith.constant 0 : i32
    return %arg0, %arg1, %c0_i32 : i32, i32, i32
  }
  func.func @transform_6(%arg0: i32, %arg1: i32) -> (i32, i32, i32) {
    %c0_i32 = arith.constant 0 : i32
    %c0_i32_0 = arith.constant 0 : i32
    return %arg0, %arg1, %c0_i32 : i32, i32, i32
  }
  func.func @transform_7(%arg0: i32, %arg1: i32) -> (i32, i32, i32) {
    %c0_i32 = arith.constant 0 : i32
    %c0_i32_0 = arith.constant 0 : i32
    return %arg0, %arg1, %c0_i32 : i32, i32, i32
  }
  func.func @transform_8(%arg0: i32, %arg1: i32) -> (i32, i32, i32) {
    %c0_i32 = arith.constant 0 : i32
    %c0_i32_0 = arith.constant 0 : i32
    return %arg0, %arg1, %c0_i32 : i32, i32, i32
  }
  func.func @transform_9(%arg0: i32, %arg1: i32) -> (i32, i32, i32) {
    %c0_i32 = arith.constant 0 : i32
    %c0_i32_0 = arith.constant 0 : i32
    return %arg0, %arg1, %c0_i32 : i32, i32, i32
  }
}

</mosaic_0001>

<bundles_post_ra>
// kernel: tile.18
= control target key start
LH: loop header
LB: loop body
LE: loop exit
PB: predicated region body
PF: predicated region fallthrough
CT: control target
= control target key end

     0   :  { %s28_s0 = inlined_call_operand.vmem [shape: f32[8], index: 0, kind: input, shape index: {}]   ;;  %s29_s1 = inlined_call_operand.vmem [shape: f32[16,8], index: 1, kind: output, shape index: {}]  }
   0x1   :  { %v4_v0 = vld [vmem:[%s28_s0] ss:$0 sm:$0xff] }
   0x2   :  { %5 = vst [vmem:[%s29_s1] sm:$0xff] %v4_v0  ;;  %8 = vst [vmem:[%s29_s1 + $0x8] sm:$0xff] %v4_v0 }

// kernel: tile.19
= control target key start
LH: loop header
LB: loop body
LE: loop exit
PB: predicated region body
PF: predicated region fallthrough
CT: control target
= control target key end

     0   :  { %s131_s10 = smov 120   ;;  %s132_s11 = smov 104   ;;  %vm3_vm0 = vcmask 64512   ;;  %vm9_vm1 = vcmask 1048512   ;;  %vm15_vm2 = vcmask 982912   ;;  %vm21_vm3 = vcmask 917312   ;;  %s207_s0 = inlined_call_operand.vmem [shape: f32[16,8], index: 0, kind: input, shape index: {}]   ;;  %s208_s1 = inlined_call_operand.vmem [shape: f32[1,128], index: 1, kind: output, shape index: {}]  }
   0x1   :  { %v101_v0 = vld [vmem:[%s207_s0 + $0xf] sm:$0x1]   ;;  %v103_v1 = vld [vmem:[%s207_s0 + $0xd] sm:$0x1]   ;;  %v102_v2 = vld [vmem:[%s207_s0 + $0xe] sm:$0x1]  }
   0x2   :  { %7 = vrot.lane.b32.xlu0 %v101_v0, %s131_s10  ;;  %19 = vrot.lane.b32.xlu1 %v103_v1, %s132_s11  ;;  %v104_v3 = vld [vmem:[%s207_s0 + $0xc] sm:$0x1]   ;;  %s133_s16 = smov 112   ;;  %s134_s17 = smov 96   ;;  %v105_v4 = vld [vmem:[%s207_s0 + $0xb] sm:$0x1]  }
   0x3   :  { %v106_v5 = vld [vmem:[%s207_s0 + $0xa] sm:$0x1]   ;;  %v2_v6 = vld [vmem:[%s207_s0] sm:$0x1]   ;;  %s135_s24 = smov 88   ;;  %s136_s25 = smov 80  }
   0x4   :  { %4 = vst.msk [vmem:[#allocation0] sm:$0x1] %vm3_vm0, %v2_v6   ;;  %v107_v7 = vld [vmem:[%s207_s0 + $0x9] sm:$0x1]   ;;  %v108_v8 = vld [vmem:[%s207_s0 + $0x8] sm:$0x1]  }
   0x5   :  { %s137_s30 = smov 72   ;;  %s138_s2 = smov 64   ;;  %v109_v9 = vld [vmem:[%s207_s0 + $0x7] sm:$0x1]   ;;  %v110_v10 = vld [vmem:[%s207_s0 + $0x6] sm:$0x1]  }
   0x6   :  { %13 = vrot.lane.b32.xlu0 %v102_v2, %s133_s16  ;;  %25 = vrot.lane.b32.xlu1 %v104_v3, %s134_s17  ;;  %s139_s7 = smov 56   ;;  %s140_s8 = smov 48   ;;  %v111_v11 = vld [vmem:[%s207_s0 + $0x5] sm:$0x1]   ;;  %v112_v12 = vld [vmem:[%s207_s0 + $0x4] sm:$0x1]  }
   0x7   :  { %s141_s13 = smov 40   ;;  %s142_s14 = smov 32   ;;  %v113_v13 = vld [vmem:[%s207_s0 + $0x3] sm:$0x1]   ;;  %v114_v14 = vld [vmem:[%s207_s0 + $0x2] sm:$0x1]  }
   0x8   :  { %s143_s19 = smov 24   ;;  %s144_s20 = smov 16   ;;  %v115_v15 = vld [vmem:[%s207_s0 + $0x1] sm:$0x1]   ;;  %vm27_vm4 = vcmask 851712   ;;  %vm33_vm5 = vcmask 786112  }
   0x9   :  { %s145_s0 = smov 8   ;;  %vm39_vm6 = vcmask 720512   ;;  %vm45_vm7 = vcmask 654912   ;;  %vm51_vm8 = vcmask 589312   ;;  %vm57_vm9 = vcmask 523712  }
   0xa   :  { %31 = vrot.lane.b32.xlu0 %v105_v4, %s135_s24  ;;  %37 = vrot.lane.b32.xlu1 %v106_v5, %s136_s25  ;;  %vm63_vm10 = vcmask 458112   ;;  %vm69_vm11 = vcmask 392512   ;;  %vm75_vm12 = vcmask 326912   ;;  %vm81_vm13 = vcmask 261312  }
   0xb   :  { %vm87_vm14 = vcmask 195712   ;;  %vm93_vm15 = vcmask 130112  }
   0xe   :  { %43 = vrot.lane.b32.xlu0 %v107_v7, %s137_s30  ;;  %49 = vrot.lane.b32.xlu1 %v108_v8, %s138_s2 }
  0x12   :  { %55 = vrot.lane.b32.xlu0 %v109_v9, %s139_s7  ;;  %61 = vrot.lane.b32.xlu1 %v110_v10, %s140_s8 }
  0x16   :  { %67 = vrot.lane.b32.xlu0 %v111_v11, %s141_s13  ;;  %73 = vrot.lane.b32.xlu1 %v112_v12, %s142_s14 }
  0x1a   :  { %79 = vrot.lane.b32.xlu0 %v113_v13, %s143_s19  ;;  %85 = vrot.lane.b32.xlu1 %v114_v14, %s144_s20 }
  0x1e   :  { %91 = vrot.lane.b32.xlu0 %v115_v15, %s145_s0 }
  0x74   :  { %v8_v16 = vpop.permute.xlu0 %7   ;;  %v20_v17 = vpop.permute.xlu1 %19  }
  0x75   :  { %10 = vst.msk [vmem:[#allocation0] sm:$0x1] %vm9_vm1, %v8_v16  }
  0x78   :  { %v14_v18 = vpop.permute.xlu0 %13   ;;  %v26_v19 = vpop.permute.xlu1 %25  }
  0x79   :  { %16 = vst.msk [vmem:[#allocation0] sm:$0x1] %vm15_vm2, %v14_v18  }
  0x7a   :  { %22 = vst.msk [vmem:[#allocation0] sm:$0x1] %vm21_vm3, %v20_v17  }
  0x7b   :  { %28 = vst.msk [vmem:[#allocation0] sm:$0x1] %vm27_vm4, %v26_v19  }
  0x7c   :  { %v32_v20 = vpop.permute.xlu0 %31   ;;  %v38_v21 = vpop.permute.xlu1 %37  }
  0x7d   :  { %34 = vst.msk [vmem:[#allocation0] sm:$0x1] %vm33_vm5, %v32_v20  }
  0x7e   :  { %40 = vst.msk [vmem:[#allocation0] sm:$0x1] %vm39_vm6, %v38_v21  }
  0x80   :  { %v44_v22 = vpop.permute.xlu0 %43   ;;  %v50_v23 = vpop.permute.xlu1 %49  }
  0x81   :  { %46 = vst.msk [vmem:[#allocation0] sm:$0x1] %vm45_vm7, %v44_v22  }
  0x82   :  { %52 = vst.msk [vmem:[#allocation0] sm:$0x1] %vm51_vm8, %v50_v23  }
  0x84   :  { %v56_v24 = vpop.permute.xlu0 %55   ;;  %v62_v25 = vpop.permute.xlu1 %61  }
  0x85   :  { %58 = vst.msk [vmem:[#allocation0] sm:$0x1] %vm57_vm9, %v56_v24  }
  0x86   :  { %64 = vst.msk [vmem:[#allocation0] sm:$0x1] %vm63_vm10, %v62_v25  }
  0x88   :  { %v68_v26 = vpop.permute.xlu0 %67   ;;  %v74_v27 = vpop.permute.xlu1 %73  }
  0x89   :  { %70 = vst.msk [vmem:[#allocation0] sm:$0x1] %vm69_vm11, %v68_v26  }
  0x8a   :  { %76 = vst.msk [vmem:[#allocation0] sm:$0x1] %vm75_vm12, %v74_v27  }
  0x8c   :  { %v80_v28 = vpop.permute.xlu0 %79   ;;  %v86_v29 = vpop.permute.xlu1 %85  }
  0x8d   :  { %82 = vst.msk [vmem:[#allocation0] sm:$0x1] %vm81_vm13, %v80_v28  }
  0x8e   :  { %88 = vst.msk [vmem:[#allocation0] sm:$0x1] %vm87_vm14, %v86_v29  }
  0x90   :  { %v92_v30 = vpop.permute.xlu0 %91  }
  0x91   :  { %94 = vst.msk [vmem:[#allocation0] sm:$0x1] %vm93_vm15, %v92_v30  }
  0x98   :  { %v98_v31 = vld [vmem:[#allocation0] sm:$0x1] }
  0x99   :  { %100 = vst [vmem:[%s208_s1] sm:$0x1] %v98_v31 }

// kernel: deconv2d_forward.3
= control target key start
LH: loop header
LB: loop body
LE: loop exit
PB: predicated region body
PF: predicated region fallthrough
CT: control target
= control target key end

     0   :  { %s1026_s30 = smov 0   ;;  %s1028_s10 = smov 0   ;;  %s1093_s0 = inlined_call_operand.vmem [shape: f32[1,128], index: 0, kind: input, shape index: {}]   ;;  %s1094_s1 = inlined_call_operand.vmem [shape: f32[1,128], index: 1, kind: input, shape index: {}]   ;;  %s1095_s2 = inlined_call_operand.vmem [shape: f32[2,16,128], index: 2, kind: input, shape index: {}]   ;;  %s1096_s3 = inlined_call_operand.vmem [shape: f32[2,16,128], index: 3, kind: input, shape index: {}]   ;;  %s1097_s4 = inlined_call_operand.vmem [shape: f32[2,16,128], index: 4, kind: input, shape index: {}]   ;;  %s1098_s5 = inlined_call_operand.vmem [shape: f32[2,16,128], index: 5, kind: input, shape index: {}]   ;;  %s1099_s6 = inlined_call_operand.vmem [shape: f32[2,16,128], index: 6, kind: output, shape index: {0}]   ;;  %s1100_s7 = inlined_call_operand.vmem [shape: f32[2,16,128], index: 7, kind: output, shape index: {1}]   ;;  %s1101_s8 = inlined_call_operand.vmem [shape: f32[2,16,128], index: 8, kind: output, shape index: {2}]   ;;  %s1102_s9 = inlined_call_operand.vmem [shape: f32[2,16,128], index: 9, kind: output, shape index: {3}]  }
   0x1   :  { %s1030_s11 = smov 0  }
   0x2 LB: > { %s32_s12 = sadd.s32 1, %s970_s10  ;;  %p899_p0 = scmp.ge.s32.totalorder %s974_s11, 1  ;;  %s974_s11 = sphi %s1030_s11, %s20_s11   ;;  %s970_s10 = sphi %s1028_s10, %s1104_s10   ;;  %s966_s30 = sphi %s1026_s30, %s1103_s30  }
   0x3   : > { %p34_p1 = scmp.ge.s32.totalorder %s32_s12, 2  ;;  %p372_p2 = scmp.lt.s32.totalorder %s974_s11, 3 }
   0x5   : > { %s1106_s12 = smov (%p34_p1, %s32_s12), 0  ;;  %p373_p3 = pnand %p899_p0, %p372_p2 }
   0x6   : > { %p471_p4 = scmp.lt.s32.totalorder (!%p373_p3), %s966_s30, 1  ;;  %v916_v0 = vld [vmem:[%s1093_s0] ss:$0 sm:$0xff] (!%p373_p3) }
   0x7   : > { %376 = sbr.rel (%p373_p3) target bundleno = 28 (0x1c), region = 44  ;;  %v917_v1 = vld [vmem:[%s1094_s1] ss:$0 sm:$0xff] (!%p373_p3) }
   0xe   : > { %s1108_s30 = smov (!%p471_p4, %s966_s30), 1 }
   0xf   : > { %s1044_s13 = sshll.u32 %s1108_s30, 4 }
  0x10   : > { %s478_s18 = scalar_lea.vmem %s1095_s2, %s1044_s13  ;;  %s488_s23 = scalar_lea.vmem %s1096_s3, %s1044_s13 }
  0x11   : > { %v552_v2 = vld [vmem:[%s478_s18] sm:$0xff]  ;;  %v553_v3 = vld [vmem:[%s478_s18 + $0x8] sm:$0xff]  ;;  %s498_s26 = scalar_lea.vmem %s1097_s4, %s1044_s13  ;;  %s508_s29 = scalar_lea.vmem %s1098_s5, %s1044_s13 }
  0x12   : > { %v560_v4 = vmul.f32 %v916_v0, %v552_v2  ;;  %v561_v5 = vmul.f32 %v916_v0, %v553_v3  ;;  %v574_v6 = vld [vmem:[%s488_s23] sm:$0xff]  ;;  %v575_v7 = vld [vmem:[%s488_s23 + $0x8] sm:$0xff]  ;;  %s518_s15 = scalar_lea.vmem %s1099_s6, %s1044_s13  ;;  %s528_s18 = scalar_lea.vmem %s1100_s7, %s1044_s13 }
  0x13   : > { %v576_v8 = vmul.f32 %v916_v0, %v574_v6  ;;  %v577_v9 = vmul.f32 %v916_v0, %v575_v7  ;;  %v584_v10 = vld [vmem:[%s498_s26] sm:$0xff]  ;;  %v585_v11 = vld [vmem:[%s498_s26 + $0x8] sm:$0xff]  ;;  %s538_s21 = scalar_lea.vmem %s1101_s8, %s1044_s13  ;;  %s548_s24 = scalar_lea.vmem %s1102_s9, %s1044_s13 }
  0x14   : > { %v568_v12 = vadd.f32 %v917_v1, %v560_v4  ;;  %v569_v13 = vadd.f32 %v917_v1, %v561_v5  ;;  %v586_v14 = vmul.f32 %v916_v0, %v584_v10  ;;  %v587_v15 = vmul.f32 %v916_v0, %v585_v11  ;;  %v594_v16 = vld [vmem:[%s508_s29] sm:$0xff]  ;;  %v595_v17 = vld [vmem:[%s508_s29 + $0x8] sm:$0xff] }
  0x15   : > { %v578_v18 = vadd.f32 %v917_v1, %v576_v8  ;;  %v579_v19 = vadd.f32 %v917_v1, %v577_v9  ;;  %v596_v20 = vmul.f32 %v916_v0, %v594_v16  ;;  %v597_v21 = vmul.f32 %v916_v0, %v595_v17 }
  0x16   : > { %v570_v22 = vmax.f32 %v568_v12, 0.0  ;;  %v571_v23 = vmax.f32 %v569_v13, 0.0  ;;  %v588_v24 = vadd.f32 %v917_v1, %v586_v14  ;;  %v589_v25 = vadd.f32 %v917_v1, %v587_v15 }
  0x17   : > { %v580_v26 = vmax.f32 %v578_v18, 0.0  ;;  %v581_v27 = vmax.f32 %v579_v19, 0.0  ;;  %v598_v28 = vadd.f32 %v917_v1, %v596_v20  ;;  %v599_v29 = vadd.f32 %v917_v1, %v597_v21 }
  0x18   : > { %572 = vst [vmem:[%s518_s15] sm:$0xff] %v570_v22  ;;  %573 = vst [vmem:[%s518_s15 + $0x8] sm:$0xff] %v571_v23  ;;  %v590_v30 = vmax.f32 %v588_v24, 0.0  ;;  %v591_v31 = vmax.f32 %v589_v25, 0.0 }
  0x19   : > { %582 = vst [vmem:[%s528_s18] sm:$0xff] %v580_v26  ;;  %583 = vst [vmem:[%s528_s18 + $0x8] sm:$0xff] %v581_v27  ;;  %v600_v32 = vmax.f32 %v598_v28, 0.0  ;;  %v601_v33 = vmax.f32 %v599_v29, 0.0 }
  0x1a   : > { %592 = vst [vmem:[%s538_s21] sm:$0xff] %v590_v30  ;;  %593 = vst [vmem:[%s538_s21 + $0x8] sm:$0xff] %v591_v31 }
  0x1b   : > { %602 = vst [vmem:[%s548_s24] sm:$0xff] %v600_v32  ;;  %603 = vst [vmem:[%s548_s24 + $0x8] sm:$0xff] %v601_v33 }
  0x1c PF: > { %s20_s11 = sadd.s32 1, %s974_s11   ;;  %s1103_s30 = smov %s970_s10 }
  0x1d   : > { %p17_p5 = scmp.ge.s32.totalorder %s20_s11, 4   ;;  %s1104_s10 = smov %s1106_s12 }
  0x1f   :  { %19 = sbr.rel (!%p17_p5) target bundleno = 2 (0x2), region = 119 }

// kernel: deconv2d_forward.2
= control target key start
LH: loop header
LB: loop body
LE: loop exit
PB: predicated region body
PF: predicated region fallthrough
CT: control target
= control target key end

     0   :  { %s5372_s27 = smov 0   ;;  %s5374_s2 = smov 0   ;;  %s7169_s0 = inlined_call_operand.vmem [shape: f32[2,17,17,4], index: 0, kind: input, shape index: {}]   ;;  %s7170_s1 = inlined_call_operand.vmem [shape: f32[9,4,8], index: 1, kind: input, shape index: {}]   ;;  %s7171_s2 = inlined_call_operand.vmem [shape: f32[1,1,8], index: 2, kind: input, shape index: {}]   ;;  %s7172_s3 = inlined_call_operand.vmem [shape: f32[2,16,16,8], index: 3, kind: output, shape index: {0}]   ;;  %s7173_s4 = inlined_call_operand.vmem [shape: f32[2,16,16,8], index: 4, kind: output, shape index: {1}]   ;;  %s7174_s5 = inlined_call_operand.vmem [shape: f32[2,16,16,8], index: 5, kind: output, shape index: {2}]   ;;  %s7175_s6 = inlined_call_operand.vmem [shape: f32[2,16,16,8], index: 6, kind: output, shape index: {3}]   ;;  %s7176_s7 = inlined_call_operand.vmem [shape: f32[2,1,8], index: 7, kind: output, shape index: {4}]   ;;  %s7177_s8 = inlined_call_operand.vmem [shape: f32[2,1,8], index: 8, kind: output, shape index: {5}]  }
   0x1   :  { %s5376_s28 = smov 0  }
   0x2 LB: > { %s31_s29 = sadd.s32 1, %s5321_s2  ;;  %p4031_p0 = scmp.ge.s32.totalorder %s5325_s28, 1  ;;  %s5325_s28 = sphi %s5376_s28, %s19_s28   ;;  %s5321_s2 = sphi %s5374_s2, %s7229_s2   ;;  %s5317_s27 = sphi %s5372_s27, %s7228_s27  }
   0x3   : > { %p33_p1 = scmp.ge.s32.totalorder %s31_s29, 2  ;;  %p293_p2 = scmp.lt.s32.totalorder %s5325_s28, 3 }
   0x5   : > { %s7231_s29 = smov (%p33_p1, %s31_s29), 0  ;;  %p294_p3 = pnand %p4031_p0, %p293_p2 }
   0x7   : > { %297 = sbr.rel (%p294_p3) target bundleno = 558 (0x22e), region = 32 }
   0xe   : > { %v477_v0 = vld [vmem:[%s7170_s1] sm:$0xf]  ;;  %vm575_vm0 = vcmask 1043456   ;;  %p368_p4 = scmp.lt.s32.totalorder %s5317_s27, 1  ;;  %v4075_v1 = vld [vmem:[%s7170_s1 + $0x8] sm:$0xf] }
   0xf   : > { %4649 = vmatprep.subr.msk.mxu0 %vm575_vm0, %v477_v0  ;;  %v5400_v2 = vld [vmem:[%s7170_s1 + $0x4] sm:$0xf]  ;;  %v4211_v3 = vld [vmem:[%s7170_s1 + $0x18] sm:$0xf]  ;;  %vm478_vm1 = vcmask 31744   ;;  %vm1025_vm2 = vcmask 1046528  }
  0x10   : > { %4650 = vmatpush3.msk.msra.mxu0 %vm575_vm0, %v477_v0  ;;  %s7233_s27 = smov (!%p368_p4, %s5317_s27), 1  ;;  %5099 = vmatprep.subr.msk.mxu1 %vm575_vm0, %v5400_v2  ;;  %v5472_v24 = vld [vmem:[%s7170_s1 + $0x14] sm:$0xf]  ;;  %vm804_vm3 = vcmask 64512   ;;  %vm3706_vm4 = vcmask 57344  }
  0x11   : > { %4699 = vmatprep.subr.msk.mxu0 %vm575_vm0, %v4075_v1  ;;  %5100 = vmatpush3.msk.msra.mxu1 %vm575_vm0, %v5400_v2  ;;  %s5261_s16 = smul.u32 408, %s7233_s27  ;;  %s6168_s11 = sshll.u32 %s7233_s27, 8 }
  0x12   : > { %4899 = vmatprep.subr.msk.mxu1 %vm575_vm0, %v4211_v3  ;;  %s6180_s14 = scalar_lea.vmem %s7172_s3, %s6168_s11  ;;  %s6488_s17 = scalar_lea.vmem %s7173_s4, %s6168_s11 }
  0x13   : > { %s5418_s19 = scalar_lea.vmem %s7169_s0, %s5261_s16  ;;  %s6742_s20 = scalar_lea.vmem %s7174_s5, %s6168_s11 }
  0x14   : > { %v5421_v4 = vld [vmem:[%s5418_s19] sm:$0xff]  ;;  %v5424_v5 = vld [vmem:[%s5418_s19 + $0x8] sm:$0xff]  ;;  %v5436_v9 = vld [vmem:[%s5418_s19 + $0x18] sm:$0xff]  ;;  %s6754_s23 = scalar_lea.vmem %s7175_s6, %s6168_s11  ;;  %s419_s26 = scalar_lea.vmem %s7176_s7, %s7233_s27 }
  0x15   : > { %v5427_v6 = vld [vmem:[%s5418_s19 + $0xc0] sm:$0xff]  ;;  %4651 = vmatprep.mubr.msk.f32.mxu0 %vm478_vm1, %v5421_v4  ;;  %v5432_v7 = vld [vmem:[%s5418_s19 + $0xc8] sm:$0xff]  ;;  %v452_v10 = vld [vmem:[%s5418_s19 + $0xd0] sm:$0x1]  ;;  %s422_s10 = scalar_lea.vmem %s7177_s8, %s7233_s27 }
  0x16   : > { %7198 = vst [vmem:[#allocation2_spill] sm:$0xff] %v5427_v6  ;;  %v1066_v8 = vrot.slane %v5427_v6, 1  ;;  %4652 = vmatmul.mubr.msk.f32.vlgmr.msra.gmra.mrb[0].mxu0 %vm478_vm1, %v5424_v5  ;;  %v1067_v11 = vrot.slane %v5432_v7, 1  ;;  %v1069_v12 = vrot.slane %v452_v10, 1  ;;  %v5443_v13 = vld [vmem:[%s5418_s19 + $0xd8] sm:$0xff]  ;;  %v5446_v14 = vld [vmem:[%s5418_s19 + $0xe0] sm:$0xff] }
  0x17   : > { %7199 = vst [vmem:[#allocation3_spill] sm:$0xff] %v5443_v13  ;;  %4700 = vmatpush3.msk.msra.mxu0 %vm575_vm0, %v4075_v1  ;;  %4654 = vmatprep.mubr.msk.f32.mxu0 %vm478_vm1, %v5436_v9  ;;  %v5452_v15 = vld [vmem:[%s5418_s19 + $0x20] sm:$0xff]  ;;  %v1071_v16 = vrot.slane %v5443_v13, 1  ;;  %v1072_v17 = vrot.slane %v5446_v14, 1  ;;  %v455_v18 = vld [vmem:[%s5418_s19 + $0xe8] sm:$0x1] }
  0x18   : > { %v5458_v19 = vsel %vm1025_vm2, %v1066_v8, %v1067_v11  ;;  %v5461_v20 = vsel %vm1025_vm2, %v1067_v11, %v1069_v12  ;;  %v1074_v21 = vrot.slane %v455_v18, 1  ;;  %v5464_v22 = vld [vmem:[%s5418_s19 + $0xf0] sm:$0xff]  ;;  %v5467_v23 = vld [vmem:[%s5418_s19 + $0xf8] sm:$0xff]  ;;  %4749 = vmatprep.subr.msk.mxu0 %vm575_vm0, %v5400_v2  ;;  %v458_v29 = vld [vmem:[%s5418_s19 + $0x100] sm:$0x1]  ;;  %v7180_v54 = vrot.slane %v5452_v15, 1 }
  0x19   : > { %7200 = vst [vmem:[#allocation4_spill] sm:$0xff] %v5467_v23  ;;  %4775 = vmatprep.mubr.msk.f32.mxu1 %vm478_vm1, %v5458_v19  ;;  %v5479_v25 = vsel %vm1025_vm2, %v1071_v16, %v1072_v17  ;;  %v5482_v26 = vld [vmem:[%s5418_s19 + $0x30] sm:$0xff]  ;;  %v1076_v27 = vrot.slane %v5464_v22, 1  ;;  %v1077_v28 = vrot.slane %v5467_v23, 1  ;;  %v5488_v30 = vld [vmem:[%s5418_s19 + $0x108] sm:$0xff]  ;;  %v5504_v33 = vld [vmem:[%s5418_s19 + $0x38] sm:$0xff] }
  0x1a   : > { %7201 = vst [vmem:[#allocation5_spill] sm:$0xff] %v5488_v30  ;;  %4776 = vmatmul.mubr.msk.f32.vlgmr.msra.gmra.mrb[0].mxu1 %vm478_vm1, %v5461_v20  ;;  %4655 = vmatmul.mubr.msk.f32.gmra.mrb[2].mxu0 %vm478_vm1, %v5452_v15  ;;  %v5495_v31 = vld [vmem:[%s5418_s19 + $0x110] sm:$0xff]  ;;  %v5501_v32 = vsel %vm1025_vm2, %v1072_v17, %v1074_v21  ;;  %v1079_v34 = vrot.slane %v458_v29, 1  ;;  %v5512_v36 = vld [vmem:[%s5418_s19 + $0x48] sm:$0xff]  ;;  %v1081_v37 = vrot.slane %v5488_v30, 1  ;;  %v5520_v40 = vld [vmem:[%s5418_s19 + $0x120] sm:$0xff] }
  0x1b   : > { %4900 = vmatpush3.msk.msra.mxu1 %vm575_vm0, %v4211_v3  ;;  %4778 = vmatprep.mubr.msk.f32.mxu1 %vm478_vm1, %v5479_v25  ;;  %v5509_v35 = vsel %vm1025_vm2, %v1076_v27, %v1077_v28  ;;  %v1082_v38 = vrot.slane %v5495_v31, 1  ;;  %v461_v39 = vld [vmem:[%s5418_s19 + $0x118] sm:$0x1]  ;;  %7202 = vst [vmem:[#allocation6_spill] sm:$0xff] %v5520_v40  ;;  %v5523_v41 = vld [vmem:[%s5418_s19 + $0x128] sm:$0xff]  ;;  %v5538_v44 = vld [vmem:[%s5418_s19 + $0x50] sm:$0xff] }
  0x1c   : > { %4657 = vmatprep.mubr.msk.f32.mxu0 %vm478_vm1, %v5482_v26  ;;  %4949 = vmatprep.subr.msk.mxu1 %vm575_vm0, %v5472_v24  ;;  %v464_v42 = vld [vmem:[%s5418_s19 + $0x130] sm:$0x1]  ;;  %v5535_v43 = vsel %vm1025_vm2, %v1077_v28, %v1079_v34  ;;  %v1084_v45 = vrot.slane %v461_v39, 1  ;;  %v5541_v46 = vld [vmem:[%s5418_s19 + $0x138] sm:$0xff]  ;;  %v5544_v47 = vld [vmem:[%s5418_s19 + $0x140] sm:$0xff]  ;;  %v1086_v50 = vrot.slane %v5520_v40, 1 }
  0x1d   : > { %7203 = vst [vmem:[#allocation7_spill] sm:$0xff] %v5541_v46  ;;  %v5547_v48 = vsel %vm1025_vm2, %v1081_v37, %v1082_v38  ;;  %v5550_v49 = vld [vmem:[%s5418_s19 + $0x60] sm:$0xff]  ;;  %v1087_v51 = vrot.slane %v5523_v41, 1  ;;  %v5555_v52 = vld [vmem:[%s5418_s19 + $0x68] sm:$0xff]  ;;  %v1089_v53 = vrot.slane %v464_v42, 1  ;;  %v7179_v55 = vrot.slane %v5504_v33, 1 }
  0x1e   : > { %4779 = vmatmul.mubr.msk.f32.gmra.mrb[2].mxu1 %vm478_vm1, %v5501_v32  ;;  %4658 = vmatmul.mubr.msk.f32.gmra.mrb[4].mxu0 %vm478_vm1, %v5504_v33  ;;  %v5564_v56 = vld [vmem:[%s5418_s19 + $0x78] sm:$0xff]  ;;  %v1091_v57 = vrot.slane %v5541_v46, 1  ;;  %v1092_v58 = vrot.slane %v5544_v47, 1  ;;  %v431_v59 = vld [vmem:[%s5418_s19 + $0x28] sm:$0x1]  ;;  %v5575_v61 = vsel %vm1025_vm2, %v1082_v38, %v1084_v45  ;;  %v5578_v62 = vld [vmem:[%s5418_s19 + $0x80] sm:$0xff] }
  0x1f   : > { %4781 = vmatprep.mubr.msk.f32.mxu1 %vm478_vm1, %v5509_v35  ;;  %4660 = vmatprep.mubr.msk.f32.mxu0 %vm478_vm1, %v5512_v36  ;;  %v434_v60 = vld [vmem:[%s5418_s19 + $0x40] sm:$0x1]  ;;  %v467_v63 = vld [vmem:[%s5418_s19 + $0x148] sm:$0x1]  ;;  %v1034_v0 = vrot.slane %v431_v59, 1  ;;  %v5583_v8 = vsel %vm1025_vm2, %v1086_v50, %v1087_v51  ;;  %v5586_v10 = vld [vmem:[%s5418_s19 + $0x150] sm:$0xff]  ;;  %v5611_v37 = vsel %vm1025_vm2, %v1087_v51, %v1089_v53 }
  0x20   : > { %v1039_v1 = vrot.slane %v434_v60, 1  ;;  %v437_v3 = vld [vmem:[%s5418_s19 + $0x58] sm:$0x1]  ;;  %7204 = vst [vmem:[#allocation8_spill] sm:$0xff] %v5583_v8  ;;  %7205 = vst [vmem:[#allocation9_spill] sm:$0xff] %v5586_v10  ;;  %v7178_v12 = vrot.slane %v5538_v44, 1 }
  0x21   : > { %v5589_v11 = vld [vmem:[%s5418_s19 + $0x158] sm:$0xff]  ;;  %v1044_v16 = vrot.slane %v437_v3, 1  ;;  %v440_v17 = vld [vmem:[%s5418_s19 + $0x70] sm:$0x1]  ;;  %v5596_v18 = vsel %vm1025_vm2, %v7180_v54, %v1034_v0  ;;  %v7181_v27 = vrot.slane %v5555_v52, 1  ;;  %v7184_v42 = vrot.slane %v5578_v62, 1 }
  0x22   : > { %4782 = vmatmul.mubr.msk.f32.gmra.mrb[4].mxu1 %vm478_vm1, %v5535_v43  ;;  %4661 = vmatmul.mubr.msk.f32.gmra.mrb[6].mxu0 %vm478_vm1, %v5538_v44  ;;  %v5601_v21 = vsel %vm1025_vm2, %v7179_v55, %v1039_v1  ;;  %v1049_v28 = vrot.slane %v440_v17, 1  ;;  %v443_v29 = vld [vmem:[%s5418_s19 + $0x88] sm:$0x1]  ;;  %v446_v34 = vld [vmem:[%s5418_s19 + $0xa0] sm:$0x1]  ;;  %v5614_v38 = vld [vmem:[%s5418_s19 + $0x90] sm:$0xff]  ;;  %v5638_v1 = vsel %vm1025_vm2, %v1091_v57, %v1092_v58 }
  0x23   : > { %4784 = vmatprep.mubr.msk.f32.mxu1 %vm478_vm1, %v5547_v48  ;;  %4663 = vmatprep.mubr.msk.f32.mxu0 %vm478_vm1, %v5550_v49  ;;  %v5619_v39 = vsel %vm1025_vm2, %v7178_v12, %v1044_v16  ;;  %v449_v45 = vld [vmem:[%s5418_s19 + $0xb8] sm:$0x1]  ;;  %v1094_v50 = vrot.slane %v467_v63, 1  ;;  %v1096_v53 = vrot.slane %v5586_v10, 1  ;;  %v1054_v60 = vrot.slane %v443_v29, 1  ;;  %7206 = vst [vmem:[#allocation10_spill] sm:$0xff] %v5638_v1 }
  0x24   : > { %v5628_v51 = vld [vmem:[%s5418_s19 + $0x98] sm:$0xff]  ;;  %v5634_v59 = vsel %vm1025_vm2, %v7181_v27, %v1049_v28  ;;  %v428_v0 = vld [vmem:[%s5418_s19 + $0x10] sm:$0x1]  ;;  %v1097_v3 = vrot.slane %v5589_v11, 1  ;;  %v470_v16 = vld [vmem:[%s5418_s19 + $0x160] sm:$0x1] }
  0x25   : > { %v5643_v17 = vld [vmem:[%s5418_s19 + $0xb0] sm:$0xff]  ;;  %v7185_v63 = vrot.slane %v5628_v51, 1  ;;  %v1059_v12 = vrot.slane %v446_v34, 1  ;;  %v5647_v55 = vld [vmem:[%s5418_s19 + $0x168] sm:$0xff]  ;;  %v5655_v28 = vsel %vm1025_vm2, %v7184_v42, %v1054_v60  ;;  %v1064_v29 = vrot.slane %v449_v45, 1 }
  0x26   : > { %4785 = vmatmul.mubr.msk.f32.gmra.mrb[6].mxu1 %vm478_vm1, %v5575_v61  ;;  %4664 = vmatmul.mubr.msk.f32.gmra.mrb[8].mxu0 %vm478_vm1, %v5555_v52  ;;  %v5650_v54 = vld [vmem:[%s5418_s19 + $0x170] sm:$0xff]  ;;  %v7188_v57 = vrot.slane %v5643_v17, 1  ;;  %v5673_v45 = vsel %vm1025_vm2, %v1092_v58, %v1094_v50  ;;  %v1099_v60 = vrot.slane %v470_v16, 1  ;;  %v7208_v58 = vrot.slane %v5424_v5, 1 }
  0x27   : > { %4787 = vmatprep.mubr.msk.f32.mxu1 %vm478_vm1, %v5583_v8  ;;  %4666 = vmatprep.mubr.msk.f32.mxu0 %vm478_vm1, %v5564_v56  ;;  %7207 = vst [vmem:[#allocation11_spill] sm:$0xff] %v5650_v54  ;;  %v5666_v34 = vsel %vm1025_vm2, %v7185_v63, %v1059_v12  ;;  %v1029_v8 = vrot.slane %v428_v0, 1  ;;  %v5681_v12 = vsel %vm1025_vm2, %v1096_v53, %v1097_v3  ;;  %v5684_v0 = vld [vmem:[%s5418_s19 + $0xa8] sm:$0xff]  ;;  %v1101_v63 = vrot.slane %v5647_v55, 1 }
  0x28   : > { %v5678_v42 = vsel %vm1025_vm2, %v7188_v57, %v1064_v29  ;;  %v1102_v27 = vrot.slane %v5650_v54, 1  ;;  %v5703_v53 = vsel %vm1025_vm2, %v1097_v3, %v1099_v60  ;;  %v476_v57 = vld [vmem:[%s5418_s19 + $0x190] sm:$0x1]  ;;  %v7209_v60 = vrot.slane %v5452_v15, 1 }
  0x29   : > { %v5692_v50 = vsel %vm1025_vm2, %v7208_v58, %v1029_v8  ;;  %v5709_v8 = vld [vmem:[%s5418_s19 + $0x188] sm:$0xff]  ;;  %v2508_v3 = vrot.slane %v476_v57, 1  ;;  %v1031_v57 = vrot.slane %v5436_v9, 1 }
  0x2a   : > { %4788 = vmatmul.mubr.msk.f32.gmra.mrb[8].mxu1 %vm478_vm1, %v5611_v37  ;;  %4667 = vmatmul.mubr.msk.f32.gmra.mrb[10].mxu0 %vm478_vm1, %v5578_v62  ;;  %v5706_v29 = vsel %vm1025_vm2, %v1101_v63, %v1102_v27  ;;  %v7189_v58 = vrot.slane %v5709_v8, 1 }
  0x2b   : > { %4790 = vmatprep.mubr.msk.f32.mxu1 %vm478_vm1, %v5638_v1  ;;  %4669 = vmatprep.mubr.msk.f32.mxu0 %vm478_vm1, %v5614_v38  ;;  %v473_v1 = vld [vmem:[%s5418_s19 + $0x178] sm:$0x1] }
  0x2c   : > { %v1104_v16 = vrot.slane %v473_v1, 1  ;;  %v5727_v63 = vsel %vm1025_vm2, %v7189_v58, %v2508_v3  ;;  %v1036_v3 = vrot.slane %v5482_v26, 1  ;;  %v7210_v58 = vrot.slane %v5504_v33, 1 }
  0x2e   : > { %4791 = vmatmul.mubr.msk.f32.gmra.mrb[10].mxu1 %vm478_vm1, %v5673_v45  ;;  %4670 = vmatmul.mubr.msk.f32.gmra.mrb[12].mxu0 %vm478_vm1, %v5628_v51  ;;  %v5722_v1 = vsel %vm1025_vm2, %v1102_v27, %v1104_v16  ;;  %v5740_v27 = vld [vmem:[%s7170_s1 + $0x1c] sm:$0xf]  ;;  %v5882_v16 = vsel %vm1025_vm2, %v1031_v57, %v7209_v60  ;;  %v1041_v57 = vrot.slane %v5512_v36, 1  ;;  %v5902_v60 = vld [vmem:[%s7170_s1 + $0x20] sm:$0xf] }
  0x2f   : > { %4793 = vmatprep.mubr.msk.f32.mxu1 %vm478_vm1, %v5681_v12  ;;  %4672 = vmatprep.mubr.msk.f32.mxu0 %vm478_vm1, %v5684_v0 }
  0x32   : > { %4794 = vmatmul.mubr.msk.f32.gmra.mrb[12].mxu1 %vm478_vm1, %v5703_v53  ;;  %4673 = vmatmul.mubr.msk.f32.gmra.mrb[14].mxu0 %vm478_vm1, %v5643_v17 }
  0x33   : > { %4796 = vmatprep.mubr.msk.f32.mxu1 %vm478_vm1, %v5706_v29  ;;  %4675 = vmatprep.mubr.msk.f32.mxu0 %vm478_vm1, %v5427_v6 }
  0x36   : > { %4797 = vmatmul.mubr.msk.f32.gmra.mrb[14].mxu1 %vm478_vm1, %v5722_v1  ;;  %4676 = vmatmul.mubr.msk.f32.gmra.mrb[16].mxu0 %vm478_vm1, %v5432_v7 }
  0x37   : > { %4901 = vmatprep.mubr.msk.f32.mxu1 %vm478_vm1, %v5436_v9  ;;  %4678 = vmatprep.mubr.msk.f32.mxu0 %vm478_vm1, %v5443_v13 }
  0x3a   : > { %4902 = vmatmul.mubr.msk.f32.vlgmr.msra.gmra.mrb[16].mxu1 %vm478_vm1, %v5452_v15  ;;  %4679 = vmatmul.mubr.msk.f32.gmra.mrb[18].mxu0 %vm478_vm1, %v5446_v14 }
  0x3b   : > { %4950 = vmatpush3.msk.msra.mxu1 %vm575_vm0, %v5472_v24  ;;  %4904 = vmatprep.mubr.msk.f32.mxu1 %vm478_vm1, %v5482_v26  ;;  %v5805_v24 = vld [vmem:[%s7170_s1 + $0x10] sm:$0xf] }
  0x3c   : > { %4681 = vmatprep.mubr.msk.f32.mxu0 %vm478_vm1, %v5464_v22  ;;  %4999 = vmatprep.subr.msk.mxu1 %vm575_vm0, %v5740_v27 }
  0x3e   : > { %4905 = vmatmul.mubr.msk.f32.gmra.mrb[18].mxu1 %vm478_vm1, %v5504_v33  ;;  %4682 = vmatmul.mubr.msk.f32.gmra.mrb[20].mxu0 %vm478_vm1, %v5467_v23 }
  0x3f   : > { %4907 = vmatprep.mubr.msk.f32.mxu1 %vm478_vm1, %v5512_v36  ;;  %4684 = vmatprep.mubr.msk.f32.mxu0 %vm478_vm1, %v5488_v30 }
  0x42   : > { %4908 = vmatmul.mubr.msk.f32.gmra.mrb[20].mxu1 %vm478_vm1, %v5538_v44  ;;  %4685 = vmatmul.mubr.msk.f32.gmra.mrb[22].mxu0 %vm478_vm1, %v5495_v31 }
  0x43   : > { %4910 = vmatprep.mubr.msk.f32.mxu1 %vm478_vm1, %v5550_v49  ;;  %4687 = vmatprep.mubr.msk.f32.mxu0 %vm478_vm1, %v5520_v40 }
  0x46   : > { %4911 = vmatmul.mubr.msk.f32.gmra.mrb[22].mxu1 %vm478_vm1, %v5555_v52  ;;  %4688 = vmatmul.mubr.msk.f32.gmra.mrb[24].mxu0 %vm478_vm1, %v5523_v41 }
  0x47   : > { %4913 = vmatprep.mubr.msk.f32.mxu1 %vm478_vm1, %v5564_v56  ;;  %4690 = vmatprep.mubr.msk.f32.mxu0 %vm478_vm1, %v5541_v46 }
  0x4a   : > { %4914 = vmatmul.mubr.msk.f32.gmra.mrb[24].mxu1 %vm478_vm1, %v5578_v62  ;;  %4691 = vmatmul.mubr.msk.f32.gmra.mrb[26].mxu0 %vm478_vm1, %v5544_v47 }
  0x4b   : > { %4916 = vmatprep.mubr.msk.f32.mxu1 %vm478_vm1, %v5614_v38  ;;  %4693 = vmatprep.mubr.msk.f32.mxu0 %vm478_vm1, %v5586_v10 }
  0x4e   : > { %4917 = vmatmul.mubr.msk.f32.gmra.mrb[26].mxu1 %vm478_vm1, %v5628_v51  ;;  %4694 = vmatmul.mubr.msk.f32.gmra.mrb[28].mxu0 %vm478_vm1, %v5589_v11 }
  0x4f   : > { %4919 = vmatprep.mubr.msk.f32.mxu1 %vm478_vm1, %v5684_v0  ;;  %4696 = vmatprep.mubr.msk.f32.mxu0 %vm478_vm1, %v5647_v55 }
  0x52   : > { %4920 = vmatmul.mubr.msk.f32.gmra.mrb[28].mxu1 %vm478_vm1, %v5643_v17  ;;  %4697 = vmatmul.mubr.msk.f32.gmra.mrb[30].mxu0 %vm478_vm1, %v5650_v54 }
  0x53   : > { %4922 = vmatprep.mubr.msk.f32.mxu1 %vm478_vm1, %v5427_v6  ;;  %4701 = vmatprep.mubr.msk.f32.mxu0 %vm478_vm1, %v5421_v4 }
  0x56   : > { %4923 = vmatmul.mubr.msk.f32.gmra.mrb[30].mxu1 %vm478_vm1, %v5432_v7  ;;  %4702 = vmatmul.mubr.msk.f32.vlgmr.msra.gmra.mrb[32].mxu0 %vm478_vm1, %v5424_v5 }
  0x57   : > { %4750 = vmatpush3.msk.msra.mxu0 %vm575_vm0, %v5400_v2  ;;  %4925 = vmatprep.mubr.msk.f32.mxu1 %vm478_vm1, %v5443_v13  ;;  %v5868_v2 = vld [vmem:[%s5418_s19 + $0x180] sm:$0xff] }
  0x58   : > { %4704 = vmatprep.mubr.msk.f32.mxu0 %vm478_vm1, %v5436_v9  ;;  %4799 = vmatprep.subr.msk.mxu0 %vm575_vm0, %v5805_v24 }
  0x5a   : > { %4926 = vmatmul.mubr.msk.f32.gmra.mrb[32].mxu1 %vm478_vm1, %v5446_v14  ;;  %4705 = vmatmul.mubr.msk.f32.gmra.mrb[34].mxu0 %vm478_vm1, %v5452_v15 }
  0x5b   : > { %4928 = vmatprep.mubr.msk.f32.mxu1 %vm478_vm1, %v5464_v22  ;;  %4707 = vmatprep.mubr.msk.f32.mxu0 %vm478_vm1, %v5482_v26 }
  0x5e   : > { %4929 = vmatmul.mubr.msk.f32.gmra.mrb[34].mxu1 %vm478_vm1, %v5467_v23  ;;  %4708 = vmatmul.mubr.msk.f32.gmra.mrb[36].mxu0 %vm478_vm1, %v5504_v33 }
  0x5f   : > { %4931 = vmatprep.mubr.msk.f32.mxu1 %vm478_vm1, %v5488_v30  ;;  %4710 = vmatprep.mubr.msk.f32.mxu0 %vm478_vm1, %v5512_v36 }
  0x62   : > { %4932 = vmatmul.mubr.msk.f32.gmra.mrb[36].mxu1 %vm478_vm1, %v5495_v31  ;;  %4711 = vmatmul.mubr.msk.f32.gmra.mrb[38].mxu0 %vm478_vm1, %v5538_v44 }
  0x63   : > { %4934 = vmatprep.mubr.msk.f32.mxu1 %vm478_vm1, %v5520_v40  ;;  %4713 = vmatprep.mubr.msk.f32.mxu0 %vm478_vm1, %v5550_v49 }
  0x66   : > { %4935 = vmatmul.mubr.msk.f32.gmra.mrb[38].mxu1 %vm478_vm1, %v5523_v41  ;;  %4714 = vmatmul.mubr.msk.f32.gmra.mrb[40].mxu0 %vm478_vm1, %v5555_v52 }
  0x67   : > { %4937 = vmatprep.mubr.msk.f32.mxu1 %vm478_vm1, %v5541_v46  ;;  %4716 = vmatprep.mubr.msk.f32.mxu0 %vm478_vm1, %v5564_v56 }
  0x6a   : > { %4938 = vmatmul.mubr.msk.f32.gmra.mrb[40].mxu1 %vm478_vm1, %v5544_v47  ;;  %4717 = vmatmul.mubr.msk.f32.gmra.mrb[42].mxu0 %vm478_vm1, %v5578_v62 }
  0x6b   : > { %4940 = vmatprep.mubr.msk.f32.mxu1 %vm478_vm1, %v5586_v10  ;;  %4719 = vmatprep.mubr.msk.f32.mxu0 %vm478_vm1, %v5614_v38 }
  0x6e   : > { %4941 = vmatmul.mubr.msk.f32.gmra.mrb[42].mxu1 %vm478_vm1, %v5589_v11  ;;  %4720 = vmatmul.mubr.msk.f32.gmra.mrb[44].mxu0 %vm478_vm1, %v5628_v51 }
  0x6f   : > { %4943 = vmatprep.mubr.msk.f32.mxu1 %vm478_vm1, %v5647_v55  ;;  %4722 = vmatprep.mubr.msk.f32.mxu0 %vm478_vm1, %v5684_v0 }
  0x72   : > { %4944 = vmatmul.mubr.msk.f32.gmra.mrb[44].mxu1 %vm478_vm1, %v5650_v54  ;;  %4723 = vmatmul.mubr.msk.f32.gmra.mrb[46].mxu0 %vm478_vm1, %v5643_v17 }
  0x73   : > { %4946 = vmatprep.mubr.msk.f32.mxu1 %vm478_vm1, %v5868_v2  ;;  %4725 = vmatprep.mubr.msk.f32.mxu0 %vm478_vm1, %v5427_v6  ;;  %v5896_v6 = vsel %vm1025_vm2, %v1036_v3, %v7210_v58  ;;  %v7211_v58 = vrot.slane %v5538_v44, 1 }
  0x75   : > { %v5917_v3 = vsel %vm1025_vm2, %v1041_v57, %v7211_v58  ;;  %v1051_v58 = vrot.slane %v5564_v56, 1 }
  0x76   : > { %4947 = vmatmul.mubr.msk.f32.gmra.mrb[46].mxu1 %vm478_vm1, %v5709_v8  ;;  %4726 = vmatmul.mubr.msk.f32.gmra.mrb[48].mxu0 %vm478_vm1, %v5432_v7 }
  0x77   : > { %4951 = vmatprep.mubr.msk.f32.mxu1 %vm478_vm1, %v5882_v16  ;;  %4728 = vmatprep.mubr.msk.f32.mxu0 %vm478_vm1, %v5443_v13  ;;  %v1046_v13 = vrot.slane %v5550_v49, 1 }
  0x7a   : > { %4952 = vmatmul.mubr.msk.f32.vlgmr.msra.gmra.mrb[16].mxu1 %vm478_vm1, %v5596_v18  ;;  %4729 = vmatmul.mubr.msk.f32.gmra.mrb[50].mxu0 %vm478_vm1, %v5446_v14 }
  0x7b   : > { %5000 = vmatpush3.msk.msra.mxu1 %vm575_vm0, %v5740_v27  ;;  %4954 = vmatprep.mubr.msk.f32.mxu1 %vm478_vm1, %v5896_v6  ;;  %v7212_v27 = vrot.slane %v5555_v52, 1 }
  0x7c   : > { %4731 = vmatprep.mubr.msk.f32.mxu0 %vm478_vm1, %v5464_v22  ;;  %5049 = vmatprep.subr.msk.mxu1 %vm575_vm0, %v5902_v60 }
  0x7d   : > { %v5933_v57 = vsel %vm1025_vm2, %v1046_v13, %v7212_v27  ;;  %v1056_v13 = vrot.slane %v5614_v38, 1  ;;  %v7214_v27 = vrot.slane %v5628_v51, 1 }
  0x7e   : > { %4955 = vmatmul.mubr.msk.f32.gmra.mrb[18].mxu1 %vm478_vm1, %v5601_v21  ;;  %4732 = vmatmul.mubr.msk.f32.gmra.mrb[52].mxu0 %vm478_vm1, %v5467_v23 }
  0x7f   : > { %4957 = vmatprep.mubr.msk.f32.mxu1 %vm478_vm1, %v5917_v3  ;;  %4734 = vmatprep.mubr.msk.f32.mxu0 %vm478_vm1, %v5488_v30  ;;  %v7213_v30 = vrot.slane %v5578_v62, 1 }
  0x81   : > { %v5947_v23 = vsel %vm1025_vm2, %v1051_v58, %v7213_v30  ;;  %v1061_v30 = vrot.slane %v5684_v0, 1  ;;  %v7215_v58 = vrot.slane %v5643_v17, 1 }
  0x82   : > { %4958 = vmatmul.mubr.msk.f32.gmra.mrb[20].mxu1 %vm478_vm1, %v5619_v39  ;;  %4735 = vmatmul.mubr.msk.f32.gmra.mrb[54].mxu0 %vm478_vm1, %v5495_v31 }
  0x83   : > { %4960 = vmatprep.mubr.msk.f32.mxu1 %vm478_vm1, %v5933_v57  ;;  %4737 = vmatprep.mubr.msk.f32.mxu0 %vm478_vm1, %v5520_v40  ;;  %v5961_v40 = vsel %vm1025_vm2, %v1056_v13, %v7214_v27  ;;  %v1026_v13 = vrot.slane %v5421_v4, 1  ;;  %v7216_v27 = vrot.slane %v5424_v5, 1 }
  0x86   : > { %4961 = vmatmul.mubr.msk.f32.gmra.mrb[22].mxu1 %vm478_vm1, %v5634_v59  ;;  %4738 = vmatmul.mubr.msk.f32.gmra.mrb[56].mxu0 %vm478_vm1, %v5523_v41 }
  0x87   : > { %4963 = vmatprep.mubr.msk.f32.mxu1 %vm478_vm1, %v5947_v23  ;;  %4740 = vmatprep.mubr.msk.f32.mxu0 %vm478_vm1, %v5541_v46  ;;  %v5975_v46 = vsel %vm1025_vm2, %v1061_v30, %v7215_v58  ;;  %v4142_v30 = vld [vmem:[%s7170_s1 + $0xc] sm:$0xf]  ;;  %v7218_v58 = vld [vmem:[#allocation10_spill] sm:$0xff] }
  0x8a   : > { %4964 = vmatmul.mubr.msk.f32.gmra.mrb[24].mxu1 %vm478_vm1, %v5655_v28  ;;  %4741 = vmatmul.mubr.msk.f32.gmra.mrb[58].mxu0 %vm478_vm1, %v5544_v47 }
  0x8b   : > { %4966 = vmatprep.mubr.msk.f32.mxu1 %vm478_vm1, %v5961_v40  ;;  %4743 = vmatprep.mubr.msk.f32.mxu0 %vm478_vm1, %v5586_v10  ;;  %v1028_v10 = vsel %vm1025_vm2, %v1026_v13, %v7216_v27  ;;  %v2505_v13 = vrot.slane %v5868_v2, 1  ;;  %v7219_v27 = vrot.slane %v5709_v8, 1 }
  0x8e   : > { %4967 = vmatmul.mubr.msk.f32.gmra.mrb[26].mxu1 %vm478_vm1, %v5666_v34  ;;  %4744 = vmatmul.mubr.msk.f32.gmra.mrb[60].mxu0 %vm478_vm1, %v5589_v11 }
  0x8f   : > { %4969 = vmatprep.mubr.msk.f32.mxu1 %vm478_vm1, %v5975_v46  ;;  %4746 = vmatprep.mubr.msk.f32.mxu0 %vm478_vm1, %v5647_v55 }
  0x92   : > { %4970 = vmatmul.mubr.msk.f32.gmra.mrb[28].mxu1 %vm478_vm1, %v5678_v42  ;;  %4747 = vmatmul.mubr.msk.f32.gmra.mrb[62].mxu0 %vm478_vm1, %v5650_v54  ;;  %v2507_v54 = vsel %vm1025_vm2, %v2505_v13, %v7219_v27 }
  0x93   : > { %4972 = vmatprep.mubr.msk.f32.mxu1 %vm478_vm1, %v5458_v19  ;;  %4751 = vmatprep.mubr.msk.f32.mxu0 %vm478_vm1, %v1028_v10 }
  0x96   : > { %4973 = vmatmul.mubr.msk.f32.gmra.mrb[30].mxu1 %vm478_vm1, %v5461_v20  ;;  %4752 = vmatmul.mubr.msk.f32.vlgmr.msra.gmra.mrb[32].mxu0 %vm478_vm1, %v5692_v50 }
  0x97   : > { %4800 = vmatpush3.msk.msra.mxu0 %vm575_vm0, %v5805_v24  ;;  %4975 = vmatprep.mubr.msk.f32.mxu1 %vm478_vm1, %v5479_v25  ;;  %v7217_v24 = vld [vmem:[#allocation8_spill] sm:$0xff] }
  0x98   : > { %4754 = vmatprep.mubr.msk.f32.mxu0 %vm478_vm1, %v5882_v16  ;;  %4849 = vmatprep.subr.msk.mxu0 %vm575_vm0, %v4142_v30 }
  0x9a   : > { %4976 = vmatmul.mubr.msk.f32.gmra.mrb[32].mxu1 %vm478_vm1, %v5501_v32  ;;  %4755 = vmatmul.mubr.msk.f32.gmra.mrb[34].mxu0 %vm478_vm1, %v5596_v18 }
  0x9b   : > { %4978 = vmatprep.mubr.msk.f32.mxu1 %vm478_vm1, %v5509_v35  ;;  %4757 = vmatprep.mubr.msk.f32.mxu0 %vm478_vm1, %v5896_v6 }
  0x9e   : > { %4979 = vmatmul.mubr.msk.f32.gmra.mrb[34].mxu1 %vm478_vm1, %v5535_v43  ;;  %4758 = vmatmul.mubr.msk.f32.gmra.mrb[36].mxu0 %vm478_vm1, %v5601_v21 }
  0x9f   : > { %4981 = vmatprep.mubr.msk.f32.mxu1 %vm478_vm1, %v5547_v48  ;;  %4760 = vmatprep.mubr.msk.f32.mxu0 %vm478_vm1, %v5917_v3 }
  0xa2   : > { %4982 = vmatmul.mubr.msk.f32.gmra.mrb[36].mxu1 %vm478_vm1, %v5575_v61  ;;  %4761 = vmatmul.mubr.msk.f32.gmra.mrb[38].mxu0 %vm478_vm1, %v5619_v39 }
  0xa3   : > { %4984 = vmatprep.mubr.msk.f32.mxu1 %vm478_vm1, %v7217_v24  ;;  %4763 = vmatprep.mubr.msk.f32.mxu0 %vm478_vm1, %v5933_v57 }
  0xa6   : > { %4985 = vmatmul.mubr.msk.f32.gmra.mrb[38].mxu1 %vm478_vm1, %v5611_v37  ;;  %4764 = vmatmul.mubr.msk.f32.gmra.mrb[40].mxu0 %vm478_vm1, %v5634_v59 }
  0xa7   : > { %4987 = vmatprep.mubr.msk.f32.mxu1 %vm478_vm1, %v7218_v58  ;;  %4766 = vmatprep.mubr.msk.f32.mxu0 %vm478_vm1, %v5947_v23 }
  0xaa   : > { %4988 = vmatmul.mubr.msk.f32.gmra.mrb[40].mxu1 %vm478_vm1, %v5673_v45  ;;  %4767 = vmatmul.mubr.msk.f32.gmra.mrb[42].mxu0 %vm478_vm1, %v5655_v28 }
  0xab   : > { %4990 = vmatprep.mubr.msk.f32.mxu1 %vm478_vm1, %v5681_v12  ;;  %4769 = vmatprep.mubr.msk.f32.mxu0 %vm478_vm1, %v5961_v40 }
  0xae   : > { %4991 = vmatmul.mubr.msk.f32.gmra.mrb[42].mxu1 %vm478_vm1, %v5703_v53  ;;  %4770 = vmatmul.mubr.msk.f32.gmra.mrb[44].mxu0 %vm478_vm1, %v5666_v34 }
  0xaf   : > { %4993 = vmatprep.mubr.msk.f32.mxu1 %vm478_vm1, %v5706_v29  ;;  %4772 = vmatprep.mubr.msk.f32.mxu0 %vm478_vm1, %v5975_v46 }
  0xb2   : > { %4994 = vmatmul.mubr.msk.f32.gmra.mrb[44].mxu1 %vm478_vm1, %v5722_v1  ;;  %4773 = vmatmul.mubr.msk.f32.gmra.mrb[46].mxu0 %vm478_vm1, %v5678_v42 }
  0xb3   : > { %4996 = vmatprep.mubr.msk.f32.mxu1 %vm478_vm1, %v2507_v54  ;;  %4801 = vmatprep.mubr.msk.f32.mxu0 %vm478_vm1, %v5421_v4 }
  0xb6   : > { %4997 = vmatmul.mubr.msk.f32.gmra.mrb[46].mxu1 %vm478_vm1, %v5727_v63  ;;  %4802 = vmatmul.mubr.msk.f32.vlgmr.msra.gmra.mrb[64].mxu0 %vm478_vm1, %v5424_v5 }
  0xb7   : > { %4850 = vmatpush3.msk.msra.mxu0 %vm575_vm0, %v4142_v30  ;;  %5001 = vmatprep.mubr.msk.f32.mxu1 %vm478_vm1, %v1028_v10 }
  0xb8   : > { %4804 = vmatprep.mubr.msk.f32.mxu0 %vm478_vm1, %v5436_v9 }
  0xba   : > { %5002 = vmatmul.mubr.msk.f32.vlgmr.msra.gmra.mrb[16].mxu1 %vm478_vm1, %v5692_v50  ;;  %4805 = vmatmul.mubr.msk.f32.gmra.mrb[66].mxu0 %vm478_vm1, %v5452_v15 }
  0xbb   : > { %5050 = vmatpush3.msk.msra.mxu1 %vm575_vm0, %v5902_v60  ;;  %5004 = vmatprep.mubr.msk.f32.mxu1 %vm478_vm1, %v5882_v16 }
  0xbc   : > { %4807 = vmatprep.mubr.msk.f32.mxu0 %vm478_vm1, %v5482_v26 }
  0xbe   : > { %5005 = vmatmul.mubr.msk.f32.gmra.mrb[18].mxu1 %vm478_vm1, %v5596_v18  ;;  %4808 = vmatmul.mubr.msk.f32.gmra.mrb[68].mxu0 %vm478_vm1, %v5504_v33 }
  0xbf   : > { %5007 = vmatprep.mubr.msk.f32.mxu1 %vm478_vm1, %v5896_v6  ;;  %4810 = vmatprep.mubr.msk.f32.mxu0 %vm478_vm1, %v5512_v36  ;;  %v7220_v6 = vld [vmem:[#allocation2_spill] sm:$0xff] }
  0xc2   : > { %5008 = vmatmul.mubr.msk.f32.gmra.mrb[20].mxu1 %vm478_vm1, %v5601_v21  ;;  %4811 = vmatmul.mubr.msk.f32.gmra.mrb[70].mxu0 %vm478_vm1, %v5538_v44 }
  0xc3   : > { %5010 = vmatprep.mubr.msk.f32.mxu1 %vm478_vm1, %v5917_v3  ;;  %4813 = vmatprep.mubr.msk.f32.mxu0 %vm478_vm1, %v5550_v49 }
  0xc6   : > { %5011 = vmatmul.mubr.msk.f32.gmra.mrb[22].mxu1 %vm478_vm1, %v5619_v39  ;;  %4814 = vmatmul.mubr.msk.f32.gmra.mrb[72].mxu0 %vm478_vm1, %v5555_v52 }
  0xc7   : > { %5013 = vmatprep.mubr.msk.f32.mxu1 %vm478_vm1, %v5933_v57  ;;  %4816 = vmatprep.mubr.msk.f32.mxu0 %vm478_vm1, %v5564_v56 }
  0xca   : > { %5014 = vmatmul.mubr.msk.f32.gmra.mrb[24].mxu1 %vm478_vm1, %v5634_v59  ;;  %4817 = vmatmul.mubr.msk.f32.gmra.mrb[74].mxu0 %vm478_vm1, %v5578_v62 }
  0xcb   : > { %5016 = vmatprep.mubr.msk.f32.mxu1 %vm478_vm1, %v5947_v23  ;;  %4819 = vmatprep.mubr.msk.f32.mxu0 %vm478_vm1, %v5614_v38  ;;  %v7221_v23 = vld [vmem:[#allocation3_spill] sm:$0xff] }
  0xce   : > { %5017 = vmatmul.mubr.msk.f32.gmra.mrb[26].mxu1 %vm478_vm1, %v5655_v28  ;;  %4820 = vmatmul.mubr.msk.f32.gmra.mrb[76].mxu0 %vm478_vm1, %v5628_v51 }
  0xcf   : > { %5019 = vmatprep.mubr.msk.f32.mxu1 %vm478_vm1, %v5961_v40  ;;  %4822 = vmatprep.mubr.msk.f32.mxu0 %vm478_vm1, %v5684_v0 }
  0xd2   : > { %5020 = vmatmul.mubr.msk.f32.gmra.mrb[28].mxu1 %vm478_vm1, %v5666_v34  ;;  %4823 = vmatmul.mubr.msk.f32.gmra.mrb[78].mxu0 %vm478_vm1, %v5643_v17 }
  0xd3   : > { %5022 = vmatprep.mubr.msk.f32.mxu1 %vm478_vm1, %v5975_v46  ;;  %4825 = vmatprep.mubr.msk.f32.mxu0 %vm478_vm1, %v7220_v6 }
  0xd6   : > { %5023 = vmatmul.mubr.msk.f32.gmra.mrb[30].mxu1 %vm478_vm1, %v5678_v42  ;;  %4826 = vmatmul.mubr.msk.f32.gmra.mrb[80].mxu0 %vm478_vm1, %v5432_v7  ;;  %v7222_v7 = vld [vmem:[#allocation4_spill] sm:$0xff] }
  0xd7   : > { %5025 = vmatprep.mubr.msk.f32.mxu1 %vm478_vm1, %v5458_v19  ;;  %4828 = vmatprep.mubr.msk.f32.mxu0 %vm478_vm1, %v7221_v23  ;;  %v7223_v19 = vld [vmem:[#allocation5_spill] sm:$0xff] }
  0xda   : > { %5026 = vmatmul.mubr.msk.f32.gmra.mrb[32].mxu1 %vm478_vm1, %v5461_v20  ;;  %4829 = vmatmul.mubr.msk.f32.gmra.mrb[82].mxu0 %vm478_vm1, %v5446_v14  ;;  %v7224_v14 = vld [vmem:[#allocation6_spill] sm:$0xff]  ;;  %v7225_v20 = vld [vmem:[#allocation7_spill] sm:$0xff] }
  0xdb   : > { %5028 = vmatprep.mubr.msk.f32.mxu1 %vm478_vm1, %v5479_v25  ;;  %4831 = vmatprep.mubr.msk.f32.mxu0 %vm478_vm1, %v5464_v22 }
  0xde   : > { %5029 = vmatmul.mubr.msk.f32.gmra.mrb[34].mxu1 %vm478_vm1, %v5501_v32  ;;  %4832 = vmatmul.mubr.msk.f32.gmra.mrb[84].mxu0 %vm478_vm1, %v7222_v7 }
  0xdf   : > { %5031 = vmatprep.mubr.msk.f32.mxu1 %vm478_vm1, %v5509_v35  ;;  %4834 = vmatprep.mubr.msk.f32.mxu0 %vm478_vm1, %v7223_v19 }
  0xe2   : > { %5032 = vmatmul.mubr.msk.f32.gmra.mrb[36].mxu1 %vm478_vm1, %v5535_v43  ;;  %4835 = vmatmul.mubr.msk.f32.gmra.mrb[86].mxu0 %vm478_vm1, %v5495_v31 }
  0xe3   : > { %5034 = vmatprep.mubr.msk.f32.mxu1 %vm478_vm1, %v5547_v48  ;;  %4837 = vmatprep.mubr.msk.f32.mxu0 %vm478_vm1, %v7224_v14 }
  0xe6   : > { %5035 = vmatmul.mubr.msk.f32.gmra.mrb[38].mxu1 %vm478_vm1, %v5575_v61  ;;  %4838 = vmatmul.mubr.msk.f32.gmra.mrb[88].mxu0 %vm478_vm1, %v5523_v41  ;;  %v7226_v41 = vld [vmem:[#allocation9_spill] sm:$0xff] }
  0xe7   : > { %5037 = vmatprep.mubr.msk.f32.mxu1 %vm478_vm1, %v7217_v24  ;;  %4840 = vmatprep.mubr.msk.f32.mxu0 %vm478_vm1, %v7225_v20 }
  0xe9   : > { %v4653_v22 = vpop.f32.mrb[0].mxu0 }
  0xea   : > { %v806_v25 = vsel %vm804_vm3, %v4653_v22, 0.0  ;;  %v876_v31 = vmul.f32 %v4653_v22, %v4653_v22  ;;  %978 = vst.msk [vmem:[%s6180_s14 + $0x8] sm:$0xff] %vm804_vm3, %v4653_v22  ;;  %5038 = vmatmul.mubr.msk.f32.gmra.mrb[40].mxu1 %vm478_vm1, %v5611_v37  ;;  %v645_v32 = vpop.f32.mrb[1].mxu0  ;;  %4841 = vmatmul.mubr.msk.f32.gmra.mrb[90].mxu0 %vm478_vm1, %v5544_v47 }
  0xeb   : > { %v805_v35 = vsel %vm804_vm3, %v645_v32, 0.0  ;;  %v875_v40 = vmul.f32 %v645_v32, %v645_v32  ;;  %977 = vst.msk [vmem:[%s6180_s14] sm:$0xff] %vm804_vm3, %v645_v32  ;;  %5040 = vmatprep.mubr.msk.f32.mxu1 %vm478_vm1, %v7218_v58  ;;  %4843 = vmatprep.mubr.msk.f32.mxu0 %vm478_vm1, %v7226_v41 }
  0xec   : > { %v908_v43 = vsel %vm804_vm3, %v876_v31, 0.0  ;;  %v807_v46 = vadd.f32 %v806_v25, %v805_v35 }
  0xed   : > { %v907_v48 = vsel %vm804_vm3, %v875_v40, 0.0  ;;  %v6200_v54 = vpop.f32.mrb[0].mxu1  ;;  %v4656_v47 = vpop.f32.mrb[2].mxu0 }
  0xee   : > { %v909_v61 = vadd.f32 %v908_v43, %v907_v48  ;;  %980 = vst.msk [vmem:[%s6180_s14 + $0x18] sm:$0xff] %vm804_vm3, %v4656_v47  ;;  %v6204_v10 = vpop.f32.mrb[1].mxu1  ;;  %5041 = vmatmul.mubr.msk.f32.gmra.mrb[42].mxu1 %vm478_vm1, %v5673_v45  ;;  %v655_v18 = vpop.f32.mrb[3].mxu0  ;;  %4844 = vmatmul.mubr.msk.f32.gmra.mrb[92].mxu0 %vm478_vm1, %v5589_v11  ;;  %v878_v21 = vmul.f32 %v4656_v47, %v4656_v47  ;;  %v810_v59 = vsel %vm804_vm3, %v4656_v47, 0.0 }
  0xef   : > { %v808_v37 = vsel %vm804_vm3, %v655_v18, 0.0  ;;  %v877_v39 = vmul.f32 %v655_v18, %v655_v18  ;;  %979 = vst.msk [vmem:[%s6180_s14 + $0x10] sm:$0xff] %vm804_vm3, %v655_v18  ;;  %5043 = vmatprep.mubr.msk.f32.mxu1 %vm478_vm1, %v5681_v12  ;;  %4846 = vmatprep.mubr.msk.f32.mxu0 %vm478_vm1, %v5647_v55  ;;  %v7227_v55 = vld [vmem:[#allocation11_spill] sm:$0xff] }
  0xf0   : > { %v809_v42 = vadd.f32 %v808_v37, %v807_v46  ;;  %v912_v63 = vsel %vm804_vm3, %v878_v21, 0.0 }
  0xf1   : > { %v910_v28 = vsel %vm804_vm3, %v877_v39, 0.0  ;;  %v6219_v34 = vpop.f32.mrb[2].mxu1  ;;  %v4659_v11 = vpop.f32.mrb[4].mxu0 }
  0xf2   : > { %v911_v45 = vadd.f32 %v910_v28, %v909_v61  ;;  %982 = vst.msk [vmem:[%s6180_s14 + $0x28] sm:$0xff] %vm804_vm3, %v4659_v11  ;;  %v6223_v50 = vpop.f32.mrb[3].mxu1  ;;  %5044 = vmatmul.mubr.msk.f32.gmra.mrb[44].mxu1 %vm478_vm1, %v5703_v53  ;;  %v665_v12 = vpop.f32.mrb[5].mxu0  ;;  %v811_v8 = vadd.f32 %v810_v59, %v809_v42  ;;  %4847 = vmatmul.mubr.msk.f32.gmra.mrb[94].mxu0 %vm478_vm1, %v7227_v55  ;;  %v814_v30 = vsel %vm804_vm3, %v4659_v11, 0.0 }
  0xf3   : > { %v880_v16 = vmul.f32 %v4659_v11, %v4659_v11  ;;  %v812_v60 = vsel %vm804_vm3, %v665_v12, 0.0  ;;  %v879_v3 = vmul.f32 %v665_v12, %v665_v12  ;;  %981 = vst.msk [vmem:[%s6180_s14 + $0x20] sm:$0xff] %vm804_vm3, %v665_v12  ;;  %5046 = vmatprep.mubr.msk.f32.mxu1 %vm478_vm1, %v5706_v29  ;;  %4851 = vmatprep.mubr.msk.f32.mxu0 %vm478_vm1, %v5436_v9 }
  0xf4   : > { %v813_v53 = vadd.f32 %v812_v60, %v811_v8  ;;  %v913_v57 = vadd.f32 %v912_v63, %v911_v45 }
  0xf5   : > { %v914_v24 = vsel %vm804_vm3, %v879_v3, 0.0  ;;  %v6239_v58 = vpop.f32.mrb[4].mxu1  ;;  %v4662_v13 = vpop.f32.mrb[6].mxu0  ;;  %v916_v7 = vsel %vm804_vm3, %v880_v16, 0.0 }
  0xf6   : > { %v915_v27 = vadd.f32 %v914_v24, %v913_v57  ;;  %984 = vst.msk [vmem:[%s6180_s14 + $0x38] sm:$0xff] %vm804_vm3, %v4662_v13  ;;  %v6243_v6 = vpop.f32.mrb[5].mxu1  ;;  %5047 = vmatmul.mubr.msk.f32.gmra.mrb[46].mxu1 %vm478_vm1, %v5722_v1  ;;  %v675_v29 = vpop.f32.mrb[7].mxu0  ;;  %v815_v23 = vadd.f32 %v814_v30, %v813_v53  ;;  %4852 = vmatmul.mubr.msk.f32.vlgmr.msra.gmra.mrb[64].mxu0 %vm478_vm1, %v5452_v15  ;;  %v818_v25 = vsel %vm804_vm3, %v4662_v13, 0.0 }
  0xf7   : > { %v882_v19 = vmul.f32 %v4662_v13, %v4662_v13  ;;  %v816_v14 = vsel %vm804_vm3, %v675_v29, 0.0  ;;  %v881_v20 = vmul.f32 %v675_v29, %v675_v29  ;;  %983 = vst.msk [vmem:[%s6180_s14 + $0x30] sm:$0xff] %vm804_vm3, %v675_v29  ;;  %5051 = vmatprep.mubr.msk.f32.mxu1 %vm478_vm1, %v5421_v4  ;;  %4854 = vmatprep.mubr.msk.f32.mxu0 %vm478_vm1, %v5482_v26 }
  0xf8   : > { %v817_v1 = vadd.f32 %v816_v14, %v815_v23  ;;  %v917_v22 = vadd.f32 %v916_v7, %v915_v27 }
  0xf9   : > { %v918_v31 = vsel %vm804_vm3, %v881_v20, 0.0  ;;  %v6259_v32 = vpop.f32.mrb[6].mxu1  ;;  %v4665_v35 = vpop.f32.mrb[8].mxu0  ;;  %v920_v46 = vsel %vm804_vm3, %v882_v19, 0.0 }
  0xfa   : > { %v919_v40 = vadd.f32 %v918_v31, %v917_v22  ;;  %986 = vst.msk [vmem:[%s6180_s14 + $0x48] sm:$0xff] %vm804_vm3, %v4665_v35  ;;  %v6263_v41 = vpop.f32.mrb[7].mxu1  ;;  %5052 = vmatmul.mubr.msk.f32.vlgmr.msra.gmra.mrb[16].mxu1 %vm478_vm1, %v5424_v5  ;;  %v685_v4 = vpop.f32.mrb[9].mxu0  ;;  %v819_v43 = vadd.f32 %v818_v25, %v817_v1  ;;  %4855 = vmatmul.mubr.msk.f32.gmra.mrb[66].mxu0 %vm478_vm1, %v5504_v33  ;;  %v822_v21 = vsel %vm804_vm3, %v4665_v35, 0.0 }
  0xfb   : > { %v884_v48 = vmul.f32 %v4665_v35, %v4665_v35  ;;  %v820_v47 = vsel %vm804_vm3, %v685_v4, 0.0  ;;  %v883_v61 = vmul.f32 %v685_v4, %v685_v4  ;;  %985 = vst.msk [vmem:[%s6180_s14 + $0x40] sm:$0xff] %vm804_vm3, %v685_v4  ;;  %5054 = vmatprep.mubr.msk.f32.mxu1 %vm478_vm1, %v5436_v9  ;;  %4857 = vmatprep.mubr.msk.f32.mxu0 %vm478_vm1, %v5512_v36 }
  0xfc   : > { %v821_v5 = vadd.f32 %v820_v47, %v819_v43  ;;  %v921_v18 = vadd.f32 %v920_v46, %v919_v40 }
  0xfd   : > { %v922_v37 = vsel %vm804_vm3, %v883_v61, 0.0  ;;  %v6279_v39 = vpop.f32.mrb[8].mxu1  ;;  %v4668_v42 = vpop.f32.mrb[10].mxu0  ;;  %v924_v45 = vsel %vm804_vm3, %v884_v48, 0.0 }
  0xfe   : > { %v923_v59 = vadd.f32 %v922_v37, %v921_v18  ;;  %988 = vst.msk [vmem:[%s6180_s14 + $0x58] sm:$0xff] %vm804_vm3, %v4668_v42  ;;  %v6283_v28 = vpop.f32.mrb[9].mxu1  ;;  %5055 = vmatmul.mubr.msk.f32.gmra.mrb[18].mxu1 %vm478_vm1, %v5452_v15  ;;  %v695_v9 = vpop.f32.mrb[11].mxu0  ;;  %v823_v11 = vadd.f32 %v822_v21, %v821_v5  ;;  %4858 = vmatmul.mubr.msk.f32.gmra.mrb[68].mxu0 %vm478_vm1, %v5538_v44  ;;  %v826_v16 = vsel %vm804_vm3, %v4668_v42, 0.0 }
  0xff   : > { %v886_v12 = vmul.f32 %v4668_v42, %v4668_v42  ;;  %v824_v8 = vsel %vm804_vm3, %v695_v9, 0.0  ;;  %v885_v55 = vmul.f32 %v695_v9, %v695_v9  ;;  %987 = vst.msk [vmem:[%s6180_s14 + $0x50] sm:$0xff] %vm804_vm3, %v695_v9  ;;  %5057 = vmatprep.mubr.msk.f32.mxu1 %vm478_vm1, %v5482_v26  ;;  %4860 = vmatprep.mubr.msk.f32.mxu0 %vm478_vm1, %v5550_v49 }
 0x100   : > { %v825_v15 = vadd.f32 %v824_v8, %v823_v11  ;;  %v925_v63 = vadd.f32 %v924_v45, %v923_v59 }
 0x101   : > { %v926_v60 = vsel %vm804_vm3, %v885_v55, 0.0  ;;  %v6299_v3 = vpop.f32.mrb[10].mxu1  ;;  %v4671_v53 = vpop.f32.mrb[12].mxu0  ;;  %v928_v13 = vsel %vm804_vm3, %v886_v12, 0.0 }
 0x102   : > { %v927_v57 = vadd.f32 %v926_v60, %v925_v63  ;;  %990 = vst.msk [vmem:[%s6180_s14 + $0x68] sm:$0xff] %vm804_vm3, %v4671_v53  ;;  %v6303_v30 = vpop.f32.mrb[11].mxu1  ;;  %5058 = vmatmul.mubr.msk.f32.gmra.mrb[20].mxu1 %vm478_vm1, %v5504_v33  ;;  %v705_v26 = vpop.f32.mrb[13].mxu0  ;;  %v827_v24 = vadd.f32 %v826_v16, %v825_v15  ;;  %4861 = vmatmul.mubr.msk.f32.gmra.mrb[70].mxu0 %vm478_vm1, %v5555_v52  ;;  %v830_v19 = vsel %vm804_vm3, %v4671_v53, 0.0 }
 0x103   : > { %v888_v27 = vmul.f32 %v4671_v53, %v4671_v53  ;;  %v828_v29 = vsel %vm804_vm3, %v705_v26, 0.0  ;;  %v887_v23 = vmul.f32 %v705_v26, %v705_v26  ;;  %989 = vst.msk [vmem:[%s6180_s14 + $0x60] sm:$0xff] %vm804_vm3, %v705_v26  ;;  %5060 = vmatprep.mubr.msk.f32.mxu1 %vm478_vm1, %v5512_v36  ;;  %4863 = vmatprep.mubr.msk.f32.mxu0 %vm478_vm1, %v5564_v56  ;;  %v5286_v26 = vld [vmem:[%s5418_s19 + $0xc0] sm:$0xff] }
 0x104   : > { %v829_v33 = vadd.f32 %v828_v29, %v827_v24  ;;  %v929_v7 = vadd.f32 %v928_v13, %v927_v57 }
 0x105   : > { %v930_v14 = vsel %vm804_vm3, %v887_v23, 0.0  ;;  %v6319_v20 = vpop.f32.mrb[12].mxu1  ;;  %v4674_v1 = vpop.f32.mrb[14].mxu0  ;;  %v932_v35 = vsel %vm804_vm3, %v888_v27, 0.0 }
 0x106   : > { %v931_v22 = vadd.f32 %v930_v14, %v929_v7  ;;  %992 = vst.msk [vmem:[%s6180_s14 + $0x78] sm:$0xff] %vm804_vm3, %v4674_v1  ;;  %v6323_v25 = vpop.f32.mrb[13].mxu1  ;;  %5061 = vmatmul.mubr.msk.f32.gmra.mrb[22].mxu1 %vm478_vm1, %v5538_v44  ;;  %v715_v36 = vpop.f32.mrb[15].mxu0  ;;  %v831_v31 = vadd.f32 %v830_v19, %v829_v33  ;;  %4864 = vmatmul.mubr.msk.f32.gmra.mrb[72].mxu0 %vm478_vm1, %v5578_v62  ;;  %v834_v48 = vsel %vm804_vm3, %v4674_v1, 0.0  ;;  %v5287_v7 = vld [vmem:[%s5418_s19 + $0xc8] sm:$0xff] }
 0x107   : > { %v890_v40 = vmul.f32 %v4674_v1, %v4674_v1  ;;  %v832_v4 = vsel %vm804_vm3, %v715_v36, 0.0  ;;  %v889_v43 = vmul.f32 %v715_v36, %v715_v36  ;;  %991 = vst.msk [vmem:[%s6180_s14 + $0x70] sm:$0xff] %vm804_vm3, %v715_v36  ;;  %5063 = vmatprep.mubr.msk.f32.mxu1 %vm478_vm1, %v5550_v49  ;;  %4866 = vmatprep.mubr.msk.f32.mxu0 %vm478_vm1, %v5614_v38  ;;  %v5288_v36 = vld [vmem:[%s5418_s19 + $0xd8] sm:$0xff] }
 0x108   : > { %v833_v44 = vadd.f32 %v832_v4, %v831_v31  ;;  %v933_v46 = vadd.f32 %v932_v35, %v931_v22 }
 0x109   : > { %v934_v47 = vsel %vm804_vm3, %v889_v43, 0.0  ;;  %v6339_v61 = vpop.f32.mrb[14].mxu1  ;;  %v4677_v5 = vpop.f32.mrb[16].mxu0  ;;  %v936_v42 = vsel %vm804_vm3, %v890_v40, 0.0 }
 0x10a   : > { %v935_v18 = vadd.f32 %v934_v47, %v933_v46  ;;  %994 = vst.msk [vmem:[%s6180_s14 + $0x88] sm:$0xff] %vm804_vm3, %v4677_v5  ;;  %v6343_v21 = vpop.f32.mrb[15].mxu1  ;;  %5064 = vmatmul.mubr.msk.f32.gmra.mrb[24].mxu1 %vm478_vm1, %v5555_v52  ;;  %v725_v49 = vpop.f32.mrb[17].mxu0  ;;  %v835_v37 = vadd.f32 %v834_v48, %v833_v44  ;;  %4867 = vmatmul.mubr.msk.f32.gmra.mrb[74].mxu0 %vm478_vm1, %v5628_v51  ;;  %v838_v12 = vsel %vm804_vm3, %v4677_v5, 0.0  ;;  %v5289_v46 = vld [vmem:[%s5418_s19 + $0xe0] sm:$0xff] }
 0x10b   : > { %v892_v59 = vmul.f32 %v4677_v5, %v4677_v5  ;;  %v836_v9 = vsel %vm804_vm3, %v725_v49, 0.0  ;;  %v891_v11 = vmul.f32 %v725_v49, %v725_v49  ;;  %993 = vst.msk [vmem:[%s6180_s14 + $0x80] sm:$0xff] %vm804_vm3, %v725_v49  ;;  %5066 = vmatprep.mubr.msk.f32.mxu1 %vm478_vm1, %v5564_v56  ;;  %4869 = vmatprep.mubr.msk.f32.mxu0 %vm478_vm1, %v5684_v0  ;;  %v5290_v49 = vld [vmem:[%s5418_s19 + $0xf0] sm:$0xff] }
 0x10c   : > { %v837_v52 = vadd.f32 %v836_v9, %v835_v37  ;;  %v937_v45 = vadd.f32 %v936_v42, %v935_v18 }
 0x10d   : > { %v938_v8 = vsel %vm804_vm3, %v891_v11, 0.0  ;;  %v4680_v55 = vpop.f32.mrb[18].mxu0  ;;  %v940_v16 = vsel %vm804_vm3, %v892_v59, 0.0 }
 0x10e   : > { %v939_v15 = vadd.f32 %v938_v8, %v937_v45  ;;  %996 = vst.msk [vmem:[%s6180_s14 + $0x98] sm:$0xff] %vm804_vm3, %v4680_v55  ;;  %5067 = vmatmul.mubr.msk.f32.gmra.mrb[26].mxu1 %vm478_vm1, %v5578_v62  ;;  %v735_v63 = vpop.f32.mrb[19].mxu0  ;;  %v839_v56 = vadd.f32 %v838_v12, %v837_v52  ;;  %4870 = vmatmul.mubr.msk.f32.gmra.mrb[76].mxu0 %vm478_vm1, %v5643_v17  ;;  %v842_v13 = vsel %vm804_vm3, %v4680_v55, 0.0  ;;  %v5291_v12 = vld [vmem:[%s5418_s19 + $0xf8] sm:$0xff] }
 0x10f   : > { %v894_v60 = vmul.f32 %v4680_v55, %v4680_v55  ;;  %v840_v53 = vsel %vm804_vm3, %v735_v63, 0.0  ;;  %v893_v57 = vmul.f32 %v735_v63, %v735_v63  ;;  %995 = vst.msk [vmem:[%s6180_s14 + $0x90] sm:$0xff] %vm804_vm3, %v735_v63  ;;  %5069 = vmatprep.mubr.msk.f32.mxu1 %vm478_vm1, %v5614_v38  ;;  %4872 = vmatprep.mubr.msk.f32.mxu0 %vm478_vm1, %v5286_v26 }
 0x110   : > { %v841_v62 = vadd.f32 %v840_v53, %v839_v56  ;;  %v941_v24 = vadd.f32 %v940_v16, %v939_v15  ;;  %v5292_v56 = vld [vmem:[%s5418_s19 + $0x108] sm:$0xff] }
 0x111   : > { %v942_v27 = vsel %vm804_vm3, %v893_v57, 0.0  ;;  %v4683_v29 = vpop.f32.mrb[20].mxu0  ;;  %v944_v19 = vsel %vm804_vm3, %v894_v60, 0.0 }
 0x112   : > { %v943_v23 = vadd.f32 %v942_v27, %v941_v24  ;;  %998 = vst.msk [vmem:[%s6180_s14 + $0xa8] sm:$0xff] %vm804_vm3, %v4683_v29  ;;  %5070 = vmatmul.mubr.msk.f32.gmra.mrb[28].mxu1 %vm478_vm1, %v5628_v51  ;;  %v745_v33 = vpop.f32.mrb[21].mxu0  ;;  %v843_v38 = vadd.f32 %v842_v13, %v841_v62  ;;  %4873 = vmatmul.mubr.msk.f32.gmra.mrb[78].mxu0 %vm478_vm1, %v5287_v7  ;;  %v846_v35 = vsel %vm804_vm3, %v4683_v29, 0.0  ;;  %v5293_v27 = vld [vmem:[%s5418_s19 + $0x110] sm:$0xff] }
 0x113   : > { %v896_v14 = vmul.f32 %v4683_v29, %v4683_v29  ;;  %v844_v1 = vsel %vm804_vm3, %v745_v33, 0.0  ;;  %v895_v22 = vmul.f32 %v745_v33, %v745_v33  ;;  %997 = vst.msk [vmem:[%s6180_s14 + $0xa0] sm:$0xff] %vm804_vm3, %v745_v33  ;;  %5072 = vmatprep.mubr.msk.f32.mxu1 %vm478_vm1, %v5684_v0  ;;  %4875 = vmatprep.mubr.msk.f32.mxu0 %vm478_vm1, %v5288_v36 }
 0x114   : > { %v845_v51 = vadd.f32 %v844_v1, %v843_v38  ;;  %v945_v31 = vadd.f32 %v944_v19, %v943_v23 }
 0x115   : > { %v946_v40 = vsel %vm804_vm3, %v895_v22, 0.0  ;;  %v4686_v4 = vpop.f32.mrb[22].mxu0  ;;  %v948_v48 = vsel %vm804_vm3, %v896_v14, 0.0 }
 0x116   : > { %v947_v43 = vadd.f32 %v946_v40, %v945_v31  ;;  %1000 = vst.msk [vmem:[%s6180_s14 + $0xb8] sm:$0xff] %vm804_vm3, %v4686_v4  ;;  %5073 = vmatmul.mubr.msk.f32.gmra.mrb[30].mxu1 %vm478_vm1, %v5643_v17  ;;  %v755_v44 = vpop.f32.mrb[23].mxu0  ;;  %v847_v0 = vadd.f32 %v846_v35, %v845_v51  ;;  %4876 = vmatmul.mubr.msk.f32.gmra.mrb[80].mxu0 %vm478_vm1, %v5289_v46  ;;  %v850_v42 = vsel %vm804_vm3, %v4686_v4, 0.0  ;;  %v5295_v40 = vld [vmem:[%s5418_s19 + $0x128] sm:$0xff] }
 0x117   : > { %v898_v47 = vmul.f32 %v4686_v4, %v4686_v4  ;;  %v848_v5 = vsel %vm804_vm3, %v755_v44, 0.0  ;;  %v897_v18 = vmul.f32 %v755_v44, %v755_v44  ;;  %999 = vst.msk [vmem:[%s6180_s14 + $0xb0] sm:$0xff] %vm804_vm3, %v755_v44  ;;  %5075 = vmatprep.mubr.msk.f32.mxu1 %vm478_vm1, %v5286_v26  ;;  %4878 = vmatprep.mubr.msk.f32.mxu0 %vm478_vm1, %v5290_v49 }
 0x118   : > { %v849_v17 = vadd.f32 %v848_v5, %v847_v0  ;;  %v949_v37 = vadd.f32 %v948_v48, %v947_v43 }
 0x119   : > { %v950_v59 = vsel %vm804_vm3, %v897_v18, 0.0  ;;  %v4689_v9 = vpop.f32.mrb[24].mxu0  ;;  %v952_v8 = vsel %vm804_vm3, %v898_v47, 0.0 }
 0x11a   : > { %v951_v11 = vadd.f32 %v950_v59, %v949_v37  ;;  %1002 = vst.msk [vmem:[%s6180_s14 + $0xc8] sm:$0xff] %vm804_vm3, %v4689_v9  ;;  %5076 = vmatmul.mubr.msk.f32.gmra.mrb[32].mxu1 %vm478_vm1, %v5287_v7  ;;  %v765_v52 = vpop.f32.mrb[25].mxu0  ;;  %v851_v45 = vadd.f32 %v850_v42, %v849_v17  ;;  %4879 = vmatmul.mubr.msk.f32.gmra.mrb[82].mxu0 %vm478_vm1, %v5291_v12  ;;  %v854_v53 = vsel %vm804_vm3, %v4689_v9, 0.0  ;;  %v5294_v7 = vld [vmem:[%s5418_s19 + $0x120] sm:$0xff] }
 0x11b   : > { %v900_v55 = vmul.f32 %v4689_v9, %v4689_v9  ;;  %v852_v15 = vsel %vm804_vm3, %v765_v52, 0.0  ;;  %v899_v63 = vmul.f32 %v765_v52, %v765_v52  ;;  %1001 = vst.msk [vmem:[%s6180_s14 + $0xc0] sm:$0xff] %vm804_vm3, %v765_v52  ;;  %5078 = vmatprep.mubr.msk.f32.mxu1 %vm478_vm1, %v5288_v36  ;;  %4881 = vmatprep.mubr.msk.f32.mxu0 %vm478_vm1, %v5292_v56  ;;  %v5297_v59 = vld [vmem:[%s5418_s19 + $0x140] sm:$0xff] }
 0x11c   : > { %v853_v16 = vadd.f32 %v852_v15, %v851_v45  ;;  %v953_v60 = vadd.f32 %v952_v8, %v951_v11 }
 0x11d   : > { %v954_v57 = vsel %vm804_vm3, %v899_v63, 0.0  ;;  %v4692_v26 = vpop.f32.mrb[26].mxu0  ;;  %v956_v29 = vsel %vm804_vm3, %v900_v55, 0.0 }
 0x11e   : > { %v955_v62 = vadd.f32 %v954_v57, %v953_v60  ;;  %1004 = vst.msk [vmem:[%s6180_s14 + $0xd8] sm:$0xff] %vm804_vm3, %v4692_v26  ;;  %5079 = vmatmul.mubr.msk.f32.gmra.mrb[34].mxu1 %vm478_vm1, %v5289_v46  ;;  %v775_v24 = vpop.f32.mrb[27].mxu0  ;;  %v855_v13 = vadd.f32 %v854_v53, %v853_v16  ;;  %4882 = vmatmul.mubr.msk.f32.gmra.mrb[84].mxu0 %vm478_vm1, %v5293_v27  ;;  %v858_v1 = vsel %vm804_vm3, %v4692_v26, 0.0  ;;  %v5296_v46 = vld [vmem:[%s5418_s19 + $0x138] sm:$0xff]  ;;  %v5300_v57 = vld [vmem:[%s5418_s19 + $0x168] sm:$0xff] }
 0x11f   : > { %v902_v23 = vmul.f32 %v4692_v26, %v4692_v26  ;;  %v856_v33 = vsel %vm804_vm3, %v775_v24, 0.0  ;;  %v901_v38 = vmul.f32 %v775_v24, %v775_v24  ;;  %1003 = vst.msk [vmem:[%s6180_s14 + $0xd0] sm:$0xff] %vm804_vm3, %v775_v24  ;;  %5081 = vmatprep.mubr.msk.f32.mxu1 %vm478_vm1, %v5290_v49  ;;  %4884 = vmatprep.mubr.msk.f32.mxu0 %vm478_vm1, %v5294_v7  ;;  %v5299_v60 = vld [vmem:[%s5418_s19 + $0x158] sm:$0xff]  ;;  %v5302_v24 = vld [vmem:[%s5418_s19 + $0x188] sm:$0xff] }
 0x120   : > { %v857_v19 = vadd.f32 %v856_v33, %v855_v13  ;;  %v957_v14 = vadd.f32 %v956_v29, %v955_v62  ;;  %v5301_v62 = vld [vmem:[%s5418_s19 + $0x170] sm:$0xff] }
 0x121   : > { %v958_v22 = vsel %vm804_vm3, %v901_v38, 0.0  ;;  %v4695_v36 = vpop.f32.mrb[28].mxu0  ;;  %v960_v4 = vsel %vm804_vm3, %v902_v23, 0.0 }
 0x122   : > { %v959_v51 = vadd.f32 %v958_v22, %v957_v14  ;;  %1006 = vst.msk [vmem:[%s6180_s14 + $0xe8] sm:$0xff] %vm804_vm3, %v4695_v36  ;;  %5082 = vmatmul.mubr.msk.f32.gmra.mrb[36].mxu1 %vm478_vm1, %v5291_v12  ;;  %v785_v31 = vpop.f32.mrb[29].mxu0  ;;  %v859_v35 = vadd.f32 %v858_v1, %v857_v19  ;;  %4885 = vmatmul.mubr.msk.f32.gmra.mrb[86].mxu0 %vm478_vm1, %v5295_v40  ;;  %v862_v5 = vsel %vm804_vm3, %v4695_v36, 0.0  ;;  %v5298_v12 = vld [vmem:[%s5418_s19 + $0x150] sm:$0xff] }
 0x123   : > { %v904_v43 = vmul.f32 %v4695_v36, %v4695_v36  ;;  %v860_v44 = vsel %vm804_vm3, %v785_v31, 0.0  ;;  %v903_v0 = vmul.f32 %v785_v31, %v785_v31  ;;  %1005 = vst.msk [vmem:[%s6180_s14 + $0xe0] sm:$0xff] %vm804_vm3, %v785_v31  ;;  %5084 = vmatprep.mubr.msk.f32.mxu1 %vm478_vm1, %v5292_v56  ;;  %4887 = vmatprep.mubr.msk.f32.mxu0 %vm478_vm1, %v5296_v46 }
 0x124   : > { %v861_v48 = vadd.f32 %v860_v44, %v859_v35  ;;  %v961_v47 = vadd.f32 %v960_v4, %v959_v51 }
 0x125   : > { %v962_v18 = vsel %vm804_vm3, %v903_v0, 0.0  ;;  %v4698_v49 = vpop.f32.mrb[30].mxu0  ;;  %v964_v9 = vsel %vm804_vm3, %v904_v43, 0.0 }
 0x126   : > { %v963_v17 = vadd.f32 %v962_v18, %v961_v47  ;;  %1008 = vst.msk [vmem:[%s6180_s14 + $0xf8] sm:$0xff] %vm804_vm3, %v4698_v49  ;;  %5085 = vmatmul.mubr.msk.f32.gmra.mrb[38].mxu1 %vm478_vm1, %v5293_v27  ;;  %v795_v37 = vpop.f32.mrb[31].mxu0  ;;  %v863_v42 = vadd.f32 %v862_v5, %v861_v48  ;;  %4888 = vmatmul.mubr.msk.f32.gmra.mrb[88].mxu0 %vm478_vm1, %v5297_v59  ;;  %v866_v15 = vsel %vm804_vm3, %v4698_v49, 0.0 }
 0x127   : > { %v906_v11 = vmul.f32 %v4698_v49, %v4698_v49  ;;  %v864_v52 = vsel %vm804_vm3, %v795_v37, 0.0  ;;  %v905_v45 = vmul.f32 %v795_v37, %v795_v37  ;;  %1007 = vst.msk [vmem:[%s6180_s14 + $0xf0] sm:$0xff] %vm804_vm3, %v795_v37  ;;  %5087 = vmatprep.mubr.msk.f32.mxu1 %vm478_vm1, %v5294_v7  ;;  %4890 = vmatprep.mubr.msk.f32.mxu0 %vm478_vm1, %v5298_v12 }
 0x128   : > { %v865_v8 = vadd.f32 %v864_v52, %v863_v42  ;;  %v965_v55 = vadd.f32 %v964_v9, %v963_v17 }
 0x129   : > { %v966_v63 = vsel %vm804_vm3, %v905_v45, 0.0  ;;  %v968_v53 = vsel %vm804_vm3, %v906_v11, 0.0 }
 0x12a   : > { %v6462_v56 = vadd.f32 %v866_v15, %v865_v8  ;;  %v967_v16 = vadd.f32 %v966_v63, %v965_v55  ;;  %5088 = vmatmul.mubr.msk.f32.gmra.mrb[40].mxu1 %vm478_vm1, %v5295_v40  ;;  %4891 = vmatmul.mubr.msk.f32.gmra.mrb[90].mxu0 %vm478_vm1, %v5299_v60 }
 0x12b   : > { %5090 = vmatprep.mubr.msk.f32.mxu1 %vm478_vm1, %v5296_v46  ;;  %4893 = vmatprep.mubr.msk.f32.mxu0 %vm478_vm1, %v5300_v57 }
 0x12c   : > { %v6471_v26 = vadd.f32 %v968_v53, %v967_v16 }
 0x12e   : > { %5091 = vmatmul.mubr.msk.f32.gmra.mrb[42].mxu1 %vm478_vm1, %v5297_v59  ;;  %4894 = vmatmul.mubr.msk.f32.gmra.mrb[92].mxu0 %vm478_vm1, %v5301_v62 }
 0x12f   : > { %5093 = vmatprep.mubr.msk.f32.mxu1 %vm478_vm1, %v5298_v12  ;;  %4896 = vmatprep.mubr.msk.f32.mxu0 %vm478_vm1, %v5868_v2 }
 0x132   : > { %5094 = vmatmul.mubr.msk.f32.gmra.mrb[44].mxu1 %vm478_vm1, %v5299_v60  ;;  %4897 = vmatmul.mubr.msk.f32.gmra.mrb[94].mxu0 %vm478_vm1, %v5302_v24 }
 0x133   : > { %5096 = vmatprep.mubr.msk.f32.mxu1 %vm478_vm1, %v5300_v57 }
 0x136   : > { %5097 = vmatmul.mubr.msk.f32.gmra.mrb[46].mxu1 %vm478_vm1, %v5301_v62 }
 0x149   : > { %v4727_v13 = vpop.f32.mrb[48].mxu0 }
 0x14a   : > { %v6491_v2 = vadd.f32 %v6200_v54, %v4727_v13  ;;  %v1259_v27 = vpop.f32.mrb[49].mxu0 }
 0x14b   : > { %v6494_v29 = vadd.f32 %v6204_v10, %v1259_v27 }
 0x14c   : > { %1819 = vst.msk [vmem:[%s6488_s17 + $0x88] sm:$0xff] %vm804_vm3, %v6491_v2 }
 0x14d   : > { %1818 = vst.msk [vmem:[%s6488_s17 + $0x80] sm:$0xff] %vm804_vm3, %v6494_v29  ;;  %v4730_v23 = vpop.f32.mrb[50].mxu0 }
 0x14e   : > { %v6503_v33 = vadd.f32 %v6219_v34, %v4730_v23  ;;  %v1269_v38 = vpop.f32.mrb[51].mxu0 }
 0x14f   : > { %v6506_v54 = vadd.f32 %v6223_v50, %v1269_v38 }
 0x150   : > { %1821 = vst.msk [vmem:[%s6488_s17 + $0x98] sm:$0xff] %vm804_vm3, %v6503_v33 }
 0x151   : > { %1820 = vst.msk [vmem:[%s6488_s17 + $0x90] sm:$0xff] %vm804_vm3, %v6506_v54  ;;  %v4733_v10 = vpop.f32.mrb[52].mxu0 }
 0x152   : > { %v6515_v7 = vadd.f32 %v6239_v58, %v4733_v10  ;;  %v1279_v19 = vpop.f32.mrb[53].mxu0 }
 0x153   : > { %v6518_v34 = vadd.f32 %v6243_v6, %v1279_v19 }
 0x154   : > { %1823 = vst.msk [vmem:[%s6488_s17 + $0xa8] sm:$0xff] %vm804_vm3, %v6515_v7 }
 0x155   : > { %1822 = vst.msk [vmem:[%s6488_s17 + $0xa0] sm:$0xff] %vm804_vm3, %v6518_v34  ;;  %v4736_v50 = vpop.f32.mrb[54].mxu0 }
 0x156   : > { %v6527_v14 = vadd.f32 %v6259_v32, %v4736_v50  ;;  %v1289_v1 = vpop.f32.mrb[55].mxu0 }
 0x157   : > { %v6530_v58 = vadd.f32 %v6263_v41, %v1289_v1 }
 0x158   : > { %1825 = vst.msk [vmem:[%s6488_s17 + $0xb8] sm:$0xff] %vm804_vm3, %v6527_v14 }
 0x159   : > { %1824 = vst.msk [vmem:[%s6488_s17 + $0xb0] sm:$0xff] %vm804_vm3, %v6530_v58  ;;  %v4739_v6 = vpop.f32.mrb[56].mxu0 }
 0x15a   : > { %v6539_v22 = vadd.f32 %v6279_v39, %v4739_v6  ;;  %v1299_v36 = vpop.f32.mrb[57].mxu0 }
 0x15b   : > { %v6542_v32 = vadd.f32 %v6283_v28, %v1299_v36 }
 0x15c   : > { %1827 = vst.msk [vmem:[%s6488_s17 + $0xc8] sm:$0xff] %vm804_vm3, %v6539_v22 }
 0x15d   : > { %1826 = vst.msk [vmem:[%s6488_s17 + $0xc0] sm:$0xff] %vm804_vm3, %v6542_v32  ;;  %v4742_v41 = vpop.f32.mrb[58].mxu0 }
 0x15e   : > { %v6551_v51 = vadd.f32 %v6299_v3, %v4742_v41  ;;  %v1309_v31 = vpop.f32.mrb[59].mxu0 }
 0x15f   : > { %v6554_v39 = vadd.f32 %v6303_v30, %v1309_v31 }
 0x160   : > { %1829 = vst.msk [vmem:[%s6488_s17 + $0xd8] sm:$0xff] %vm804_vm3, %v6551_v51 }
 0x161   : > { %1828 = vst.msk [vmem:[%s6488_s17 + $0xd0] sm:$0xff] %vm804_vm3, %v6554_v39  ;;  %v4745_v28 = vpop.f32.mrb[60].mxu0 }
 0x162   : > { %v6563_v35 = vadd.f32 %v6319_v20, %v4745_v28  ;;  %v1319_v40 = vpop.f32.mrb[61].mxu0 }
 0x163   : > { %v6566_v3 = vadd.f32 %v6323_v25, %v1319_v40 }
 0x164   : > { %1831 = vst.msk [vmem:[%s6488_s17 + $0xe8] sm:$0xff] %vm804_vm3, %v6563_v35 }
 0x165   : > { %1830 = vst.msk [vmem:[%s6488_s17 + $0xe0] sm:$0xff] %vm804_vm3, %v6566_v3  ;;  %v4748_v30 = vpop.f32.mrb[62].mxu0 }
 0x166   : > { %v6575_v4 = vadd.f32 %v6339_v61, %v4748_v30  ;;  %v1329_v43 = vpop.f32.mrb[63].mxu0 }
 0x167   : > { %v6578_v44 = vadd.f32 %v6343_v21, %v1329_v43 }
 0x168   : > { %1833 = vst.msk [vmem:[%s6488_s17 + $0xf8] sm:$0xff] %vm804_vm3, %v6575_v4 }
 0x169   : > { %1832 = vst.msk [vmem:[%s6488_s17 + $0xf0] sm:$0xff] %vm804_vm3, %v6578_v44  ;;  %v4753_v20 = vpop.f32.mrb[32].mxu0 }
 0x16a   : > { %v1631_v25 = vsel %vm804_vm3, %v4753_v20, 0.0  ;;  %v1701_v0 = vmul.f32 %v4753_v20, %v4753_v20  ;;  %1803 = vst.msk [vmem:[%s6488_s17 + $0x8] sm:$0xff] %vm804_vm3, %v4753_v20  ;;  %v1471_v61 = vpop.f32.mrb[33].mxu0 }
 0x16b   : > { %v1630_v46 = vsel %vm804_vm3, %v1471_v61, 0.0  ;;  %v1700_v48 = vmul.f32 %v1471_v61, %v1471_v61  ;;  %1802 = vst.msk [vmem:[%s6488_s17] sm:$0xff] %vm804_vm3, %v1471_v61 }
 0x16c   : > { %v1733_v21 = vsel %vm804_vm3, %v1701_v0, 0.0  ;;  %v1632_v47 = vadd.f32 %v1631_v25, %v1630_v46 }
 0x16d   : > { %v1732_v5 = vsel %vm804_vm3, %v1700_v48, 0.0  ;;  %v4756_v18 = vpop.f32.mrb[34].mxu0 }
 0x16e   : > { %v1734_v49 = vadd.f32 %v1733_v21, %v1732_v5  ;;  %1805 = vst.msk [vmem:[%s6488_s17 + $0x18] sm:$0xff] %vm804_vm3, %v4756_v18  ;;  %v1481_v17 = vpop.f32.mrb[35].mxu0  ;;  %v1703_v37 = vmul.f32 %v4756_v18, %v4756_v18  ;;  %v1635_v11 = vsel %vm804_vm3, %v4756_v18, 0.0 }
 0x16f   : > { %v1633_v42 = vsel %vm804_vm3, %v1481_v17, 0.0  ;;  %v1702_v59 = vmul.f32 %v1481_v17, %v1481_v17  ;;  %1804 = vst.msk [vmem:[%s6488_s17 + $0x10] sm:$0xff] %vm804_vm3, %v1481_v17 }
 0x170   : > { %v1634_v9 = vadd.f32 %v1633_v42, %v1632_v47  ;;  %v1737_v15 = vsel %vm804_vm3, %v1703_v37, 0.0 }
 0x171   : > { %v1735_v52 = vsel %vm804_vm3, %v1702_v59, 0.0  ;;  %v4759_v45 = vpop.f32.mrb[36].mxu0 }
 0x172   : > { %v1736_v12 = vadd.f32 %v1735_v52, %v1734_v49  ;;  %1807 = vst.msk [vmem:[%s6488_s17 + $0x28] sm:$0xff] %vm804_vm3, %v4759_v45  ;;  %v1491_v8 = vpop.f32.mrb[37].mxu0  ;;  %v1636_v55 = vadd.f32 %v1635_v11, %v1634_v9  ;;  %v1705_v63 = vmul.f32 %v4759_v45, %v4759_v45  ;;  %v1639_v62 = vsel %vm804_vm3, %v4759_v45, 0.0 }
 0x173   : > { %v1637_v16 = vsel %vm804_vm3, %v1491_v8, 0.0  ;;  %v1704_v60 = vmul.f32 %v1491_v8, %v1491_v8  ;;  %1806 = vst.msk [vmem:[%s6488_s17 + $0x20] sm:$0xff] %vm804_vm3, %v1491_v8 }
 0x174   : > { %v1638_v53 = vadd.f32 %v1637_v16, %v1636_v55  ;;  %v1738_v57 = vadd.f32 %v1737_v15, %v1736_v12  ;;  %v1741_v10 = vsel %vm804_vm3, %v1705_v63, 0.0 }
 0x175   : > { %v1739_v24 = vsel %vm804_vm3, %v1704_v60, 0.0  ;;  %v4762_v13 = vpop.f32.mrb[38].mxu0 }
 0x176   : > { %v1740_v27 = vadd.f32 %v1739_v24, %v1738_v57  ;;  %1809 = vst.msk [vmem:[%s6488_s17 + $0x38] sm:$0xff] %vm804_vm3, %v4762_v13  ;;  %v1501_v23 = vpop.f32.mrb[39].mxu0  ;;  %v1640_v38 = vadd.f32 %v1639_v62, %v1638_v53  ;;  %v1707_v19 = vmul.f32 %v4762_v13, %v4762_v13  ;;  %v1643_v41 = vsel %vm804_vm3, %v4762_v13, 0.0 }
 0x177   : > { %v1641_v50 = vsel %vm804_vm3, %v1501_v23, 0.0  ;;  %v1706_v1 = vmul.f32 %v1501_v23, %v1501_v23  ;;  %1808 = vst.msk [vmem:[%s6488_s17 + $0x30] sm:$0xff] %vm804_vm3, %v1501_v23 }
 0x178   : > { %v1642_v6 = vadd.f32 %v1641_v50, %v1640_v38  ;;  %v1742_v36 = vadd.f32 %v1741_v10, %v1740_v27  ;;  %v1745_v20 = vsel %vm804_vm3, %v1707_v19, 0.0 }
 0x179   : > { %v1743_v31 = vsel %vm804_vm3, %v1706_v1, 0.0  ;;  %v4765_v28 = vpop.f32.mrb[40].mxu0 }
 0x17a   : > { %v1744_v40 = vadd.f32 %v1743_v31, %v1742_v36  ;;  %1811 = vst.msk [vmem:[%s6488_s17 + $0x48] sm:$0xff] %vm804_vm3, %v4765_v28  ;;  %v1511_v30 = vpop.f32.mrb[41].mxu0  ;;  %v1644_v43 = vadd.f32 %v1643_v41, %v1642_v6  ;;  %v1709_v25 = vmul.f32 %v4765_v28, %v4765_v28  ;;  %v1647_v21 = vsel %vm804_vm3, %v4765_v28, 0.0 }
 0x17b   : > { %v1645_v0 = vsel %vm804_vm3, %v1511_v30, 0.0  ;;  %v1708_v61 = vmul.f32 %v1511_v30, %v1511_v30  ;;  %1810 = vst.msk [vmem:[%s6488_s17 + $0x40] sm:$0xff] %vm804_vm3, %v1511_v30  ;;  %v1716_v28 = vmul.f32 %v6494_v29, %v6494_v29 }
 0x17c   : > { %v1646_v46 = vadd.f32 %v1645_v0, %v1644_v43  ;;  %v1746_v48 = vadd.f32 %v1745_v20, %v1744_v40  ;;  %v1749_v37 = vsel %vm804_vm3, %v1709_v25, 0.0  ;;  %v1717_v25 = vmul.f32 %v6491_v2, %v6491_v2 }
 0x17d   : > { %v1747_v47 = vsel %vm804_vm3, %v1708_v61, 0.0  ;;  %v4768_v5 = vpop.f32.mrb[42].mxu0  ;;  %v1661_v0 = vsel %vm804_vm3, %v6494_v29, 0.0  ;;  %v1665_v29 = vsel %vm804_vm3, %v6506_v54, 0.0 }
 0x17e   : > { %v1748_v18 = vadd.f32 %v1747_v47, %v1746_v48  ;;  %1813 = vst.msk [vmem:[%s6488_s17 + $0x58] sm:$0xff] %vm804_vm3, %v4768_v5  ;;  %v1521_v49 = vpop.f32.mrb[43].mxu0  ;;  %v1648_v17 = vadd.f32 %v1647_v21, %v1646_v46  ;;  %v1711_v42 = vmul.f32 %v4768_v5, %v4768_v5  ;;  %v1651_v45 = vsel %vm804_vm3, %v4768_v5, 0.0 }
 0x17f   : > { %v1649_v59 = vsel %vm804_vm3, %v1521_v49, 0.0  ;;  %v1710_v9 = vmul.f32 %v1521_v49, %v1521_v49  ;;  %1812 = vst.msk [vmem:[%s6488_s17 + $0x50] sm:$0xff] %vm804_vm3, %v1521_v49  ;;  %v1663_v21 = vsel %vm804_vm3, %v6491_v2, 0.0  ;;  %v1763_v47 = vsel %vm804_vm3, %v1716_v28, 0.0 }
 0x180   : > { %v1650_v11 = vadd.f32 %v1649_v59, %v1648_v17  ;;  %v1750_v52 = vadd.f32 %v1749_v37, %v1748_v18  ;;  %v1753_v16 = vsel %vm804_vm3, %v1711_v42, 0.0  ;;  %v1718_v5 = vmul.f32 %v6506_v54, %v6506_v54 }
 0x181   : > { %v1751_v12 = vsel %vm804_vm3, %v1710_v9, 0.0  ;;  %v4771_v8 = vpop.f32.mrb[44].mxu0  ;;  %v1765_v17 = vsel %vm804_vm3, %v1717_v25, 0.0  ;;  %v1719_v37 = vmul.f32 %v6503_v33, %v6503_v33  ;;  %v1667_v2 = vsel %vm804_vm3, %v6503_v33, 0.0 }
 0x182   : > { %v1752_v55 = vadd.f32 %v1751_v12, %v1750_v52  ;;  %1815 = vst.msk [vmem:[%s6488_s17 + $0x68] sm:$0xff] %vm804_vm3, %v4771_v8  ;;  %v1531_v15 = vpop.f32.mrb[45].mxu0  ;;  %v1652_v63 = vadd.f32 %v1651_v45, %v1650_v11  ;;  %v1713_v60 = vmul.f32 %v4771_v8, %v4771_v8  ;;  %v1655_v13 = vsel %vm804_vm3, %v4771_v8, 0.0 }
 0x183   : > { %v1653_v53 = vsel %vm804_vm3, %v1531_v15, 0.0  ;;  %v1712_v57 = vmul.f32 %v1531_v15, %v1531_v15  ;;  %1814 = vst.msk [vmem:[%s6488_s17 + $0x60] sm:$0xff] %vm804_vm3, %v1531_v15  ;;  %v1767_v9 = vsel %vm804_vm3, %v1718_v5, 0.0  ;;  %v1720_v11 = vmul.f32 %v6518_v34, %v6518_v34 }
 0x184   : > { %v1654_v62 = vadd.f32 %v1653_v53, %v1652_v63  ;;  %v1754_v24 = vadd.f32 %v1753_v16, %v1752_v55  ;;  %v1757_v50 = vsel %vm804_vm3, %v1713_v60, 0.0  ;;  %v1769_v12 = vsel %vm804_vm3, %v1719_v37, 0.0 }
 0x185   : > { %v1755_v27 = vsel %vm804_vm3, %v1712_v57, 0.0  ;;  %v4774_v23 = vpop.f32.mrb[46].mxu0  ;;  %v1721_v8 = vmul.f32 %v6515_v7, %v6515_v7  ;;  %v1669_v54 = vsel %vm804_vm3, %v6518_v34, 0.0  ;;  %v1671_v33 = vsel %vm804_vm3, %v6515_v7, 0.0 }
 0x186   : > { %v1756_v38 = vadd.f32 %v1755_v27, %v1754_v24  ;;  %1817 = vst.msk [vmem:[%s6488_s17 + $0x78] sm:$0xff] %vm804_vm3, %v4774_v23  ;;  %v1541_v10 = vpop.f32.mrb[47].mxu0  ;;  %v1656_v19 = vadd.f32 %v1655_v13, %v1654_v62  ;;  %v1715_v1 = vmul.f32 %v4774_v23, %v4774_v23  ;;  %v1659_v40 = vsel %vm804_vm3, %v4774_v23, 0.0 }
 0x187   : > { %v1657_v6 = vsel %vm804_vm3, %v1541_v10, 0.0  ;;  %v1714_v36 = vmul.f32 %v1541_v10, %v1541_v10  ;;  %1816 = vst.msk [vmem:[%s6488_s17 + $0x70] sm:$0xff] %vm804_vm3, %v1541_v10  ;;  %v1771_v63 = vsel %vm804_vm3, %v1720_v11, 0.0  ;;  %v1722_v16 = vmul.f32 %v6530_v58, %v6530_v58 }
 0x188   : > { %v1658_v41 = vadd.f32 %v1657_v6, %v1656_v19  ;;  %v1758_v31 = vadd.f32 %v1757_v50, %v1756_v38  ;;  %v1761_v61 = vsel %vm804_vm3, %v1715_v1, 0.0  ;;  %v1773_v57 = vsel %vm804_vm3, %v1721_v8, 0.0 }
 0x189   : > { %v1759_v30 = vsel %vm804_vm3, %v1714_v36, 0.0  ;;  %v1723_v62 = vmul.f32 %v6527_v14, %v6527_v14  ;;  %v1673_v34 = vsel %vm804_vm3, %v6530_v58, 0.0  ;;  %v1675_v7 = vsel %vm804_vm3, %v6527_v14, 0.0 }
 0x18a   : > { %v1660_v43 = vadd.f32 %v1659_v40, %v1658_v41  ;;  %v1760_v20 = vadd.f32 %v1759_v30, %v1758_v31  ;;  %v1775_v27 = vsel %vm804_vm3, %v1722_v16, 0.0  ;;  %v1724_v23 = vmul.f32 %v6542_v32, %v6542_v32 }
 0x18b   : > { %v1777_v19 = vsel %vm804_vm3, %v1723_v62, 0.0  ;;  %v1725_v50 = vmul.f32 %v6539_v22, %v6539_v22  ;;  %v1677_v58 = vsel %vm804_vm3, %v6542_v32, 0.0  ;;  %v1679_v14 = vsel %vm804_vm3, %v6539_v22, 0.0 }
 0x18c   : > { %v1662_v46 = vadd.f32 %v1661_v0, %v1660_v43  ;;  %v1762_v48 = vadd.f32 %v1761_v61, %v1760_v20  ;;  %v1779_v36 = vsel %vm804_vm3, %v1724_v23, 0.0  ;;  %v1726_v41 = vmul.f32 %v6554_v39, %v6554_v39 }
 0x18d   : > { %v1781_v40 = vsel %vm804_vm3, %v1725_v50, 0.0  ;;  %v1727_v30 = vmul.f32 %v6551_v51, %v6551_v51  ;;  %v1681_v32 = vsel %vm804_vm3, %v6554_v39, 0.0  ;;  %v1683_v22 = vsel %vm804_vm3, %v6551_v51, 0.0 }
 0x18e   : > { %v1664_v18 = vadd.f32 %v1663_v21, %v1662_v46  ;;  %v1764_v49 = vadd.f32 %v1763_v47, %v1762_v48  ;;  %v1783_v25 = vsel %vm804_vm3, %v1726_v41, 0.0  ;;  %v1728_v0 = vmul.f32 %v6566_v3, %v6566_v3 }
 0x18f   : > { %v868_v61 = vrot.slane %v6462_v56, 4  ;;  %v1785_v21 = vsel %vm804_vm3, %v1727_v30, 0.0  ;;  %v1729_v47 = vmul.f32 %v6563_v35, %v6563_v35  ;;  %v1685_v39 = vsel %vm804_vm3, %v6566_v3, 0.0 }
 0x190   : > { %v1666_v42 = vadd.f32 %v1665_v29, %v1664_v18  ;;  %v1766_v59 = vadd.f32 %v1765_v17, %v1764_v49  ;;  %v970_v5 = vrot.slane %v6471_v26, 4  ;;  %v1687_v49 = vsel %vm804_vm3, %v6563_v35, 0.0 }
 0x191   : > { %v1787_v17 = vsel %vm804_vm3, %v1728_v0, 0.0  ;;  %v1730_v37 = vmul.f32 %v6578_v44, %v6578_v44  ;;  %v869_v29 = vadd.f32 %v868_v61, %v6462_v56  ;;  %v1731_v3 = vmul.f32 %v6575_v4, %v6575_v4 }
 0x192   : > { %v1668_v52 = vadd.f32 %v1667_v2, %v1666_v42  ;;  %v1768_v45 = vadd.f32 %v1767_v9, %v1766_v59  ;;  %v1789_v2 = vsel %vm804_vm3, %v1729_v47, 0.0  ;;  %v1689_v9 = vsel %vm804_vm3, %v6578_v44, 0.0 }
 0x193   : > { %v971_v11 = vadd.f32 %v970_v5, %v6471_v26  ;;  %v870_v56 = vrot.slane %v869_v29, 2 }
 0x194   : > { %v1670_v55 = vadd.f32 %v1669_v54, %v1668_v52  ;;  %v1770_v15 = vadd.f32 %v1769_v12, %v1768_v45  ;;  %v1691_v45 = vsel %vm804_vm3, %v6575_v4, 0.0  ;;  %v1791_v12 = vsel %vm804_vm3, %v1730_v37, 0.0 }
 0x195   : > { %v871_v16 = vadd.f32 %v870_v56, %v869_v29 }
 0x196   : > { %v1672_v60 = vadd.f32 %v1671_v33, %v1670_v55  ;;  %v1772_v53 = vadd.f32 %v1771_v63, %v1770_v15  ;;  %v1793_v55 = vsel %vm804_vm3, %v1731_v3, 0.0  ;;  %v972_v15 = vrot.slane %v971_v11, 2 }
 0x197   : > { %v872_v62 = vrot.slane %v871_v16, 1 }
 0x198   : > { %v1674_v24 = vadd.f32 %v1673_v34, %v1672_v60  ;;  %v1774_v13 = vadd.f32 %v1773_v57, %v1772_v53  ;;  %v973_v53 = vadd.f32 %v972_v15, %v971_v11 }
 0x19a   : > { %v1676_v38 = vadd.f32 %v1675_v7, %v1674_v24  ;;  %v1776_v10 = vadd.f32 %v1775_v27, %v1774_v13  ;;  %v974_v24 = vrot.slane %v973_v53, 1  ;;  %v873_v27 = vadd.f32 %v872_v62, %v871_v16 }
 0x19c   : > { %v1678_v1 = vadd.f32 %v1677_v58, %v1676_v38  ;;  %v1778_v6 = vadd.f32 %v1777_v19, %v1776_v10  ;;  %v975_v10 = vadd.f32 %v974_v24, %v973_v53 }
 0x19e   : > { %v1680_v31 = vadd.f32 %v1679_v14, %v1678_v1  ;;  %v1780_v28 = vadd.f32 %v1779_v36, %v1778_v6 }
 0x1a0   : > { %v1682_v43 = vadd.f32 %v1681_v32, %v1680_v31  ;;  %v1782_v20 = vadd.f32 %v1781_v40, %v1780_v28 }
 0x1a2   : > { %v1684_v46 = vadd.f32 %v1683_v22, %v1682_v43  ;;  %v1784_v48 = vadd.f32 %v1783_v25, %v1782_v20 }
 0x1a4   : > { %v1786_v51 = vadd.f32 %v1785_v21, %v1784_v48  ;;  %v1686_v18 = vadd.f32 %v1685_v39, %v1684_v46 }
 0x1a6   : > { %v1688_v42 = vadd.f32 %v1687_v49, %v1686_v18  ;;  %v1788_v59 = vadd.f32 %v1787_v17, %v1786_v51 }
 0x1a8   : > { %v1690_v35 = vadd.f32 %v1689_v9, %v1688_v42  ;;  %v1790_v52 = vadd.f32 %v1789_v2, %v1788_v59 }
 0x1aa   : > { %v1692_v8 = vadd.f32 %v1691_v45, %v1690_v35  ;;  %v1792_v54 = vadd.f32 %v1791_v12, %v1790_v52 }
 0x1ac   : > { %v1693_v33 = vrot.slane %v1692_v8, 4  ;;  %v1794_v63 = vadd.f32 %v1793_v55, %v1792_v54 }
 0x1ae   : > { %v1694_v60 = vadd.f32 %v1693_v33, %v1692_v8  ;;  %v1795_v44 = vrot.slane %v1794_v63, 4 }
 0x1b0   : > { %v1695_v26 = vrot.slane %v1694_v60, 2  ;;  %v1796_v57 = vadd.f32 %v1795_v44, %v1794_v63 }
 0x1b2   : > { %v1696_v34 = vadd.f32 %v1695_v26, %v1694_v60  ;;  %v1797_v4 = vrot.slane %v1796_v57, 2 }
 0x1b4   : > { %v1697_v13 = vrot.slane %v1696_v34, 1  ;;  %v1798_v7 = vadd.f32 %v1797_v4, %v1796_v57 }
 0x1b6   : > { %v1698_v23 = vadd.f32 %v1697_v13, %v1696_v34  ;;  %v1799_v38 = vrot.slane %v1798_v7, 1 }
 0x1b8   : > { %v6734_v19 = vadd.f32 %v1698_v23, %v873_v27  ;;  %v1800_v50 = vadd.f32 %v1799_v38, %v1798_v7 }
 0x1ba   : > { %v6736_v58 = vadd.f32 %v1800_v50, %v975_v10 }
 0x1c9   : > { %v4853_v1 = vpop.f32.mrb[64].mxu0 }
 0x1ca   : > { %v2301_v6 = vsel %vm804_vm3, %v4853_v1, 0.0  ;;  %v2371_v14 = vmul.f32 %v4853_v1, %v4853_v1  ;;  %2473 = vst.msk [vmem:[%s6742_s20 + $0x8] sm:$0xff] %vm804_vm3, %v4853_v1  ;;  %v2141_v36 = vpop.f32.mrb[65].mxu0 }
 0x1cb   : > { %v2300_v41 = vsel %vm804_vm3, %v2141_v36, 0.0  ;;  %v2370_v31 = vmul.f32 %v2141_v36, %v2141_v36  ;;  %2472 = vst.msk [vmem:[%s6742_s20] sm:$0xff] %vm804_vm3, %v2141_v36 }
 0x1cc   : > { %v2403_v28 = vsel %vm804_vm3, %v2371_v14, 0.0  ;;  %v2302_v40 = vadd.f32 %v2301_v6, %v2300_v41 }
 0x1cd   : > { %v2402_v30 = vsel %vm804_vm3, %v2370_v31, 0.0  ;;  %v5053_v32 = vpop.f32.mrb[16].mxu1  ;;  %v4856_v43 = vpop.f32.mrb[66].mxu0 }
 0x1ce   : > { %v2404_v20 = vadd.f32 %v2403_v28, %v2402_v30  ;;  %v3499_v22 = vsel %vm804_vm3, %v5053_v32, 0.0  ;;  %v3569_v25 = vmul.f32 %v5053_v32, %v5053_v32  ;;  %3671 = vst.msk [vmem:[%s6754_s23 + $0x8] sm:$0xff] %vm804_vm3, %v5053_v32  ;;  %2475 = vst.msk [vmem:[%s6742_s20 + $0x18] sm:$0xff] %vm804_vm3, %v4856_v43  ;;  %v3307_v0 = vpop.f32.mrb[17].mxu1  ;;  %v2151_v61 = vpop.f32.mrb[67].mxu0  ;;  %v2373_v46 = vmul.f32 %v4856_v43, %v4856_v43 }
 0x1cf   : > { %v3498_v48 = vsel %vm804_vm3, %v3307_v0, 0.0  ;;  %v3568_v21 = vmul.f32 %v3307_v0, %v3307_v0  ;;  %3670 = vst.msk [vmem:[%s6754_s23] sm:$0xff] %vm804_vm3, %v3307_v0  ;;  %v2303_v47 = vsel %vm804_vm3, %v2151_v61, 0.0  ;;  %2474 = vst.msk [vmem:[%s6742_s20 + $0x10] sm:$0xff] %vm804_vm3, %v2151_v61  ;;  %v2372_v18 = vmul.f32 %v2151_v61, %v2151_v61 }
 0x1d0   : > { %v3601_v39 = vsel %vm804_vm3, %v3569_v25, 0.0  ;;  %v3500_v5 = vadd.f32 %v3499_v22, %v3498_v48  ;;  %v2304_v51 = vadd.f32 %v2303_v47, %v2302_v40  ;;  %v2305_v9 = vsel %vm804_vm3, %v4856_v43, 0.0 }
 0x1d1   : > { %v3600_v49 = vsel %vm804_vm3, %v3568_v21, 0.0  ;;  %v5056_v17 = vpop.f32.mrb[18].mxu1  ;;  %v4859_v37 = vpop.f32.mrb[68].mxu0  ;;  %v2405_v42 = vsel %vm804_vm3, %v2372_v18, 0.0  ;;  %v2407_v45 = vsel %vm804_vm3, %v2373_v46, 0.0 }
 0x1d2   : > { %v3602_v29 = vadd.f32 %v3601_v39, %v3600_v49  ;;  %v3571_v59 = vmul.f32 %v5056_v17, %v5056_v17  ;;  %3673 = vst.msk [vmem:[%s6754_s23 + $0x18] sm:$0xff] %vm804_vm3, %v5056_v17  ;;  %2477 = vst.msk [vmem:[%s6742_s20 + $0x28] sm:$0xff] %vm804_vm3, %v4859_v37  ;;  %v3317_v2 = vpop.f32.mrb[19].mxu1  ;;  %v2161_v3 = vpop.f32.mrb[69].mxu0  ;;  %v2406_v11 = vadd.f32 %v2405_v42, %v2404_v20  ;;  %v3503_v54 = vsel %vm804_vm3, %v5056_v17, 0.0 }
 0x1d3   : > { %v2375_v35 = vmul.f32 %v4859_v37, %v4859_v37  ;;  %v3501_v52 = vsel %vm804_vm3, %v3317_v2, 0.0  ;;  %3672 = vst.msk [vmem:[%s6754_s23 + $0x10] sm:$0xff] %vm804_vm3, %v3317_v2  ;;  %2476 = vst.msk [vmem:[%s6742_s20 + $0x20] sm:$0xff] %vm804_vm3, %v2161_v3  ;;  %v3570_v56 = vmul.f32 %v3317_v2, %v3317_v2  ;;  %v2306_v8 = vadd.f32 %v2305_v9, %v2304_v51 }
 0x1d4   : > { %v3502_v12 = vadd.f32 %v3501_v52, %v3500_v5  ;;  %v2307_v55 = vsel %vm804_vm3, %v2161_v3, 0.0  ;;  %v2374_v15 = vmul.f32 %v2161_v3, %v2161_v3  ;;  %v2408_v33 = vadd.f32 %v2407_v45, %v2406_v11 }
 0x1d5   : > { %v5059_v63 = vpop.f32.mrb[20].mxu1  ;;  %v4862_v16 = vpop.f32.mrb[70].mxu0  ;;  %v3605_v60 = vsel %vm804_vm3, %v3571_v59, 0.0  ;;  %v2309_v44 = vsel %vm804_vm3, %v4859_v37, 0.0  ;;  %v3603_v53 = vsel %vm804_vm3, %v3570_v56, 0.0  ;;  %v2308_v26 = vadd.f32 %v2307_v55, %v2306_v8 }
 0x1d6   : > { %3675 = vst.msk [vmem:[%s6754_s23 + $0x28] sm:$0xff] %vm804_vm3, %v5059_v63  ;;  %2479 = vst.msk [vmem:[%s6742_s20 + $0x38] sm:$0xff] %vm804_vm3, %v4862_v16  ;;  %v3327_v57 = vpop.f32.mrb[21].mxu1  ;;  %v2171_v62 = vpop.f32.mrb[71].mxu0  ;;  %v2411_v34 = vsel %vm804_vm3, %v2375_v35, 0.0  ;;  %v3604_v4 = vadd.f32 %v3603_v53, %v3602_v29  ;;  %v2409_v24 = vsel %vm804_vm3, %v2374_v15, 0.0  ;;  %v3573_v13 = vmul.f32 %v5059_v63, %v5059_v63 }
 0x1d7   : > { %3674 = vst.msk [vmem:[%s6754_s23 + $0x20] sm:$0xff] %vm804_vm3, %v3327_v57  ;;  %2478 = vst.msk [vmem:[%s6742_s20 + $0x30] sm:$0xff] %vm804_vm3, %v2171_v62  ;;  %v2410_v7 = vadd.f32 %v2409_v24, %v2408_v33  ;;  %v2377_v27 = vmul.f32 %v4862_v16, %v4862_v16  ;;  %v3504_v23 = vadd.f32 %v3503_v54, %v3502_v12  ;;  %v3505_v38 = vsel %vm804_vm3, %v3327_v57, 0.0 }
 0x1d8   : > { %v3507_v10 = vsel %vm804_vm3, %v5059_v63, 0.0  ;;  %v3572_v50 = vmul.f32 %v3327_v57, %v3327_v57  ;;  %v3606_v1 = vadd.f32 %v3605_v60, %v3604_v4  ;;  %v2310_v6 = vadd.f32 %v2309_v44, %v2308_v26 }
 0x1d9   : > { %v5062_v14 = vpop.f32.mrb[22].mxu1  ;;  %v4865_v36 = vpop.f32.mrb[72].mxu0  ;;  %v3506_v41 = vadd.f32 %v3505_v38, %v3504_v23  ;;  %v2311_v31 = vsel %vm804_vm3, %v2171_v62, 0.0  ;;  %v2376_v28 = vmul.f32 %v2171_v62, %v2171_v62  ;;  %v2412_v40 = vadd.f32 %v2411_v34, %v2410_v7 }
 0x1da   : > { %3677 = vst.msk [vmem:[%s6754_s23 + $0x38] sm:$0xff] %vm804_vm3, %v5062_v14  ;;  %2481 = vst.msk [vmem:[%s6742_s20 + $0x48] sm:$0xff] %vm804_vm3, %v4865_v36  ;;  %v3337_v30 = vpop.f32.mrb[23].mxu1  ;;  %v2181_v32 = vpop.f32.mrb[73].mxu0  ;;  %v3609_v43 = vsel %vm804_vm3, %v3573_v13, 0.0  ;;  %v2313_v20 = vsel %vm804_vm3, %v4862_v16, 0.0  ;;  %v2312_v25 = vadd.f32 %v2311_v31, %v2310_v6  ;;  %v3575_v48 = vmul.f32 %v5062_v14, %v5062_v14 }
 0x1db   : > { %v3607_v22 = vsel %vm804_vm3, %v3572_v50, 0.0  ;;  %3676 = vst.msk [vmem:[%s6754_s23 + $0x30] sm:$0xff] %vm804_vm3, %v3337_v30  ;;  %2480 = vst.msk [vmem:[%s6742_s20 + $0x40] sm:$0xff] %vm804_vm3, %v2181_v32  ;;  %v2415_v0 = vsel %vm804_vm3, %v2377_v27, 0.0  ;;  %v2413_v46 = vsel %vm804_vm3, %v2376_v28, 0.0  ;;  %v2379_v47 = vmul.f32 %v4865_v36, %v4865_v36 }
 0x1dc   : > { %v3608_v61 = vadd.f32 %v3607_v22, %v3606_v1  ;;  %v2414_v21 = vadd.f32 %v2413_v46, %v2412_v40  ;;  %v3508_v39 = vadd.f32 %v3507_v10, %v3506_v41  ;;  %v3509_v5 = vsel %vm804_vm3, %v3337_v30, 0.0 }
 0x1dd   : > { %v5065_v51 = vpop.f32.mrb[24].mxu1  ;;  %v4868_v18 = vpop.f32.mrb[74].mxu0  ;;  %v3511_v49 = vsel %vm804_vm3, %v5062_v14, 0.0  ;;  %v3574_v17 = vmul.f32 %v3337_v30, %v3337_v30  ;;  %v2314_v29 = vadd.f32 %v2313_v20, %v2312_v25  ;;  %v2315_v3 = vsel %vm804_vm3, %v2181_v32, 0.0 }
 0x1de   : > { %v3610_v37 = vadd.f32 %v3609_v43, %v3608_v61  ;;  %3679 = vst.msk [vmem:[%s6754_s23 + $0x48] sm:$0xff] %vm804_vm3, %v5065_v51  ;;  %2483 = vst.msk [vmem:[%s6742_s20 + $0x58] sm:$0xff] %vm804_vm3, %v4868_v18  ;;  %v3347_v42 = vpop.f32.mrb[25].mxu1  ;;  %v2191_v59 = vpop.f32.mrb[75].mxu0  ;;  %v3510_v2 = vadd.f32 %v3509_v5, %v3508_v39  ;;  %v2378_v9 = vmul.f32 %v2181_v32, %v2181_v32  ;;  %v3613_v35 = vsel %vm804_vm3, %v3575_v48, 0.0 }
 0x1df   : > { %v2416_v11 = vadd.f32 %v2415_v0, %v2414_v21  ;;  %3678 = vst.msk [vmem:[%s6754_s23 + $0x40] sm:$0xff] %vm804_vm3, %v3347_v42  ;;  %2482 = vst.msk [vmem:[%s6742_s20 + $0x50] sm:$0xff] %vm804_vm3, %v2191_v59  ;;  %v2317_v52 = vsel %vm804_vm3, %v4865_v36, 0.0  ;;  %v3611_v45 = vsel %vm804_vm3, %v3574_v17, 0.0  ;;  %v2316_v12 = vadd.f32 %v2315_v3, %v2314_v29 }
 0x1e0   : > { %v2419_v56 = vsel %vm804_vm3, %v2379_v47, 0.0  ;;  %v3612_v8 = vadd.f32 %v3611_v45, %v3610_v37  ;;  %v2417_v54 = vsel %vm804_vm3, %v2378_v9, 0.0  ;;  %v3577_v55 = vmul.f32 %v5065_v51, %v5065_v51 }
 0x1e1   : > { %v5068_v15 = vpop.f32.mrb[26].mxu1  ;;  %v4871_v33 = vpop.f32.mrb[76].mxu0  ;;  %v2418_v63 = vadd.f32 %v2417_v54, %v2416_v11  ;;  %v2381_v16 = vmul.f32 %v4868_v18, %v4868_v18  ;;  %v3512_v60 = vadd.f32 %v3511_v49, %v3510_v2  ;;  %v3513_v44 = vsel %vm804_vm3, %v3347_v42, 0.0 }
 0x1e2   : > { %3681 = vst.msk [vmem:[%s6754_s23 + $0x58] sm:$0xff] %vm804_vm3, %v5068_v15  ;;  %2485 = vst.msk [vmem:[%s6742_s20 + $0x68] sm:$0xff] %vm804_vm3, %v4871_v33  ;;  %v3357_v53 = vpop.f32.mrb[27].mxu1  ;;  %v2201_v26 = vpop.f32.mrb[77].mxu0  ;;  %v3515_v57 = vsel %vm804_vm3, %v5065_v51, 0.0  ;;  %v3576_v62 = vmul.f32 %v3347_v42, %v3347_v42  ;;  %v3614_v34 = vadd.f32 %v3613_v35, %v3612_v8  ;;  %v2318_v4 = vadd.f32 %v2317_v52, %v2316_v12 }
 0x1e3   : > { %3680 = vst.msk [vmem:[%s6754_s23 + $0x50] sm:$0xff] %vm804_vm3, %v3357_v53  ;;  %2484 = vst.msk [vmem:[%s6742_s20 + $0x60] sm:$0xff] %vm804_vm3, %v2201_v26  ;;  %v3514_v24 = vadd.f32 %v3513_v44, %v3512_v60  ;;  %v2319_v13 = vsel %vm804_vm3, %v2191_v59, 0.0  ;;  %v2380_v7 = vmul.f32 %v2191_v59, %v2191_v59  ;;  %v2420_v27 = vadd.f32 %v2419_v56, %v2418_v63 }
 0x1e4   : > { %v3617_v23 = vsel %vm804_vm3, %v3577_v55, 0.0  ;;  %v2321_v38 = vsel %vm804_vm3, %v4868_v18, 0.0  ;;  %v3615_v10 = vsel %vm804_vm3, %v3576_v62, 0.0  ;;  %v2320_v50 = vadd.f32 %v2319_v13, %v2318_v4 }
 0x1e5   : > { %v5071_v1 = vpop.f32.mrb[28].mxu1  ;;  %v4874_v6 = vpop.f32.mrb[78].mxu0  ;;  %v2423_v14 = vsel %vm804_vm3, %v2381_v16, 0.0  ;;  %v3616_v36 = vadd.f32 %v3615_v10, %v3614_v34  ;;  %v2421_v41 = vsel %vm804_vm3, %v2380_v7, 0.0  ;;  %v3579_v31 = vmul.f32 %v5068_v15, %v5068_v15 }
 0x1e6   : > { %3683 = vst.msk [vmem:[%s6754_s23 + $0x68] sm:$0xff] %vm804_vm3, %v5071_v1  ;;  %2487 = vst.msk [vmem:[%s6742_s20 + $0x78] sm:$0xff] %vm804_vm3, %v4874_v6  ;;  %v3367_v28 = vpop.f32.mrb[29].mxu1  ;;  %v2211_v40 = vpop.f32.mrb[79].mxu0  ;;  %v2422_v30 = vadd.f32 %v2421_v41, %v2420_v27  ;;  %v2383_v32 = vmul.f32 %v4871_v33, %v4871_v33  ;;  %v3516_v43 = vadd.f32 %v3515_v57, %v3514_v24  ;;  %v3517_v20 = vsel %vm804_vm3, %v3357_v53, 0.0 }
 0x1e7   : > { %3682 = vst.msk [vmem:[%s6754_s23 + $0x60] sm:$0xff] %vm804_vm3, %v3367_v28  ;;  %2486 = vst.msk [vmem:[%s6742_s20 + $0x70] sm:$0xff] %vm804_vm3, %v2211_v40  ;;  %v3519_v22 = vsel %vm804_vm3, %v5068_v15, 0.0  ;;  %v3578_v25 = vmul.f32 %v3357_v53, %v3357_v53  ;;  %v3618_v0 = vadd.f32 %v3617_v23, %v3616_v36  ;;  %v2322_v61 = vadd.f32 %v2321_v38, %v2320_v50 }
 0x1e8   : > { %v3518_v46 = vadd.f32 %v3517_v20, %v3516_v43  ;;  %v2323_v48 = vsel %vm804_vm3, %v2201_v26, 0.0  ;;  %v2382_v21 = vmul.f32 %v2201_v26, %v2201_v26  ;;  %v2424_v47 = vadd.f32 %v2423_v14, %v2422_v30 }
 0x1e9   : > { %v5074_v39 = vpop.f32.mrb[30].mxu1  ;;  %v6857_v5 = vpop.f32.mrb[80].mxu0  ;;  %v3621_v51 = vsel %vm804_vm3, %v3579_v31, 0.0  ;;  %v2325_v18 = vsel %vm804_vm3, %v4871_v33, 0.0  ;;  %v3619_v49 = vsel %vm804_vm3, %v3578_v25, 0.0  ;;  %v2324_v17 = vadd.f32 %v2323_v48, %v2322_v61 }
 0x1ea   : > { %3685 = vst.msk [vmem:[%s6754_s23 + $0x78] sm:$0xff] %vm804_vm3, %v5074_v39  ;;  %2489 = vst.msk [vmem:[%s6742_s20 + $0x88] sm:$0xff] %vm804_vm3, %v6857_v5  ;;  %v3377_v37 = vpop.f32.mrb[31].mxu1  ;;  %v2221_v29 = vpop.f32.mrb[81].mxu0  ;;  %v2427_v42 = vsel %vm804_vm3, %v2383_v32, 0.0  ;;  %v3620_v59 = vadd.f32 %v3619_v49, %v3618_v0  ;;  %v2425_v2 = vsel %vm804_vm3, %v2382_v21, 0.0  ;;  %v3581_v3 = vmul.f32 %v5071_v1, %v5071_v1 }
 0x1eb   : > { %3684 = vst.msk [vmem:[%s6754_s23 + $0x70] sm:$0xff] %vm804_vm3, %v3377_v37  ;;  %2488 = vst.msk [vmem:[%s6742_s20 + $0x80] sm:$0xff] %vm804_vm3, %v2221_v29  ;;  %v2426_v9 = vadd.f32 %v2425_v2, %v2424_v47  ;;  %v2385_v11 = vmul.f32 %v4874_v6, %v4874_v6  ;;  %v3520_v35 = vadd.f32 %v3519_v22, %v3518_v46  ;;  %v3521_v52 = vsel %vm804_vm3, %v3367_v28, 0.0 }
 0x1ec   : > { %v3523_v45 = vsel %vm804_vm3, %v5071_v1, 0.0  ;;  %v3580_v12 = vmul.f32 %v3367_v28, %v3367_v28  ;;  %v3622_v56 = vadd.f32 %v3621_v51, %v3620_v59  ;;  %v2326_v8 = vadd.f32 %v2325_v18, %v2324_v17 }
 0x1ed   : > { %v5077_v54 = vpop.f32.mrb[32].mxu1  ;;  %v6875_v55 = vpop.f32.mrb[82].mxu0  ;;  %v3522_v15 = vadd.f32 %v3521_v52, %v3520_v35  ;;  %v2327_v33 = vsel %vm804_vm3, %v2211_v40, 0.0  ;;  %v2384_v63 = vmul.f32 %v2211_v40, %v2211_v40  ;;  %v2428_v16 = vadd.f32 %v2427_v42, %v2426_v9 }
 0x1ee   : > { %3687 = vst.msk [vmem:[%s6754_s23 + $0x88] sm:$0xff] %vm804_vm3, %v5077_v54  ;;  %2491 = vst.msk [vmem:[%s6742_s20 + $0x98] sm:$0xff] %vm804_vm3, %v6875_v55  ;;  %v3387_v60 = vpop.f32.mrb[33].mxu1  ;;  %v2231_v44 = vpop.f32.mrb[83].mxu0  ;;  %v3625_v53 = vsel %vm804_vm3, %v3581_v3, 0.0  ;;  %v2329_v26 = vsel %vm804_vm3, %v4874_v6, 0.0  ;;  %v2328_v62 = vadd.f32 %v2327_v33, %v2326_v8  ;;  %v3583_v13 = vmul.f32 %v5074_v39, %v5074_v39 }
 0x1ef   : > { %v3623_v57 = vsel %vm804_vm3, %v3580_v12, 0.0  ;;  %3686 = vst.msk [vmem:[%s6754_s23 + $0x80] sm:$0xff] %vm804_vm3, %v3387_v60  ;;  %2490 = vst.msk [vmem:[%s6742_s20 + $0x90] sm:$0xff] %vm804_vm3, %v2231_v44  ;;  %v2431_v34 = vsel %vm804_vm3, %v2385_v11, 0.0  ;;  %v2429_v24 = vsel %vm804_vm3, %v2384_v63, 0.0  ;;  %v2387_v27 = vmul.f32 %v6857_v5, %v6857_v5 }
 0x1f0   : > { %v3624_v4 = vadd.f32 %v3623_v57, %v3622_v56  ;;  %v2430_v7 = vadd.f32 %v2429_v24, %v2428_v16  ;;  %v3524_v23 = vadd.f32 %v3523_v45, %v3522_v15  ;;  %v3525_v38 = vsel %vm804_vm3, %v3377_v37, 0.0 }
 0x1f1   : > { %v6895_v10 = vpop.f32.mrb[34].mxu1  ;;  %v6897_v50 = vpop.f32.mrb[84].mxu0  ;;  %v3527_v1 = vsel %vm804_vm3, %v5074_v39, 0.0  ;;  %v3582_v6 = vmul.f32 %v3377_v37, %v3377_v37  ;;  %v2330_v36 = vadd.f32 %v2329_v26, %v2328_v62  ;;  %v2331_v40 = vsel %vm804_vm3, %v2221_v29, 0.0 }
 0x1f2   : > { %v3626_v14 = vadd.f32 %v3625_v53, %v3624_v4  ;;  %3689 = vst.msk [vmem:[%s6754_s23 + $0x98] sm:$0xff] %vm804_vm3, %v6895_v10  ;;  %2493 = vst.msk [vmem:[%s6742_s20 + $0xa8] sm:$0xff] %vm804_vm3, %v6897_v50  ;;  %v3397_v41 = vpop.f32.mrb[35].mxu1  ;;  %v2241_v31 = vpop.f32.mrb[85].mxu0  ;;  %v3526_v28 = vadd.f32 %v3525_v38, %v3524_v23  ;;  %v2386_v30 = vmul.f32 %v2221_v29, %v2221_v29  ;;  %v3629_v43 = vsel %vm804_vm3, %v3583_v13, 0.0 }
 0x1f3   : > { %v2432_v32 = vadd.f32 %v2431_v34, %v2430_v7  ;;  %3688 = vst.msk [vmem:[%s6754_s23 + $0x90] sm:$0xff] %vm804_vm3, %v3397_v41  ;;  %2492 = vst.msk [vmem:[%s6742_s20 + $0xa0] sm:$0xff] %vm804_vm3, %v2241_v31  ;;  %v2333_v20 = vsel %vm804_vm3, %v6857_v5, 0.0  ;;  %v3627_v22 = vsel %vm804_vm3, %v3582_v6, 0.0  ;;  %v2332_v25 = vadd.f32 %v2331_v40, %v2330_v36 }
 0x1f4   : > { %v2435_v0 = vsel %vm804_vm3, %v2387_v27, 0.0  ;;  %v3628_v61 = vadd.f32 %v3627_v22, %v3626_v14  ;;  %v2433_v46 = vsel %vm804_vm3, %v2386_v30, 0.0  ;;  %v3585_v48 = vmul.f32 %v5077_v54, %v5077_v54 }
 0x1f5   : > { %v6917_v21 = vpop.f32.mrb[36].mxu1  ;;  %v6919_v47 = vpop.f32.mrb[86].mxu0  ;;  %v2434_v39 = vadd.f32 %v2433_v46, %v2432_v32  ;;  %v2389_v51 = vmul.f32 %v6875_v55, %v6875_v55  ;;  %v3528_v5 = vadd.f32 %v3527_v1, %v3526_v28  ;;  %v3529_v18 = vsel %vm804_vm3, %v3387_v60, 0.0 }
 0x1f6   : > { %3691 = vst.msk [vmem:[%s6754_s23 + $0xa8] sm:$0xff] %vm804_vm3, %v6917_v21  ;;  %2495 = vst.msk [vmem:[%s6742_s20 + $0xb8] sm:$0xff] %vm804_vm3, %v6919_v47  ;;  %v3407_v49 = vpop.f32.mrb[37].mxu1  ;;  %v6930_v17 = vpop.f32.mrb[87].mxu0  ;;  %v3531_v37 = vsel %vm804_vm3, %v5077_v54, 0.0  ;;  %v3584_v29 = vmul.f32 %v3387_v60, %v3387_v60  ;;  %v3630_v42 = vadd.f32 %v3629_v43, %v3628_v61  ;;  %v2334_v59 = vadd.f32 %v2333_v20, %v2332_v25 }
 0x1f7   : > { %3690 = vst.msk [vmem:[%s6754_s23 + $0xa0] sm:$0xff] %vm804_vm3, %v3407_v49  ;;  %2494 = vst.msk [vmem:[%s6742_s20 + $0xb0] sm:$0xff] %vm804_vm3, %v6930_v17  ;;  %v3530_v2 = vadd.f32 %v3529_v18, %v3528_v5  ;;  %v2335_v3 = vsel %vm804_vm3, %v2231_v44, 0.0  ;;  %v2388_v9 = vmul.f32 %v2231_v44, %v2231_v44  ;;  %v2436_v11 = vadd.f32 %v2435_v0, %v2434_v39 }
 0x1f8   : > { %v3633_v35 = vsel %vm804_vm3, %v3585_v48, 0.0  ;;  %v2337_v52 = vsel %vm804_vm3, %v6875_v55, 0.0  ;;  %v3631_v45 = vsel %vm804_vm3, %v3584_v29, 0.0  ;;  %v2336_v12 = vadd.f32 %v2335_v3, %v2334_v59 }
 0x1f9   : > { %v6943_v56 = vpop.f32.mrb[38].mxu1  ;;  %v6945_v8 = vpop.f32.mrb[88].mxu0  ;;  %v2439_v54 = vsel %vm804_vm3, %v2389_v51, 0.0  ;;  %v3632_v15 = vadd.f32 %v3631_v45, %v3630_v42  ;;  %v2437_v33 = vsel %vm804_vm3, %v2388_v9, 0.0  ;;  %v3587_v63 = vmul.f32 %v6895_v10, %v6895_v10 }
 0x1fa   : > { %3693 = vst.msk [vmem:[%s6754_s23 + $0xb8] sm:$0xff] %vm804_vm3, %v6943_v56  ;;  %2497 = vst.msk [vmem:[%s6742_s20 + $0xc8] sm:$0xff] %vm804_vm3, %v6945_v8  ;;  %v6957_v55 = vpop.f32.mrb[39].mxu1  ;;  %v6959_v16 = vpop.f32.mrb[89].mxu0  ;;  %v2438_v60 = vadd.f32 %v2437_v33, %v2436_v11  ;;  %v2391_v44 = vmul.f32 %v6897_v50, %v6897_v50  ;;  %v3532_v53 = vadd.f32 %v3531_v37, %v3530_v2  ;;  %v3533_v26 = vsel %vm804_vm3, %v3397_v41, 0.0 }
 0x1fb   : > { %3692 = vst.msk [vmem:[%s6754_s23 + $0xb0] sm:$0xff] %vm804_vm3, %v6957_v55  ;;  %2496 = vst.msk [vmem:[%s6742_s20 + $0xc0] sm:$0xff] %vm804_vm3, %v6959_v16  ;;  %v3535_v57 = vsel %vm804_vm3, %v6895_v10, 0.0  ;;  %v3586_v62 = vmul.f32 %v3397_v41, %v3397_v41  ;;  %v3634_v34 = vadd.f32 %v3633_v35, %v3632_v15  ;;  %v2338_v4 = vadd.f32 %v2337_v52, %v2336_v12 }
 0x1fc   : > { %v3534_v24 = vadd.f32 %v3533_v26, %v3532_v53  ;;  %v2339_v13 = vsel %vm804_vm3, %v2241_v31, 0.0  ;;  %v2390_v7 = vmul.f32 %v2241_v31, %v2241_v31  ;;  %v2440_v27 = vadd.f32 %v2439_v54, %v2438_v60 }
 0x1fd   : > { %v6973_v23 = vpop.f32.mrb[40].mxu1  ;;  %v6975_v38 = vpop.f32.mrb[90].mxu0  ;;  %v3637_v1 = vsel %vm804_vm3, %v3587_v63, 0.0  ;;  %v2341_v6 = vsel %vm804_vm3, %v6897_v50, 0.0  ;;  %v3635_v10 = vsel %vm804_vm3, %v3586_v62, 0.0  ;;  %v2340_v14 = vadd.f32 %v2339_v13, %v2338_v4 }
 0x1fe   : > { %3695 = vst.msk [vmem:[%s6754_s23 + $0xc8] sm:$0xff] %vm804_vm3, %v6973_v23  ;;  %2499 = vst.msk [vmem:[%s6742_s20 + $0xd8] sm:$0xff] %vm804_vm3, %v6975_v38  ;;  %v6987_v36 = vpop.f32.mrb[41].mxu1  ;;  %v6989_v41 = vpop.f32.mrb[91].mxu0  ;;  %v2443_v31 = vsel %vm804_vm3, %v2391_v44, 0.0  ;;  %v3636_v28 = vadd.f32 %v3635_v10, %v3634_v34  ;;  %v2441_v40 = vsel %vm804_vm3, %v2390_v7, 0.0  ;;  %v3589_v50 = vmul.f32 %v6917_v21, %v6917_v21 }
 0x1ff   : > { %3694 = vst.msk [vmem:[%s6754_s23 + $0xc0] sm:$0xff] %vm804_vm3, %v6987_v36  ;;  %2498 = vst.msk [vmem:[%s6742_s20 + $0xd0] sm:$0xff] %vm804_vm3, %v6989_v41  ;;  %v2442_v30 = vadd.f32 %v2441_v40, %v2440_v27  ;;  %v2393_v32 = vmul.f32 %v6919_v47, %v6919_v47  ;;  %v3536_v43 = vadd.f32 %v3535_v57, %v3534_v24  ;;  %v3537_v20 = vsel %vm804_vm3, %v3407_v49, 0.0 }
 0x200   : > { %v3539_v22 = vsel %vm804_vm3, %v6917_v21, 0.0  ;;  %v3588_v25 = vmul.f32 %v3407_v49, %v3407_v49  ;;  %v3638_v0 = vadd.f32 %v3637_v1, %v3636_v28  ;;  %v2342_v61 = vadd.f32 %v2341_v6, %v2340_v14 }
 0x201   : > { %v7006_v46 = vpop.f32.mrb[42].mxu1  ;;  %v7008_v48 = vpop.f32.mrb[92].mxu0  ;;  %v3538_v39 = vadd.f32 %v3537_v20, %v3536_v43  ;;  %v2343_v51 = vsel %vm804_vm3, %v6930_v17, 0.0  ;;  %v2392_v5 = vmul.f32 %v6930_v17, %v6930_v17  ;;  %v2444_v18 = vadd.f32 %v2443_v31, %v2442_v30 }
 0x202   : > { %3697 = vst.msk [vmem:[%s6754_s23 + $0xd8] sm:$0xff] %vm804_vm3, %v7006_v46  ;;  %2501 = vst.msk [vmem:[%s6742_s20 + $0xe8] sm:$0xff] %vm804_vm3, %v7008_v48  ;;  %v7020_v21 = vpop.f32.mrb[43].mxu1  ;;  %v7022_v49 = vpop.f32.mrb[93].mxu0  ;;  %v3641_v37 = vsel %vm804_vm3, %v3589_v50, 0.0  ;;  %v2345_v29 = vsel %vm804_vm3, %v6919_v47, 0.0  ;;  %v2344_v59 = vadd.f32 %v2343_v51, %v2342_v61  ;;  %v3591_v9 = vmul.f32 %v6943_v56, %v6943_v56 }
 0x203   : > { %v3639_v42 = vsel %vm804_vm3, %v3588_v25, 0.0  ;;  %3696 = vst.msk [vmem:[%s6754_s23 + $0xd0] sm:$0xff] %vm804_vm3, %v7020_v21  ;;  %2500 = vst.msk [vmem:[%s6742_s20 + $0xe0] sm:$0xff] %vm804_vm3, %v7022_v49  ;;  %v2447_v17 = vsel %vm804_vm3, %v2393_v32, 0.0  ;;  %v2445_v3 = vsel %vm804_vm3, %v2392_v5, 0.0  ;;  %v2395_v11 = vmul.f32 %v6945_v8, %v6945_v8 }
 0x204   : > { %v3640_v2 = vadd.f32 %v3639_v42, %v3638_v0  ;;  %v2446_v47 = vadd.f32 %v2445_v3, %v2444_v18  ;;  %v3540_v35 = vadd.f32 %v3539_v22, %v3538_v39  ;;  %v3541_v52 = vsel %vm804_vm3, %v6957_v55, 0.0 }
 0x205   : > { %v7042_v45 = vpop.f32.mrb[44].mxu1  ;;  %v7044_v12 = vpop.f32.mrb[94].mxu0  ;;  %v3543_v54 = vsel %vm804_vm3, %v6943_v56, 0.0  ;;  %v3590_v15 = vmul.f32 %v6957_v55, %v6957_v55  ;;  %v2346_v63 = vadd.f32 %v2345_v29, %v2344_v59  ;;  %v2347_v26 = vsel %vm804_vm3, %v6959_v16, 0.0 }
 0x206   : > { %v3642_v33 = vadd.f32 %v3641_v37, %v3640_v2  ;;  %3699 = vst.msk [vmem:[%s6754_s23 + $0xe8] sm:$0xff] %vm804_vm3, %v7042_v45  ;;  %2503 = vst.msk [vmem:[%s6742_s20 + $0xf8] sm:$0xff] %vm804_vm3, %v7044_v12  ;;  %v7056_v60 = vpop.f32.mrb[45].mxu1  ;;  %v7058_v44 = vpop.f32.mrb[95].mxu0  ;;  %v3542_v53 = vadd.f32 %v3541_v52, %v3540_v35  ;;  %v2394_v56 = vmul.f32 %v6959_v16, %v6959_v16  ;;  %v3645_v57 = vsel %vm804_vm3, %v3591_v9, 0.0 }
 0x207   : > { %v2448_v55 = vadd.f32 %v2447_v17, %v2446_v47  ;;  %3698 = vst.msk [vmem:[%s6754_s23 + $0xe0] sm:$0xff] %vm804_vm3, %v7056_v60  ;;  %2502 = vst.msk [vmem:[%s6742_s20 + $0xf0] sm:$0xff] %vm804_vm3, %v7058_v44  ;;  %v2349_v62 = vsel %vm804_vm3, %v6945_v8, 0.0  ;;  %v3643_v34 = vsel %vm804_vm3, %v3590_v15, 0.0  ;;  %v2348_v4 = vadd.f32 %v2347_v26, %v2346_v63 }
 0x208   : > { %v2451_v24 = vsel %vm804_vm3, %v2395_v11, 0.0  ;;  %v3644_v16 = vadd.f32 %v3643_v34, %v3642_v33  ;;  %v2449_v13 = vsel %vm804_vm3, %v2394_v56, 0.0  ;;  %v3593_v7 = vmul.f32 %v6973_v23, %v6973_v23 }
 0x209   : > { %v7078_v27 = vpop.f32.mrb[46].mxu1  ;;  %v2450_v1 = vadd.f32 %v2449_v13, %v2448_v55  ;;  %v2397_v6 = vmul.f32 %v6975_v38, %v6975_v38  ;;  %v3544_v10 = vadd.f32 %v3543_v54, %v3542_v53  ;;  %v3545_v8 = vsel %vm804_vm3, %v6987_v36, 0.0 }
 0x20a   : > { %3701 = vst.msk [vmem:[%s6754_s23 + $0xf8] sm:$0xff] %vm804_vm3, %v7078_v27  ;;  %v3457_v14 = vpop.f32.mrb[47].mxu1  ;;  %v3547_v31 = vsel %vm804_vm3, %v6973_v23, 0.0  ;;  %v3592_v28 = vmul.f32 %v6987_v36, %v6987_v36  ;;  %v3646_v40 = vadd.f32 %v3645_v57, %v3644_v16  ;;  %v2350_v50 = vadd.f32 %v2349_v62, %v2348_v4 }
 0x20b   : > { %3700 = vst.msk [vmem:[%s6754_s23 + $0xf0] sm:$0xff] %vm804_vm3, %v3457_v14  ;;  %v3546_v30 = vadd.f32 %v3545_v8, %v3544_v10  ;;  %v2351_v32 = vsel %vm804_vm3, %v6989_v41, 0.0  ;;  %v2396_v43 = vmul.f32 %v6989_v41, %v6989_v41  ;;  %v2452_v20 = vadd.f32 %v2451_v24, %v2450_v1 }
 0x20c   : > { %v3649_v22 = vsel %vm804_vm3, %v3593_v7, 0.0  ;;  %v2353_v23 = vsel %vm804_vm3, %v6975_v38, 0.0  ;;  %v3647_v25 = vsel %vm804_vm3, %v3592_v28, 0.0  ;;  %v2352_v36 = vadd.f32 %v2351_v32, %v2350_v50 }
 0x20d   : > { %v2455_v0 = vsel %vm804_vm3, %v2397_v6, 0.0  ;;  %v3648_v61 = vadd.f32 %v3647_v25, %v3646_v40  ;;  %v2453_v39 = vsel %vm804_vm3, %v2396_v43, 0.0  ;;  %v3595_v51 = vmul.f32 %v7006_v46, %v7006_v46 }
 0x20e   : > { %v2454_v5 = vadd.f32 %v2453_v39, %v2452_v20  ;;  %v2399_v41 = vmul.f32 %v7008_v48, %v7008_v48  ;;  %v3548_v18 = vadd.f32 %v3547_v31, %v3546_v30  ;;  %v3549_v37 = vsel %vm804_vm3, %v7020_v21, 0.0 }
 0x20f   : > { %v3551_v38 = vsel %vm804_vm3, %v7006_v46, 0.0  ;;  %v3594_v29 = vmul.f32 %v7020_v21, %v7020_v21  ;;  %v3650_v42 = vadd.f32 %v3649_v22, %v3648_v61  ;;  %v2354_v59 = vadd.f32 %v2353_v23, %v2352_v36 }
 0x210   : > { %v3550_v17 = vadd.f32 %v3549_v37, %v3548_v18  ;;  %v2355_v2 = vsel %vm804_vm3, %v7022_v49, 0.0  ;;  %v2398_v3 = vmul.f32 %v7022_v49, %v7022_v49  ;;  %v2456_v9 = vadd.f32 %v2455_v0, %v2454_v5 }
 0x211   : > { %v3653_v47 = vsel %vm804_vm3, %v3595_v51, 0.0  ;;  %v2357_v11 = vsel %vm804_vm3, %v7008_v48, 0.0  ;;  %v3651_v46 = vsel %vm804_vm3, %v3594_v29, 0.0  ;;  %v2356_v35 = vadd.f32 %v2355_v2, %v2354_v59 }
 0x212   : > { %v2459_v21 = vsel %vm804_vm3, %v2399_v41, 0.0  ;;  %v3652_v52 = vadd.f32 %v3651_v46, %v3650_v42  ;;  %v2457_v54 = vsel %vm804_vm3, %v2398_v3, 0.0  ;;  %v3597_v15 = vmul.f32 %v7042_v45, %v7042_v45 }
 0x213   : > { %v2458_v33 = vadd.f32 %v2457_v54, %v2456_v9  ;;  %v3555_v49 = vsel %vm804_vm3, %v7042_v45, 0.0  ;;  %v3552_v63 = vadd.f32 %v3551_v38, %v3550_v17  ;;  %v3553_v53 = vsel %vm804_vm3, %v7056_v60, 0.0 }
 0x214   : > { %v2401_v48 = vmul.f32 %v7044_v12, %v7044_v12  ;;  %v3596_v26 = vmul.f32 %v7056_v60, %v7056_v60  ;;  %v3654_v56 = vadd.f32 %v3653_v47, %v3652_v52  ;;  %v2358_v55 = vadd.f32 %v2357_v11, %v2356_v35 }
 0x215   : > { %v3554_v57 = vadd.f32 %v3553_v53, %v3552_v63  ;;  %v2359_v62 = vsel %vm804_vm3, %v7058_v44, 0.0  ;;  %v2400_v34 = vmul.f32 %v7058_v44, %v7058_v44  ;;  %v2460_v45 = vadd.f32 %v2459_v21, %v2458_v33 }
 0x216   : > { %v3657_v4 = vsel %vm804_vm3, %v3597_v15, 0.0  ;;  %v2361_v24 = vsel %vm804_vm3, %v7044_v12, 0.0  ;;  %v3655_v16 = vsel %vm804_vm3, %v3596_v26, 0.0  ;;  %v2360_v13 = vadd.f32 %v2359_v62, %v2358_v55 }
 0x217   : > { %v3656_v7 = vadd.f32 %v3655_v16, %v3654_v56  ;;  %v2461_v60 = vsel %vm804_vm3, %v2400_v34, 0.0  ;;  %v3556_v1 = vadd.f32 %v3555_v49, %v3554_v57  ;;  %v3557_v6 = vsel %vm804_vm3, %v3457_v14, 0.0 }
 0x218   : > { %v2362_v10 = vadd.f32 %v2361_v24, %v2360_v13  ;;  %v2462_v8 = vadd.f32 %v2461_v60, %v2460_v45  ;;  %v3599_v44 = vmul.f32 %v7078_v27, %v7078_v27  ;;  %v3598_v31 = vmul.f32 %v3457_v14, %v3457_v14 }
 0x219   : > { %v2463_v28 = vsel %vm804_vm3, %v2401_v48, 0.0  ;;  %v3558_v40 = vadd.f32 %v3557_v6, %v3556_v1  ;;  %v3658_v50 = vadd.f32 %v3657_v4, %v3656_v7  ;;  %v3559_v32 = vsel %vm804_vm3, %v7078_v27, 0.0 }
 0x21a   : > { %v2363_v12 = vrot.slane %v2362_v10, 4  ;;  %v2464_v30 = vadd.f32 %v2463_v28, %v2462_v8  ;;  %v3659_v43 = vsel %vm804_vm3, %v3598_v31, 0.0  ;;  %v3661_v36 = vsel %vm804_vm3, %v3599_v44, 0.0 }
 0x21b   : > { %v3560_v20 = vadd.f32 %v3559_v32, %v3558_v40  ;;  %v3660_v22 = vadd.f32 %v3659_v43, %v3658_v50 }
 0x21c   : > { %v2364_v23 = vadd.f32 %v2363_v12, %v2362_v10  ;;  %v2465_v25 = vrot.slane %v2464_v30, 4 }
 0x21d   : > { %v3561_v0 = vrot.slane %v3560_v20, 4  ;;  %v3662_v61 = vadd.f32 %v3661_v36, %v3660_v22 }
 0x21e   : > { %v2365_v14 = vrot.slane %v2364_v23, 2  ;;  %v2466_v39 = vadd.f32 %v2465_v25, %v2464_v30 }
 0x21f   : > { %v3562_v51 = vadd.f32 %v3561_v0, %v3560_v20  ;;  %v3663_v5 = vrot.slane %v3662_v61, 4 }
 0x220   : > { %v2366_v41 = vadd.f32 %v2365_v14, %v2364_v23  ;;  %v2467_v18 = vrot.slane %v2466_v39, 2 }
 0x221   : > { %v3563_v37 = vrot.slane %v3562_v51, 2  ;;  %v3664_v38 = vadd.f32 %v3663_v5, %v3662_v61 }
 0x222   : > { %v2367_v27 = vrot.slane %v2366_v41, 1  ;;  %v2468_v29 = vadd.f32 %v2467_v18, %v2466_v39 }
 0x223   : > { %v3564_v42 = vadd.f32 %v3563_v37, %v3562_v51  ;;  %v3665_v59 = vrot.slane %v3664_v38, 2 }
 0x224   : > { %v2368_v17 = vadd.f32 %v2367_v27, %v2366_v41  ;;  %v2469_v2 = vrot.slane %v2468_v29, 1 }
 0x225   : > { %v3565_v3 = vrot.slane %v3564_v42, 1  ;;  %v3666_v9 = vadd.f32 %v3665_v59, %v3664_v38 }
 0x226   : > { %v2369_v47 = vadd.f32 %v2368_v17, %v6734_v19  ;;  %v2470_v11 = vadd.f32 %v2469_v2, %v2468_v29 }
 0x227   : > { %v3566_v46 = vadd.f32 %v3565_v3, %v3564_v42  ;;  %v3667_v35 = vrot.slane %v3666_v9, 1 }
 0x228   : > { %v2471_v21 = vadd.f32 %v2470_v11, %v6736_v58 }
 0x229   : > { %v3567_v52 = vadd.f32 %v3566_v46, %v2369_v47  ;;  %v3668_v54 = vadd.f32 %v3667_v35, %v3666_v9 }
 0x22b   : > { %v3669_v15 = vadd.f32 %v3668_v54, %v2471_v21  ;;  %3707 = vst.msk [vmem:[%s419_s26] sm:$0x1] %vm3706_vm4, %v3567_v52 }
 0x22d   : > { %3708 = vst.msk [vmem:[%s422_s10] sm:$0x1] %vm3706_vm4, %v3669_v15 }
 0x22e PF: > { %s19_s28 = sadd.s32 1, %s5325_s28   ;;  %s7228_s27 = smov %s5321_s2 }
 0x22f   : > { %p16_p5 = scmp.ge.s32.totalorder %s19_s28, 4   ;;  %s7229_s2 = smov %s7231_s29 }
 0x231   :  { %18 = sbr.rel (!%p16_p5) target bundleno = 2 (0x2), region = 139 }

</bundles_post_ra>
